<compile_context>
chip_gen: v6e
topology: v6e:2x2x1
jax: 0.10.0
libtpu: 0.0.40
codegen_flags: <defaults>
</compile_context>

<pallas_src>
import math
from functools import partial

import jax
import jax.numpy as jnp
from jax import lax
from jax.experimental import pallas as pl
from jax.experimental.pallas import tpu as pltpu


# ---------------------------------------------------------------------------
# Kernel: one (batch, q-tile) step of the decoder block.
# ---------------------------------------------------------------------------
def _decoder_block_kernel(
    x_ref,                       # (1, TQ, H)   current q-tile of the sequence
    wq_ref, wk_ref, wv_ref,      # (H, H) each
    bq_ref, bk_ref, bv_ref,      # (1, H) each
    wo_ref, bo_ref,              # (H, H), (1, H)
    ln1w_ref, ln1b_ref,          # (1, H)
    w1_ref, b1_ref,              # (H, 4H), (1, 4H)
    w2_ref, b2_ref,              # (4H, H), (1, H)
    ln2w_ref, ln2b_ref,          # (1, H)
    o_ref,                       # (1, TQ, H)
    k_cache,                     # VMEM scratch (nq, nh, dh, TQ)  K^T cache
    v_cache,                     # VMEM scratch (nq, nh, TQ, dh)  V cache
    *,
    num_heads: int,
    eps: float,
    approx_recip: bool,
):
    qi = pl.program_id(1)                    # q-tile index (== newest kv tile)
    TQ = x_ref.shape[1]
    H = x_ref.shape[2]
    nh = num_heads
    dh = H // nh
    pdt = k_cache.dtype                      # MXU operand ("model") dtype
    f32 = jnp.float32
    scale = 1.0 / math.sqrt(dh)
    neg = jnp.float32(-1e30)                 # diagonal always kept -> no NaN risk

    xq = x_ref[0]                            # (TQ, H), model dtype
    xq_f32 = xq.astype(f32)

    # ---- QKV projection for THIS tile only (incremental KV, no qi==0 spike) --
    q = jnp.dot(xq, wq_ref[...], preferred_element_type=f32) + bq_ref[...].astype(f32)
    k = jnp.dot(xq, wk_ref[...], preferred_element_type=f32) + bk_ref[...].astype(f32)
    v = jnp.dot(xq, wv_ref[...], preferred_element_type=f32) + bv_ref[...].astype(f32)

    # Head-major layouts (relayouts done in f32, cast to MXU dtype afterwards).
    # 1/sqrt(dh) is folded into Q once (cheaper than scaling every score tile).
    q_heads = (q * scale).reshape(TQ, nh, dh).transpose(1, 0, 2).astype(pdt)  # (nh,TQ,dh)
    k_t = k.T.reshape(nh, dh, TQ).astype(pdt)                                 # (nh,dh,TQ)
    v_heads = v.reshape(TQ, nh, dh).transpose(1, 0, 2).astype(pdt)            # (nh,TQ,dh)

    # Append this kv tile to the caches (leading-dim dynamic index only).
    k_cache[qi] = k_t
    v_cache[qi] = v_heads

    # ---- causal attention: online softmax over kv tiles 0..qi ---------------
    def kv_step(kv, carry, keep_mask):
        m_i, l_i, acc = carry
        kt = k_cache[kv]                     # (nh, dh, TQ)
        vt = v_cache[kv]                     # (nh, TQ, dh)
        s = jnp.einsum('hqd,hdk->hqk', q_heads, kt,
                       preferred_element_type=f32)              # (nh, TQ, TQ)
        if keep_mask is not None:            # only the diagonal tile is masked
            s = jnp.where(keep_mask[None], s, neg)
        m_new = jnp.maximum(m_i, s.max(axis=-1, keepdims=True))
        alpha = jnp.exp(m_i - m_new)
        p = jnp.exp(s - m_new)
        l_new = alpha * l_i + p.sum(axis=-1, keepdims=True)
        acc_new = alpha * acc + jnp.einsum('hqk,hkd->hqd', p.astype(pdt), vt,
                                           preferred_element_type=f32)
        return m_new, l_new, acc_new

    m0 = jnp.full((nh, TQ, 1), neg, f32)
    l0 = jnp.zeros((nh, TQ, 1), f32)
    a0 = jnp.zeros((nh, TQ, dh), f32)

    # Off-diagonal kv tiles: fully visible, no mask / iota work at all.
    carry = lax.fori_loop(0, qi, lambda i, c: kv_step(i, c, None), (m0, l0, a0))

    # Diagonal kv tile: strict-upper-triangle masked (local indices suffice
    # because the kv tile size equals the q tile size).
    row = lax.broadcasted_iota(jnp.int32, (TQ, TQ), 0)
    col = lax.broadcasted_iota(jnp.int32, (TQ, TQ), 1)
    m_f, l_f, acc_f = kv_step(qi, carry, col <= row)

    # Normalize (EUP reciprocal), re-assemble heads, single full-H W_O matmul.
    attn_h = acc_f * pl.reciprocal(l_f, approx=approx_recip)    # (nh, TQ, dh) f32
    attn = attn_h.transpose(1, 0, 2).reshape(TQ, H)             # (TQ, H) f32
    attn = jnp.dot(attn.astype(pdt), wo_ref[...],
                   preferred_element_type=f32) + bo_ref[...].astype(f32)

    # ---- residual + LayerNorm1 (f32 statistics) ------------------------------
    h1_in = attn + xq_f32
    mu1 = jnp.mean(h1_in, axis=-1, keepdims=True)
    var1 = jnp.mean(jnp.square(h1_in - mu1), axis=-1, keepdims=True)
    h1 = (h1_in - mu1) * lax.rsqrt(var1 + eps)
    h1 = h1 * ln1w_ref[...].astype(f32) + ln1b_ref[...].astype(f32)

    # ---- MLP: Linear -> exact erf-GELU -> Linear -----------------------------
    hmid = jnp.dot(h1.astype(pdt), w1_ref[...],
                   preferred_element_type=f32) + b1_ref[...].astype(f32)
    hmid = 0.5 * hmid * (1.0 + lax.erf(hmid * (1.0 / math.sqrt(2.0))))
    mlp = jnp.dot(hmid.astype(pdt), w2_ref[...],
                  preferred_element_type=f32) + b2_ref[...].astype(f32)
    # TODO(synk): nn.Dropout(p=0.1) is modeled as eval-mode identity (no RNG).

    # ---- residual + LayerNorm2 -----------------------------------------------
    h2_in = mlp + h1
    mu2 = jnp.mean(h2_in, axis=-1, keepdims=True)
    var2 = jnp.mean(jnp.square(h2_in - mu2), axis=-1, keepdims=True)
    h2 = (h2_in - mu2) * lax.rsqrt(var2 + eps)
    h2 = h2 * ln2w_ref[...].astype(f32) + ln2b_ref[...].astype(f32)

    o_ref[0] = h2.astype(o_ref.dtype)


# ---------------------------------------------------------------------------
# Wrapper
# ---------------------------------------------------------------------------
def _const_spec(arr, single_buffer):
    """Full-array, grid-invariant block; single-buffered when supported."""
    nd = arr.ndim
    idx = lambda b, qi, _nd=nd: (0,) * _nd
    if single_buffer:
        try:
            return pl.BlockSpec(arr.shape, idx, pipeline_mode=pl.Buffered(1))
        except Exception:
            pass  # pl.Buffered / pipeline_mode not available on this build
    return pl.BlockSpec(arr.shape, idx)


def _vmem_limit_bytes(B, S, H, q_tile, num_heads, dtype, weight_buffers):
    """Generation-aware VMEM budget derived from actual buffer sizes."""
    item = jnp.dtype(dtype).itemsize
    weights = (12 * H * H + 16 * H) * item * weight_buffers
    kv_cache = 2 * S * H * item
    io_blocks = 2 * (2 * q_tile * H) * item          # x + out, double-buffered
    work = (4 * num_heads * q_tile * q_tile          # score/prob tiles (f32)
            + 3 * q_tile * 4 * H                     # MLP intermediates (f32)
            + 4 * num_heads * q_tile * (H // num_heads)) * 4
    needed = weights + kv_cache + io_blocks + work + (4 << 20)
    try:
        cap = int(pltpu.get_tpu_info().vmem_capacity_bytes)
    except Exception:
        cap = 64 * 1024 * 1024                       # v7x-safe fallback
    return int(min(max(needed, 32 << 20), int(cap * 0.85)))


def decoder_block(x, params, *, num_heads: int, eps: float = 1e-5,
                  q_tile: int | None = None, approx_recip: bool | None = None,
                  single_buffer_weights: bool = True):
    B, S, H = x.shape
    assert H % num_heads == 0
    dh = H // num_heads
    if q_tile is None:
        q_tile = min(S, 128)
    assert S % q_tile == 0
    nq = S // q_tile
    if approx_recip is None:
        # exact reciprocal for f32 accuracy-critical use; approx for bf16
        approx_recip = (x.dtype == jnp.bfloat16)

    # Split the fused QKV weight into lane-dense per-projection weights
    # (one-time XLA ops in the wrapper, not per-step kernel work).
    wqkv, bqkv = params["wqkv"], params["bqkv"]
    wq, wk, wv = wqkv[:, 0 * H:1 * H], wqkv[:, 1 * H:2 * H], wqkv[:, 2 * H:3 * H]
    bq, bk, bv = bqkv[:, 0 * H:1 * H], bqkv[:, 1 * H:2 * H], bqkv[:, 2 * H:3 * H]

    weights = [
        wq, wk, wv, bq, bk, bv, params["wo"], params["bo"],
        params["ln1w"], params["ln1b"],
        params["w1"], params["b1"], params["w2"], params["b2"],
        params["ln2w"], params["ln2b"],
    ]

    kernel = partial(_decoder_block_kernel,
                     num_heads=num_heads, eps=eps, approx_recip=approx_recip)

    # Advisory cost estimate (causal attention ~ S*(S+TQ)/2 live (q,k) pairs).
    item = jnp.dtype(x.dtype).itemsize
    lin_flops = 24 * B * S * H * H
    attn_flops = 2 * B * num_heads * dh * S * (S + q_tile)
    cost = pl.CostEstimate(
        flops=int(lin_flops + attn_flops),
        transcendentals=int(B * (num_heads * S * (S + q_tile) // 2 + 4 * S * H)),
        bytes_accessed=int(2 * B * S * H * item + (12 * H * H + 16 * H) * item))

    def _run(single_buffer):
        in_specs = [pl.BlockSpec((1, q_tile, H), lambda b, qi: (b, qi, 0))]
        in_specs += [_const_spec(w, single_buffer) for w in weights]
        out_spec = pl.BlockSpec((1, q_tile, H), lambda b, qi: (b, qi, 0))
        return pl.pallas_call(
            kernel,
            out_shape=jax.ShapeDtypeStruct((B, S, H), x.dtype),
            grid_spec=pltpu.PrefetchScalarGridSpec(
                num_scalar_prefetch=0,
                grid=(B, nq),
                in_specs=in_specs,
                out_specs=out_spec,
                scratch_shapes=[
                    pltpu.VMEM((nq, num_heads, dh, q_tile), x.dtype),  # K^T cache
                    pltpu.VMEM((nq, num_heads, q_tile, dh), x.dtype),  # V cache
                ],
            ),
            compiler_params=pltpu.CompilerParams(
                # batch axis parallel (megacore); q-tile axis arbitrary because
                # the K/V caches carry across q-tiles of the same batch element.
                dimension_semantics=("parallel", "arbitrary"),
                vmem_limit_bytes=_vmem_limit_bytes(
                    B, S, H, q_tile, num_heads, x.dtype,
                    1 if single_buffer else 2),
            ),
            cost_estimate=cost,
        )(x, *weights)

    if single_buffer_weights:
        try:
            return _run(True)
        except Exception:
            # pipeline_mode=pl.Buffered(1) rejected by this jax/Mosaic build:
            # fall back to the default (double-buffered) weight blocks.
            pass
    return _run(False)


# ---------------------------------------------------------------------------
# Pure-JAX reference (mirrors the PyTorch module exactly, eval mode)
# ---------------------------------------------------------------------------
def decoder_block_ref(x, p, *, num_heads: int, eps: float = 1e-5):
    B, S, H = x.shape
    dh = H // num_heads

    def ln(z, w, b):
        m = jnp.mean(z, axis=-1, keepdims=True)
        v = jnp.mean((z - m) ** 2, axis=-1, keepdims=True)
        return (z - m) / jnp.sqrt(v + eps) * w + b

    qkv = x @ p["wqkv"] + p["bqkv"]
    q, k, v = jnp.split(qkv, 3, axis=-1)
    q = q.reshape(B, S, num_heads, dh).transpose(0, 2, 1, 3)
    k = k.reshape(B, S, num_heads, dh).transpose(0, 2, 1, 3)
    v = v.reshape(B, S, num_heads, dh).transpose(0, 2, 1, 3)
    scores = jnp.einsum("bnqd,bnkd->bnqk", q, k) / math.sqrt(dh)
    mask = jnp.tril(jnp.ones((S, S), bool))
    scores = jnp.where(mask, scores, -jnp.inf)
    probs = jax.nn.softmax(scores, axis=-1)
    att = jnp.einsum("bnqk,bnkd->bnqd", probs, v)
    att = att.transpose(0, 2, 1, 3).reshape(B, S, H)
    att = att @ p["wo"] + p["bo"]
    h1 = ln(att + x, p["ln1w"], p["ln1b"])
    hm = h1 @ p["w1"] + p["b1"]
    hm = 0.5 * hm * (1.0 + lax.erf(hm / math.sqrt(2.0)))
    mlp = hm @ p["w2"] + p["b2"]
    return ln(mlp + h1, p["ln2w"], p["ln2b"])


# ---------------------------------------------------------------------------
if __name__ == "__main__":
    B, S, H, NH = 2, 16, 32, 4   # batch, seq, hidden_size, num_heads
    TQ = 8                       # 2 q-tiles / sequence -> exercises kv-tiled path

    key = jax.random.PRNGKey(0)
    ks = jax.random.split(key, 10)
    f32 = jnp.float32

    params = {
        "wqkv": 0.02 * jax.random.normal(ks[0], (H, 3 * H), f32),
        "bqkv": 0.01 * jax.random.normal(ks[1], (1, 3 * H), f32),
        "wo":   0.02 * jax.random.normal(ks[2], (H, H), f32),
        "bo":   0.01 * jax.random.normal(ks[3], (1, H), f32),
        "ln1w": jnp.ones((1, H), f32),
        "ln1b": jnp.zeros((1, H), f32),
        "w1":   0.02 * jax.random.normal(ks[4], (H, 4 * H), f32),
        "b1":   0.01 * jax.random.normal(ks[5], (1, 4 * H), f32),
        "w2":   0.02 * jax.random.normal(ks[6], (4 * H, H), f32),
        "b2":   0.01 * jax.random.normal(ks[7], (1, H), f32),
        "ln2w": jnp.ones((1, H), f32),
        "ln2b": jnp.zeros((1, H), f32),
    }
    x = jax.random.normal(ks[8], (B, S, H), f32)

    ref = decoder_block_ref(x, params, num_heads=NH)

    # 1) strict f32 check (exact reciprocal) against the pure-JAX reference.
    out = decoder_block(x, params, num_heads=NH, q_tile=TQ, approx_recip=False)
    out = jax.block_until_ready(out)
    assert out.shape == (B, S, H)
    err = float(jnp.max(jnp.abs(out - ref)))
    assert jnp.allclose(out, ref, atol=5e-4, rtol=5e-4), err

    # 2) optimized path: bf16 MXU operands + approximate reciprocal.
    params_b = {k: v.astype(jnp.bfloat16) for k, v in params.items()}
    x_b = x.astype(jnp.bfloat16)
    out_b = decoder_block(x_b, params_b, num_heads=NH, q_tile=TQ, approx_recip=True)
    out_b = jax.block_until_ready(out_b)
    ref_b = decoder_block_ref(
        x_b.astype(f32), {k: v.astype(f32) for k, v in params_b.items()}, num_heads=NH)
    err_b = float(jnp.max(jnp.abs(out_b.astype(f32) - ref_b)))
    assert jnp.allclose(out_b.astype(f32), ref_b, atol=7.5e-2, rtol=7.5e-2), err_b

    print("KERNEL_OK")
</pallas_src>

<mosaic_0001>
module attributes {stable_mosaic.version = 11 : i64} {
  func.func @_decoder_block_kernel(%arg0: i32, %arg1: i32, %arg2: memref<1x8x32xf32, #tpu.memory_space<vmem>>, %arg3: memref<32x32xf32, #tpu.memory_space<vmem>>, %arg4: memref<32x32xf32, #tpu.memory_space<vmem>>, %arg5: memref<32x32xf32, #tpu.memory_space<vmem>>, %arg6: memref<1x32xf32, #tpu.memory_space<vmem>>, %arg7: memref<1x32xf32, #tpu.memory_space<vmem>>, %arg8: memref<1x32xf32, #tpu.memory_space<vmem>>, %arg9: memref<32x32xf32, #tpu.memory_space<vmem>>, %arg10: memref<1x32xf32, #tpu.memory_space<vmem>>, %arg11: memref<1x32xf32, #tpu.memory_space<vmem>>, %arg12: memref<1x32xf32, #tpu.memory_space<vmem>>, %arg13: memref<32x128xf32, #tpu.memory_space<vmem>>, %arg14: memref<1x128xf32, #tpu.memory_space<vmem>>, %arg15: memref<128x32xf32, #tpu.memory_space<vmem>>, %arg16: memref<1x32xf32, #tpu.memory_space<vmem>>, %arg17: memref<1x32xf32, #tpu.memory_space<vmem>>, %arg18: memref<1x32xf32, #tpu.memory_space<vmem>>, %arg19: memref<1x8x32xf32, #tpu.memory_space<vmem>>, %arg20: memref<2x4x8x8xf32, #tpu.memory_space<vmem>>, %arg21: memref<2x4x8x8xf32, #tpu.memory_space<vmem>>) attributes {dimension_semantics = [#tpu.dimension_semantics<parallel>, #tpu.dimension_semantics<arbitrary>], iteration_bounds = array<i64: 2, 2>, scalar_prefetch = 0 : i64, scratch_operands = 2 : i64, tpu.core_type = #tpu.core_type<tc>, window_params = [{transform_indices = @transform_0, window_bounds = array<i64: 1, 8, 32>}, {pipeline_mode = #tpu.pipeline_mode<synchronous>, transform_indices = @transform_1, window_bounds = array<i64: 32, 32>}, {pipeline_mode = #tpu.pipeline_mode<synchronous>, transform_indices = @transform_2, window_bounds = array<i64: 32, 32>}, {pipeline_mode = #tpu.pipeline_mode<synchronous>, transform_indices = @transform_3, window_bounds = array<i64: 32, 32>}, {pipeline_mode = #tpu.pipeline_mode<synchronous>, transform_indices = @transform_4, window_bounds = array<i64: 1, 32>}, {pipeline_mode = #tpu.pipeline_mode<synchronous>, transform_indices = @transform_5, window_bounds = array<i64: 1, 32>}, {pipeline_mode = #tpu.pipeline_mode<synchronous>, transform_indices = @transform_6, window_bounds = array<i64: 1, 32>}, {pipeline_mode = #tpu.pipeline_mode<synchronous>, transform_indices = @transform_7, window_bounds = array<i64: 32, 32>}, {pipeline_mode = #tpu.pipeline_mode<synchronous>, transform_indices = @transform_8, window_bounds = array<i64: 1, 32>}, {pipeline_mode = #tpu.pipeline_mode<synchronous>, transform_indices = @transform_9, window_bounds = array<i64: 1, 32>}, {pipeline_mode = #tpu.pipeline_mode<synchronous>, transform_indices = @transform_10, window_bounds = array<i64: 1, 32>}, {pipeline_mode = #tpu.pipeline_mode<synchronous>, transform_indices = @transform_11, window_bounds = array<i64: 32, 128>}, {pipeline_mode = #tpu.pipeline_mode<synchronous>, transform_indices = @transform_12, window_bounds = array<i64: 1, 128>}, {pipeline_mode = #tpu.pipeline_mode<synchronous>, transform_indices = @transform_13, window_bounds = array<i64: 128, 32>}, {pipeline_mode = #tpu.pipeline_mode<synchronous>, transform_indices = @transform_14, window_bounds = array<i64: 1, 32>}, {pipeline_mode = #tpu.pipeline_mode<synchronous>, transform_indices = @transform_15, window_bounds = array<i64: 1, 32>}, {pipeline_mode = #tpu.pipeline_mode<synchronous>, transform_indices = @transform_16, window_bounds = array<i64: 1, 32>}, {transform_indices = @transform_17, window_bounds = array<i64: 1, 8, 32>}]} {
    %c0 = arith.constant 0 : index
    %c0_0 = arith.constant 0 : index
    %c0_1 = arith.constant 0 : index
    %0 = vector.load %arg2[%c0, %c0_0, %c0_1] : memref<1x8x32xf32, #tpu.memory_space<vmem>>, vector<1x8x32xf32>
    %1 = vector.shape_cast %0 : vector<1x8x32xf32> to vector<8x32xf32>
    %c0_2 = arith.constant 0 : index
    %c0_3 = arith.constant 0 : index
    %2 = vector.load %arg3[%c0_2, %c0_3] : memref<32x32xf32, #tpu.memory_space<vmem>>, vector<32x32xf32>
    %cst = arith.constant dense<0.000000e+00> : vector<8x32xf32>
    %3 = tpu.matmul %1, %2, %cst {dimension_numbers = #tpu.dot_dimension_numbers<[1], [0], [0], [1], [0, 0, 1, 1], [], []>} : vector<8x32xf32>, vector<32x32xf32>, vector<8x32xf32> -> vector<8x32xf32>
    %c0_4 = arith.constant 0 : index
    %c0_5 = arith.constant 0 : index
    %4 = vector.load %arg6[%c0_4, %c0_5] : memref<1x32xf32, #tpu.memory_space<vmem>>, vector<1x32xf32>
    %5 = vector.broadcast %4 : vector<1x32xf32> to vector<8x32xf32>
    %6 = arith.addf %3, %5 : vector<8x32xf32>
    %c0_6 = arith.constant 0 : index
    %c0_7 = arith.constant 0 : index
    %7 = vector.load %arg4[%c0_6, %c0_7] : memref<32x32xf32, #tpu.memory_space<vmem>>, vector<32x32xf32>
    %cst_8 = arith.constant dense<0.000000e+00> : vector<8x32xf32>
    %8 = tpu.matmul %1, %7, %cst_8 {dimension_numbers = #tpu.dot_dimension_numbers<[1], [0], [0], [1], [0, 0, 1, 1], [], []>} : vector<8x32xf32>, vector<32x32xf32>, vector<8x32xf32> -> vector<8x32xf32>
    %c0_9 = arith.constant 0 : index
    %c0_10 = arith.constant 0 : index
    %9 = vector.load %arg7[%c0_9, %c0_10] : memref<1x32xf32, #tpu.memory_space<vmem>>, vector<1x32xf32>
    %10 = vector.broadcast %9 : vector<1x32xf32> to vector<8x32xf32>
    %11 = arith.addf %8, %10 : vector<8x32xf32>
    %c0_11 = arith.constant 0 : index
    %c0_12 = arith.constant 0 : index
    %12 = vector.load %arg5[%c0_11, %c0_12] : memref<32x32xf32, #tpu.memory_space<vmem>>, vector<32x32xf32>
    %cst_13 = arith.constant dense<0.000000e+00> : vector<8x32xf32>
    %13 = tpu.matmul %1, %12, %cst_13 {dimension_numbers = #tpu.dot_dimension_numbers<[1], [0], [0], [1], [0, 0, 1, 1], [], []>} : vector<8x32xf32>, vector<32x32xf32>, vector<8x32xf32> -> vector<8x32xf32>
    %c0_14 = arith.constant 0 : index
    %c0_15 = arith.constant 0 : index
    %14 = vector.load %arg8[%c0_14, %c0_15] : memref<1x32xf32, #tpu.memory_space<vmem>>, vector<1x32xf32>
    %15 = vector.broadcast %14 : vector<1x32xf32> to vector<8x32xf32>
    %16 = arith.addf %13, %15 : vector<8x32xf32>
    %cst_16 = arith.constant 0.353553385 : f32
    %17 = vector.broadcast %cst_16 : f32 to vector<8x32xf32>
    %18 = arith.mulf %6, %17 : vector<8x32xf32>
    %19 = vector.shape_cast %18 : vector<8x32xf32> to vector<8x4x8xf32>
    %20 = tpu.transpose %19, [1, 0, 2] : vector<8x4x8xf32> -> vector<4x8x8xf32>
    %21 = tpu.transpose %11, [1, 0] : vector<8x32xf32> -> vector<32x8xf32>
    %22 = vector.shape_cast %21 : vector<32x8xf32> to vector<4x8x8xf32>
    %23 = vector.shape_cast %16 : vector<8x32xf32> to vector<8x4x8xf32>
    %24 = tpu.transpose %23, [1, 0, 2] : vector<8x4x8xf32> -> vector<4x8x8xf32>
    %25 = arith.index_cast %arg1 : i32 to index
    %c0_17 = arith.constant 0 : index
    %c0_18 = arith.constant 0 : index
    %c0_19 = arith.constant 0 : index
    %26 = vector.load %arg20[%25, %c0_17, %c0_18, %c0_19] : memref<2x4x8x8xf32, #tpu.memory_space<vmem>>, vector<1x4x8x8xf32>
    %27 = vector.shape_cast %26 : vector<1x4x8x8xf32> to vector<4x8x8xf32>
    %28 = vector.shape_cast %22 : vector<4x8x8xf32> to vector<1x4x8x8xf32>
    tpu.vector_store %arg20[%25, %c0_17, %c0_18, %c0_19], %28 {strides = array<i32>} : memref<2x4x8x8xf32, #tpu.memory_space<vmem>>, vector<1x4x8x8xf32>,
    %29 = arith.index_cast %arg1 : i32 to index
    %c0_20 = arith.constant 0 : index
    %c0_21 = arith.constant 0 : index
    %c0_22 = arith.constant 0 : index
    %30 = vector.load %arg21[%29, %c0_20, %c0_21, %c0_22] : memref<2x4x8x8xf32, #tpu.memory_space<vmem>>, vector<1x4x8x8xf32>
    %31 = vector.shape_cast %30 : vector<1x4x8x8xf32> to vector<4x8x8xf32>
    %32 = vector.shape_cast %24 : vector<4x8x8xf32> to vector<1x4x8x8xf32>
    tpu.vector_store %arg21[%29, %c0_20, %c0_21, %c0_22], %32 {strides = array<i32>} : memref<2x4x8x8xf32, #tpu.memory_space<vmem>>, vector<1x4x8x8xf32>,
    %cst_23 = arith.constant -1.000000e+30 : f32
    %33 = vector.broadcast %cst_23 : f32 to vector<4x8x1xf32>
    %cst_24 = arith.constant 0.000000e+00 : f32
    %34 = vector.broadcast %cst_24 : f32 to vector<4x8x1xf32>
    %cst_25 = arith.constant 0.000000e+00 : f32
    %35 = vector.broadcast %cst_25 : f32 to vector<4x8x8xf32>
    %c0_i32 = arith.constant 0 : i32
    %36 = arith.subi %arg1, %c0_i32 : i32
    %37 = arith.addi %c0_i32, %36 : i32
    %c1_i32 = arith.constant 1 : i32
    %38:3 = scf.for %arg22 = %c0_i32 to %37 step %c1_i32 iter_args(%arg23 = %33, %arg24 = %34, %arg25 = %35) -> (vector<4x8x1xf32>, vector<4x8x1xf32>, vector<4x8x8xf32>)  : i32 {
      %151 = arith.index_cast %arg22 : i32 to index
      %c0_76 = arith.constant 0 : index
      %c0_77 = arith.constant 0 : index
      %c0_78 = arith.constant 0 : index
      %152 = vector.load %arg20[%151, %c0_76, %c0_77, %c0_78] : memref<2x4x8x8xf32, #tpu.memory_space<vmem>>, vector<1x4x8x8xf32>
      %153 = vector.shape_cast %152 : vector<1x4x8x8xf32> to vector<4x8x8xf32>
      %154 = arith.index_cast %arg22 : i32 to index
      %c0_79 = arith.constant 0 : index
      %c0_80 = arith.constant 0 : index
      %c0_81 = arith.constant 0 : index
      %155 = vector.load %arg21[%154, %c0_79, %c0_80, %c0_81] : memref<2x4x8x8xf32, #tpu.memory_space<vmem>>, vector<1x4x8x8xf32>
      %156 = vector.shape_cast %155 : vector<1x4x8x8xf32> to vector<4x8x8xf32>
      "tpu.trace_start"() <{level = 10 : i32, message = "hqd,hdk->hqk"}> : () -> ()
      %cst_82 = arith.constant dense<0.000000e+00> : vector<4x8x8xf32>
      %157 = tpu.matmul %20, %153, %cst_82 {dimension_numbers = #tpu.dot_dimension_numbers<[2], [1], [1], [2], [0, 0, 0, 1, 1, 2], [0], [0]>} : vector<4x8x8xf32>, vector<4x8x8xf32>, vector<4x8x8xf32> -> vector<4x8x8xf32>
      "tpu.trace_stop"() : () -> ()
      %cst_83 = arith.constant dense<0xFF800000> : vector<4x8xf32>
      %158 = vector.multi_reduction <maximumf>, %157, %cst_83 [2] : vector<4x8x8xf32> to vector<4x8xf32>
      %159 = vector.shape_cast %158 : vector<4x8xf32> to vector<4x8x1xf32>
      %160 = arith.maximumf %arg23, %159 : vector<4x8x1xf32>
      %161 = arith.subf %arg23, %160 : vector<4x8x1xf32>
      %162 = math.exp %161 : vector<4x8x1xf32>
      %163 = vector.broadcast %160 : vector<4x8x1xf32> to vector<4x8x8xf32>
      %164 = arith.subf %157, %163 : vector<4x8x8xf32>
      %165 = math.exp %164 : vector<4x8x8xf32>
      %166 = arith.mulf %162, %arg24 : vector<4x8x1xf32>
      %cst_84 = arith.constant dense<0.000000e+00> : vector<4x8xf32>
      %167 = vector.multi_reduction <add>, %165, %cst_84 [2] : vector<4x8x8xf32> to vector<4x8xf32>
      %168 = vector.shape_cast %167 : vector<4x8xf32> to vector<4x8x1xf32>
      %169 = arith.addf %166, %168 : vector<4x8x1xf32>
      %170 = vector.broadcast %162 : vector<4x8x1xf32> to vector<4x8x8xf32>
      %171 = arith.mulf %170, %arg25 : vector<4x8x8xf32>
      "tpu.trace_start"() <{level = 10 : i32, message = "hqk,hkd->hqd"}> : () -> ()
      %cst_85 = arith.constant dense<0.000000e+00> : vector<4x8x8xf32>
      %172 = tpu.matmul %165, %156, %cst_85 {dimension_numbers = #tpu.dot_dimension_numbers<[2], [1], [1], [2], [0, 0, 0, 1, 1, 2], [0], [0]>} : vector<4x8x8xf32>, vector<4x8x8xf32>, vector<4x8x8xf32> -> vector<4x8x8xf32>
      "tpu.trace_stop"() : () -> ()
      %173 = arith.addf %171, %172 : vector<4x8x8xf32>
      scf.yield %160, %169, %173 : vector<4x8x1xf32>, vector<4x8x1xf32>, vector<4x8x8xf32>
    }
    %39 = tpu.iota {dimensions = array<i32: 0>} : vector<8x8xi32>
    %40 = tpu.iota {dimensions = array<i32: 1>} : vector<8x8xi32>
    %41 = arith.cmpi sle, %40, %39 : vector<8x8xi32>
    %42 = arith.index_cast %arg1 : i32 to index
    %c0_26 = arith.constant 0 : index
    %c0_27 = arith.constant 0 : index
    %c0_28 = arith.constant 0 : index
    %43 = vector.load %arg20[%42, %c0_26, %c0_27, %c0_28] : memref<2x4x8x8xf32, #tpu.memory_space<vmem>>, vector<1x4x8x8xf32>
    %44 = vector.shape_cast %43 : vector<1x4x8x8xf32> to vector<4x8x8xf32>
    %45 = arith.index_cast %arg1 : i32 to index
    %c0_29 = arith.constant 0 : index
    %c0_30 = arith.constant 0 : index
    %c0_31 = arith.constant 0 : index
    %46 = vector.load %arg21[%45, %c0_29, %c0_30, %c0_31] : memref<2x4x8x8xf32, #tpu.memory_space<vmem>>, vector<1x4x8x8xf32>
    %47 = vector.shape_cast %46 : vector<1x4x8x8xf32> to vector<4x8x8xf32>
    "tpu.trace_start"() <{level = 10 : i32, message = "hqd,hdk->hqk"}> : () -> ()
    %cst_32 = arith.constant dense<0.000000e+00> : vector<4x8x8xf32>
    %48 = tpu.matmul %20, %44, %cst_32 {dimension_numbers = #tpu.dot_dimension_numbers<[2], [1], [1], [2], [0, 0, 0, 1, 1, 2], [0], [0]>} : vector<4x8x8xf32>, vector<4x8x8xf32>, vector<4x8x8xf32> -> vector<4x8x8xf32>
    "tpu.trace_stop"() : () -> ()
    %49 = vector.shape_cast %41 : vector<8x8xi1> to vector<1x8x8xi1>
    %cst_33 = arith.constant -1.000000e+30 : f32
    %50 = vector.shape_cast %49 : vector<1x8x8xi1> to vector<1x8x8xi1>
    %51 = vector.broadcast %50 : vector<1x8x8xi1> to vector<4x8x8xi1>
    %52 = vector.broadcast %cst_33 : f32 to vector<4x8x8xf32>
    %53 = arith.select %51, %48, %52 : vector<4x8x8xi1>, vector<4x8x8xf32>
    %cst_34 = arith.constant dense<0xFF800000> : vector<4x8xf32>
    %54 = vector.multi_reduction <maximumf>, %53, %cst_34 [2] : vector<4x8x8xf32> to vector<4x8xf32>
    %55 = vector.shape_cast %54 : vector<4x8xf32> to vector<4x8x1xf32>
    %56 = arith.maximumf %38#0, %55 : vector<4x8x1xf32>
    %57 = arith.subf %38#0, %56 : vector<4x8x1xf32>
    %58 = math.exp %57 : vector<4x8x1xf32>
    %59 = vector.broadcast %56 : vector<4x8x1xf32> to vector<4x8x8xf32>
    %60 = arith.subf %53, %59 : vector<4x8x8xf32>
    %61 = math.exp %60 : vector<4x8x8xf32>
    %62 = arith.mulf %58, %38#1 : vector<4x8x1xf32>
    %cst_35 = arith.constant dense<0.000000e+00> : vector<4x8xf32>
    %63 = vector.multi_reduction <add>, %61, %cst_35 [2] : vector<4x8x8xf32> to vector<4x8xf32>
    %64 = vector.shape_cast %63 : vector<4x8xf32> to vector<4x8x1xf32>
    %65 = arith.addf %62, %64 : vector<4x8x1xf32>
    %66 = vector.broadcast %58 : vector<4x8x1xf32> to vector<4x8x8xf32>
    %67 = arith.mulf %66, %38#2 : vector<4x8x8xf32>
    "tpu.trace_start"() <{level = 10 : i32, message = "hqk,hkd->hqd"}> : () -> ()
    %cst_36 = arith.constant dense<0.000000e+00> : vector<4x8x8xf32>
    %68 = tpu.matmul %61, %47, %cst_36 {dimension_numbers = #tpu.dot_dimension_numbers<[2], [1], [1], [2], [0, 0, 0, 1, 1, 2], [0], [0]>} : vector<4x8x8xf32>, vector<4x8x8xf32>, vector<4x8x8xf32> -> vector<4x8x8xf32>
    "tpu.trace_stop"() : () -> ()
    %69 = arith.addf %67, %68 : vector<4x8x8xf32>
    %70 = tpu.reciprocal %65 : vector<4x8x1xf32> -> vector<4x8x1xf32>
    %71 = vector.broadcast %70 : vector<4x8x1xf32> to vector<4x8x8xf32>
    %72 = arith.mulf %69, %71 : vector<4x8x8xf32>
    %73 = tpu.transpose %72, [1, 0, 2] : vector<4x8x8xf32> -> vector<8x4x8xf32>
    %74 = vector.shape_cast %73 : vector<8x4x8xf32> to vector<8x32xf32>
    %c0_37 = arith.constant 0 : index
    %c0_38 = arith.constant 0 : index
    %75 = vector.load %arg9[%c0_37, %c0_38] : memref<32x32xf32, #tpu.memory_space<vmem>>, vector<32x32xf32>
    %cst_39 = arith.constant dense<0.000000e+00> : vector<8x32xf32>
    %76 = tpu.matmul %74, %75, %cst_39 {dimension_numbers = #tpu.dot_dimension_numbers<[1], [0], [0], [1], [0, 0, 1, 1], [], []>} : vector<8x32xf32>, vector<32x32xf32>, vector<8x32xf32> -> vector<8x32xf32>
    %c0_40 = arith.constant 0 : index
    %c0_41 = arith.constant 0 : index
    %77 = vector.load %arg10[%c0_40, %c0_41] : memref<1x32xf32, #tpu.memory_space<vmem>>, vector<1x32xf32>
    %78 = vector.broadcast %77 : vector<1x32xf32> to vector<8x32xf32>
    %79 = arith.addf %76, %78 : vector<8x32xf32>
    %80 = arith.addf %79, %1 : vector<8x32xf32>
    %cst_42 = arith.constant dense<0.000000e+00> : vector<8xf32>
    %81 = vector.multi_reduction <add>, %80, %cst_42 [1] : vector<8x32xf32> to vector<8xf32>
    %82 = vector.shape_cast %81 : vector<8xf32> to vector<8x1xf32>
    %cst_43 = arith.constant 3.200000e+01 : f32
    %83 = vector.broadcast %cst_43 : f32 to vector<8x1xf32>
    %84 = arith.divf %82, %83 : vector<8x1xf32>
    %85 = vector.broadcast %84 : vector<8x1xf32> to vector<8x32xf32>
    %86 = arith.subf %80, %85 : vector<8x32xf32>
    %87 = arith.mulf %86, %86 : vector<8x32xf32>
    %cst_44 = arith.constant dense<0.000000e+00> : vector<8xf32>
    %88 = vector.multi_reduction <add>, %87, %cst_44 [1] : vector<8x32xf32> to vector<8xf32>
    %89 = vector.shape_cast %88 : vector<8xf32> to vector<8x1xf32>
    %cst_45 = arith.constant 3.200000e+01 : f32
    %90 = vector.broadcast %cst_45 : f32 to vector<8x1xf32>
    %91 = arith.divf %89, %90 : vector<8x1xf32>
    %92 = vector.broadcast %84 : vector<8x1xf32> to vector<8x32xf32>
    %93 = arith.subf %80, %92 : vector<8x32xf32>
    %cst_46 = arith.constant 9.99999974E-6 : f32
    %94 = vector.broadcast %cst_46 : f32 to vector<8x1xf32>
    %95 = arith.addf %91, %94 : vector<8x1xf32>
    %96 = math.rsqrt %95 : vector<8x1xf32>
    %97 = vector.broadcast %96 : vector<8x1xf32> to vector<8x32xf32>
    %98 = arith.mulf %93, %97 : vector<8x32xf32>
    %c0_47 = arith.constant 0 : index
    %c0_48 = arith.constant 0 : index
    %99 = vector.load %arg11[%c0_47, %c0_48] : memref<1x32xf32, #tpu.memory_space<vmem>>, vector<1x32xf32>
    %100 = vector.broadcast %99 : vector<1x32xf32> to vector<8x32xf32>
    %101 = arith.mulf %98, %100 : vector<8x32xf32>
    %c0_49 = arith.constant 0 : index
    %c0_50 = arith.constant 0 : index
    %102 = vector.load %arg12[%c0_49, %c0_50] : memref<1x32xf32, #tpu.memory_space<vmem>>, vector<1x32xf32>
    %103 = vector.broadcast %102 : vector<1x32xf32> to vector<8x32xf32>
    %104 = arith.addf %101, %103 : vector<8x32xf32>
    %c0_51 = arith.constant 0 : index
    %c0_52 = arith.constant 0 : index
    %105 = vector.load %arg13[%c0_51, %c0_52] : memref<32x128xf32, #tpu.memory_space<vmem>>, vector<32x128xf32>
    %cst_53 = arith.constant dense<0.000000e+00> : vector<8x128xf32>
    %106 = tpu.matmul %104, %105, %cst_53 {dimension_numbers = #tpu.dot_dimension_numbers<[1], [0], [0], [1], [0, 0, 1, 1], [], []>} : vector<8x32xf32>, vector<32x128xf32>, vector<8x128xf32> -> vector<8x128xf32>
    %c0_54 = arith.constant 0 : index
    %c0_55 = arith.constant 0 : index
    %107 = vector.load %arg14[%c0_54, %c0_55] : memref<1x128xf32, #tpu.memory_space<vmem>>, vector<1x128xf32>
    %108 = vector.broadcast %107 : vector<1x128xf32> to vector<8x128xf32>
    %109 = arith.addf %106, %108 : vector<8x128xf32>
    %cst_56 = arith.constant 5.000000e-01 : f32
    %110 = vector.broadcast %cst_56 : f32 to vector<8x128xf32>
    %111 = arith.mulf %110, %109 : vector<8x128xf32>
    %cst_57 = arith.constant 0.707106769 : f32
    %112 = vector.broadcast %cst_57 : f32 to vector<8x128xf32>
    %113 = arith.mulf %109, %112 : vector<8x128xf32>
    %114 = math.erf %113 : vector<8x128xf32>
    %cst_58 = arith.constant 1.000000e+00 : f32
    %115 = vector.broadcast %cst_58 : f32 to vector<8x128xf32>
    %116 = arith.addf %115, %114 : vector<8x128xf32>
    %117 = arith.mulf %111, %116 : vector<8x128xf32>
    %c0_59 = arith.constant 0 : index
    %c0_60 = arith.constant 0 : index
    %118 = vector.load %arg15[%c0_59, %c0_60] : memref<128x32xf32, #tpu.memory_space<vmem>>, vector<128x32xf32>
    %cst_61 = arith.constant dense<0.000000e+00> : vector<8x32xf32>
    %119 = tpu.matmul %117, %118, %cst_61 {dimension_numbers = #tpu.dot_dimension_numbers<[1], [0], [0], [1], [0, 0, 1, 1], [], []>} : vector<8x128xf32>, vector<128x32xf32>, vector<8x32xf32> -> vector<8x32xf32>
    %c0_62 = arith.constant 0 : index
    %c0_63 = arith.constant 0 : index
    %120 = vector.load %arg16[%c0_62, %c0_63] : memref<1x32xf32, #tpu.memory_space<vmem>>, vector<1x32xf32>
    %121 = vector.broadcast %120 : vector<1x32xf32> to vector<8x32xf32>
    %122 = arith.addf %119, %121 : vector<8x32xf32>
    %123 = arith.addf %122, %104 : vector<8x32xf32>
    %cst_64 = arith.constant dense<0.000000e+00> : vector<8xf32>
    %124 = vector.multi_reduction <add>, %123, %cst_64 [1] : vector<8x32xf32> to vector<8xf32>
    %125 = vector.shape_cast %124 : vector<8xf32> to vector<8x1xf32>
    %cst_65 = arith.constant 3.200000e+01 : f32
    %126 = vector.broadcast %cst_65 : f32 to vector<8x1xf32>
    %127 = arith.divf %125, %126 : vector<8x1xf32>
    %128 = vector.broadcast %127 : vector<8x1xf32> to vector<8x32xf32>
    %129 = arith.subf %123, %128 : vector<8x32xf32>
    %130 = arith.mulf %129, %129 : vector<8x32xf32>
    %cst_66 = arith.constant dense<0.000000e+00> : vector<8xf32>
    %131 = vector.multi_reduction <add>, %130, %cst_66 [1] : vector<8x32xf32> to vector<8xf32>
    %132 = vector.shape_cast %131 : vector<8xf32> to vector<8x1xf32>
    %cst_67 = arith.constant 3.200000e+01 : f32
    %133 = vector.broadcast %cst_67 : f32 to vector<8x1xf32>
    %134 = arith.divf %132, %133 : vector<8x1xf32>
    %135 = vector.broadcast %127 : vector<8x1xf32> to vector<8x32xf32>
    %136 = arith.subf %123, %135 : vector<8x32xf32>
    %cst_68 = arith.constant 9.99999974E-6 : f32
    %137 = vector.broadcast %cst_68 : f32 to vector<8x1xf32>
    %138 = arith.addf %134, %137 : vector<8x1xf32>
    %139 = math.rsqrt %138 : vector<8x1xf32>
    %140 = vector.broadcast %139 : vector<8x1xf32> to vector<8x32xf32>
    %141 = arith.mulf %136, %140 : vector<8x32xf32>
    %c0_69 = arith.constant 0 : index
    %c0_70 = arith.constant 0 : index
    %142 = vector.load %arg17[%c0_69, %c0_70] : memref<1x32xf32, #tpu.memory_space<vmem>>, vector<1x32xf32>
    %143 = vector.broadcast %142 : vector<1x32xf32> to vector<8x32xf32>
    %144 = arith.mulf %141, %143 : vector<8x32xf32>
    %c0_71 = arith.constant 0 : index
    %c0_72 = arith.constant 0 : index
    %145 = vector.load %arg18[%c0_71, %c0_72] : memref<1x32xf32, #tpu.memory_space<vmem>>, vector<1x32xf32>
    %146 = vector.broadcast %145 : vector<1x32xf32> to vector<8x32xf32>
    %147 = arith.addf %144, %146 : vector<8x32xf32>
    %c0_73 = arith.constant 0 : index
    %c0_74 = arith.constant 0 : index
    %c0_75 = arith.constant 0 : index
    %148 = vector.load %arg19[%c0_73, %c0_74, %c0_75] : memref<1x8x32xf32, #tpu.memory_space<vmem>>, vector<1x8x32xf32>
    %149 = vector.shape_cast %148 : vector<1x8x32xf32> to vector<8x32xf32>
    %150 = vector.shape_cast %147 : vector<8x32xf32> to vector<1x8x32xf32>
    tpu.vector_store %arg19[%c0_73, %c0_74, %c0_75], %150 {strides = array<i32>} : memref<1x8x32xf32, #tpu.memory_space<vmem>>, vector<1x8x32xf32>,
    return
  }
  func.func @transform_0(%arg0: i32, %arg1: i32) -> (i32, i32, i32) {
    %c0_i32 = arith.constant 0 : i32
    %c0_i32_0 = arith.constant 0 : i32
    return %arg0, %arg1, %c0_i32 : i32, i32, i32
  }
  func.func @transform_1(%arg0: i32, %arg1: i32) -> (i32, i32) {
    %c0_i32 = arith.constant 0 : i32
    %c0_i32_0 = arith.constant 0 : i32
    %c0_i32_1 = arith.constant 0 : i32
    return %c0_i32, %c0_i32_0 : i32, i32
  }
  func.func @transform_2(%arg0: i32, %arg1: i32) -> (i32, i32) {
    %c0_i32 = arith.constant 0 : i32
    %c0_i32_0 = arith.constant 0 : i32
    %c0_i32_1 = arith.constant 0 : i32
    return %c0_i32, %c0_i32_0 : i32, i32
  }
  func.func @transform_3(%arg0: i32, %arg1: i32) -> (i32, i32) {
    %c0_i32 = arith.constant 0 : i32
    %c0_i32_0 = arith.constant 0 : i32
    %c0_i32_1 = arith.constant 0 : i32
    return %c0_i32, %c0_i32_0 : i32, i32
  }
  func.func @transform_4(%arg0: i32, %arg1: i32) -> (i32, i32) {
    %c0_i32 = arith.constant 0 : i32
    %c0_i32_0 = arith.constant 0 : i32
    %c0_i32_1 = arith.constant 0 : i32
    return %c0_i32, %c0_i32_0 : i32, i32
  }
  func.func @transform_5(%arg0: i32, %arg1: i32) -> (i32, i32) {
    %c0_i32 = arith.constant 0 : i32
    %c0_i32_0 = arith.constant 0 : i32
    %c0_i32_1 = arith.constant 0 : i32
    return %c0_i32, %c0_i32_0 : i32, i32
  }
  func.func @transform_6(%arg0: i32, %arg1: i32) -> (i32, i32) {
    %c0_i32 = arith.constant 0 : i32
    %c0_i32_0 = arith.constant 0 : i32
    %c0_i32_1 = arith.constant 0 : i32
    return %c0_i32, %c0_i32_0 : i32, i32
  }
  func.func @transform_7(%arg0: i32, %arg1: i32) -> (i32, i32) {
    %c0_i32 = arith.constant 0 : i32
    %c0_i32_0 = arith.constant 0 : i32
    %c0_i32_1 = arith.constant 0 : i32
    return %c0_i32, %c0_i32_0 : i32, i32
  }
  func.func @transform_8(%arg0: i32, %arg1: i32) -> (i32, i32) {
    %c0_i32 = arith.constant 0 : i32
    %c0_i32_0 = arith.constant 0 : i32
    %c0_i32_1 = arith.constant 0 : i32
    return %c0_i32, %c0_i32_0 : i32, i32
  }
  func.func @transform_9(%arg0: i32, %arg1: i32) -> (i32, i32) {
    %c0_i32 = arith.constant 0 : i32
    %c0_i32_0 = arith.constant 0 : i32
    %c0_i32_1 = arith.constant 0 : i32
    return %c0_i32, %c0_i32_0 : i32, i32
  }
  func.func @transform_10(%arg0: i32, %arg1: i32) -> (i32, i32) {
    %c0_i32 = arith.constant 0 : i32
    %c0_i32_0 = arith.constant 0 : i32
    %c0_i32_1 = arith.constant 0 : i32
    return %c0_i32, %c0_i32_0 : i32, i32
  }
  func.func @transform_11(%arg0: i32, %arg1: i32) -> (i32, i32) {
    %c0_i32 = arith.constant 0 : i32
    %c0_i32_0 = arith.constant 0 : i32
    %c0_i32_1 = arith.constant 0 : i32
    return %c0_i32, %c0_i32_0 : i32, i32
  }
  func.func @transform_12(%arg0: i32, %arg1: i32) -> (i32, i32) {
    %c0_i32 = arith.constant 0 : i32
    %c0_i32_0 = arith.constant 0 : i32
    %c0_i32_1 = arith.constant 0 : i32
    return %c0_i32, %c0_i32_0 : i32, i32
  }
  func.func @transform_13(%arg0: i32, %arg1: i32) -> (i32, i32) {
    %c0_i32 = arith.constant 0 : i32
    %c0_i32_0 = arith.constant 0 : i32
    %c0_i32_1 = arith.constant 0 : i32
    return %c0_i32, %c0_i32_0 : i32, i32
  }
  func.func @transform_14(%arg0: i32, %arg1: i32) -> (i32, i32) {
    %c0_i32 = arith.constant 0 : i32
    %c0_i32_0 = arith.constant 0 : i32
    %c0_i32_1 = arith.constant 0 : i32
    return %c0_i32, %c0_i32_0 : i32, i32
  }
  func.func @transform_15(%arg0: i32, %arg1: i32) -> (i32, i32) {
    %c0_i32 = arith.constant 0 : i32
    %c0_i32_0 = arith.constant 0 : i32
    %c0_i32_1 = arith.constant 0 : i32
    return %c0_i32, %c0_i32_0 : i32, i32
  }
  func.func @transform_16(%arg0: i32, %arg1: i32) -> (i32, i32) {
    %c0_i32 = arith.constant 0 : i32
    %c0_i32_0 = arith.constant 0 : i32
    %c0_i32_1 = arith.constant 0 : i32
    return %c0_i32, %c0_i32_0 : i32, i32
  }
  func.func @transform_17(%arg0: i32, %arg1: i32) -> (i32, i32, i32) {
    %c0_i32 = arith.constant 0 : i32
    %c0_i32_0 = arith.constant 0 : i32
    return %arg0, %arg1, %c0_i32 : i32, i32, i32
  }
}

module attributes {stable_mosaic.version = 11 : i64} {
  func.func @_decoder_block_kernel(%arg0: i32, %arg1: i32, %arg2: memref<1x8x32xf32, #tpu.memory_space<vmem>>, %arg3: memref<32x32xf32, #tpu.memory_space<vmem>>, %arg4: memref<32x32xf32, #tpu.memory_space<vmem>>, %arg5: memref<32x32xf32, #tpu.memory_space<vmem>>, %arg6: memref<1x32xf32, #tpu.memory_space<vmem>>, %arg7: memref<1x32xf32, #tpu.memory_space<vmem>>, %arg8: memref<1x32xf32, #tpu.memory_space<vmem>>, %arg9: memref<32x32xf32, #tpu.memory_space<vmem>>, %arg10: memref<1x32xf32, #tpu.memory_space<vmem>>, %arg11: memref<1x32xf32, #tpu.memory_space<vmem>>, %arg12: memref<1x32xf32, #tpu.memory_space<vmem>>, %arg13: memref<32x128xf32, #tpu.memory_space<vmem>>, %arg14: memref<1x128xf32, #tpu.memory_space<vmem>>, %arg15: memref<128x32xf32, #tpu.memory_space<vmem>>, %arg16: memref<1x32xf32, #tpu.memory_space<vmem>>, %arg17: memref<1x32xf32, #tpu.memory_space<vmem>>, %arg18: memref<1x32xf32, #tpu.memory_space<vmem>>, %arg19: memref<1x8x32xf32, #tpu.memory_space<vmem>>, %arg20: memref<2x4x8x8xf32, #tpu.memory_space<vmem>>, %arg21: memref<2x4x8x8xf32, #tpu.memory_space<vmem>>) attributes {dimension_semantics = [#tpu.dimension_semantics<parallel>, #tpu.dimension_semantics<arbitrary>], iteration_bounds = array<i64: 2, 2>, scalar_prefetch = 0 : i64, scratch_operands = 2 : i64, tpu.core_type = #tpu.core_type<tc>, window_params = [{transform_indices = @transform_0, window_bounds = array<i64: 1, 8, 32>}, {pipeline_mode = #tpu.pipeline_mode<synchronous>, transform_indices = @transform_1, window_bounds = array<i64: 32, 32>}, {pipeline_mode = #tpu.pipeline_mode<synchronous>, transform_indices = @transform_2, window_bounds = array<i64: 32, 32>}, {pipeline_mode = #tpu.pipeline_mode<synchronous>, transform_indices = @transform_3, window_bounds = array<i64: 32, 32>}, {pipeline_mode = #tpu.pipeline_mode<synchronous>, transform_indices = @transform_4, window_bounds = array<i64: 1, 32>}, {pipeline_mode = #tpu.pipeline_mode<synchronous>, transform_indices = @transform_5, window_bounds = array<i64: 1, 32>}, {pipeline_mode = #tpu.pipeline_mode<synchronous>, transform_indices = @transform_6, window_bounds = array<i64: 1, 32>}, {pipeline_mode = #tpu.pipeline_mode<synchronous>, transform_indices = @transform_7, window_bounds = array<i64: 32, 32>}, {pipeline_mode = #tpu.pipeline_mode<synchronous>, transform_indices = @transform_8, window_bounds = array<i64: 1, 32>}, {pipeline_mode = #tpu.pipeline_mode<synchronous>, transform_indices = @transform_9, window_bounds = array<i64: 1, 32>}, {pipeline_mode = #tpu.pipeline_mode<synchronous>, transform_indices = @transform_10, window_bounds = array<i64: 1, 32>}, {pipeline_mode = #tpu.pipeline_mode<synchronous>, transform_indices = @transform_11, window_bounds = array<i64: 32, 128>}, {pipeline_mode = #tpu.pipeline_mode<synchronous>, transform_indices = @transform_12, window_bounds = array<i64: 1, 128>}, {pipeline_mode = #tpu.pipeline_mode<synchronous>, transform_indices = @transform_13, window_bounds = array<i64: 128, 32>}, {pipeline_mode = #tpu.pipeline_mode<synchronous>, transform_indices = @transform_14, window_bounds = array<i64: 1, 32>}, {pipeline_mode = #tpu.pipeline_mode<synchronous>, transform_indices = @transform_15, window_bounds = array<i64: 1, 32>}, {pipeline_mode = #tpu.pipeline_mode<synchronous>, transform_indices = @transform_16, window_bounds = array<i64: 1, 32>}, {transform_indices = @transform_17, window_bounds = array<i64: 1, 8, 32>}]} {
    %c0 = arith.constant 0 : index
    %c0_0 = arith.constant 0 : index
    %c0_1 = arith.constant 0 : index
    %0 = vector.load %arg2[%c0, %c0_0, %c0_1] : memref<1x8x32xf32, #tpu.memory_space<vmem>>, vector<1x8x32xf32>
    %1 = vector.shape_cast %0 : vector<1x8x32xf32> to vector<8x32xf32>
    %c0_2 = arith.constant 0 : index
    %c0_3 = arith.constant 0 : index
    %2 = vector.load %arg3[%c0_2, %c0_3] : memref<32x32xf32, #tpu.memory_space<vmem>>, vector<32x32xf32>
    %cst = arith.constant dense<0.000000e+00> : vector<8x32xf32>
    %3 = tpu.matmul %1, %2, %cst {dimension_numbers = #tpu.dot_dimension_numbers<[1], [0], [0], [1], [0, 0, 1, 1], [], []>} : vector<8x32xf32>, vector<32x32xf32>, vector<8x32xf32> -> vector<8x32xf32>
    %c0_4 = arith.constant 0 : index
    %c0_5 = arith.constant 0 : index
    %4 = vector.load %arg6[%c0_4, %c0_5] : memref<1x32xf32, #tpu.memory_space<vmem>>, vector<1x32xf32>
    %5 = vector.broadcast %4 : vector<1x32xf32> to vector<8x32xf32>
    %6 = arith.addf %3, %5 : vector<8x32xf32>
    %c0_6 = arith.constant 0 : index
    %c0_7 = arith.constant 0 : index
    %7 = vector.load %arg4[%c0_6, %c0_7] : memref<32x32xf32, #tpu.memory_space<vmem>>, vector<32x32xf32>
    %cst_8 = arith.constant dense<0.000000e+00> : vector<8x32xf32>
    %8 = tpu.matmul %1, %7, %cst_8 {dimension_numbers = #tpu.dot_dimension_numbers<[1], [0], [0], [1], [0, 0, 1, 1], [], []>} : vector<8x32xf32>, vector<32x32xf32>, vector<8x32xf32> -> vector<8x32xf32>
    %c0_9 = arith.constant 0 : index
    %c0_10 = arith.constant 0 : index
    %9 = vector.load %arg7[%c0_9, %c0_10] : memref<1x32xf32, #tpu.memory_space<vmem>>, vector<1x32xf32>
    %10 = vector.broadcast %9 : vector<1x32xf32> to vector<8x32xf32>
    %11 = arith.addf %8, %10 : vector<8x32xf32>
    %c0_11 = arith.constant 0 : index
    %c0_12 = arith.constant 0 : index
    %12 = vector.load %arg5[%c0_11, %c0_12] : memref<32x32xf32, #tpu.memory_space<vmem>>, vector<32x32xf32>
    %cst_13 = arith.constant dense<0.000000e+00> : vector<8x32xf32>
    %13 = tpu.matmul %1, %12, %cst_13 {dimension_numbers = #tpu.dot_dimension_numbers<[1], [0], [0], [1], [0, 0, 1, 1], [], []>} : vector<8x32xf32>, vector<32x32xf32>, vector<8x32xf32> -> vector<8x32xf32>
    %c0_14 = arith.constant 0 : index
    %c0_15 = arith.constant 0 : index
    %14 = vector.load %arg8[%c0_14, %c0_15] : memref<1x32xf32, #tpu.memory_space<vmem>>, vector<1x32xf32>
    %15 = vector.broadcast %14 : vector<1x32xf32> to vector<8x32xf32>
    %16 = arith.addf %13, %15 : vector<8x32xf32>
    %cst_16 = arith.constant 0.353553385 : f32
    %17 = vector.broadcast %cst_16 : f32 to vector<8x32xf32>
    %18 = arith.mulf %6, %17 : vector<8x32xf32>
    %19 = vector.shape_cast %18 : vector<8x32xf32> to vector<8x4x8xf32>
    %20 = tpu.transpose %19, [1, 0, 2] : vector<8x4x8xf32> -> vector<4x8x8xf32>
    %21 = tpu.transpose %11, [1, 0] : vector<8x32xf32> -> vector<32x8xf32>
    %22 = vector.shape_cast %21 : vector<32x8xf32> to vector<4x8x8xf32>
    %23 = vector.shape_cast %16 : vector<8x32xf32> to vector<8x4x8xf32>
    %24 = tpu.transpose %23, [1, 0, 2] : vector<8x4x8xf32> -> vector<4x8x8xf32>
    %25 = arith.index_cast %arg1 : i32 to index
    %c0_17 = arith.constant 0 : index
    %c0_18 = arith.constant 0 : index
    %c0_19 = arith.constant 0 : index
    %26 = vector.load %arg20[%25, %c0_17, %c0_18, %c0_19] : memref<2x4x8x8xf32, #tpu.memory_space<vmem>>, vector<1x4x8x8xf32>
    %27 = vector.shape_cast %26 : vector<1x4x8x8xf32> to vector<4x8x8xf32>
    %28 = vector.shape_cast %22 : vector<4x8x8xf32> to vector<1x4x8x8xf32>
    tpu.vector_store %arg20[%25, %c0_17, %c0_18, %c0_19], %28 {strides = array<i32>} : memref<2x4x8x8xf32, #tpu.memory_space<vmem>>, vector<1x4x8x8xf32>,
    %29 = arith.index_cast %arg1 : i32 to index
    %c0_20 = arith.constant 0 : index
    %c0_21 = arith.constant 0 : index
    %c0_22 = arith.constant 0 : index
    %30 = vector.load %arg21[%29, %c0_20, %c0_21, %c0_22] : memref<2x4x8x8xf32, #tpu.memory_space<vmem>>, vector<1x4x8x8xf32>
    %31 = vector.shape_cast %30 : vector<1x4x8x8xf32> to vector<4x8x8xf32>
    %32 = vector.shape_cast %24 : vector<4x8x8xf32> to vector<1x4x8x8xf32>
    tpu.vector_store %arg21[%29, %c0_20, %c0_21, %c0_22], %32 {strides = array<i32>} : memref<2x4x8x8xf32, #tpu.memory_space<vmem>>, vector<1x4x8x8xf32>,
    %cst_23 = arith.constant -1.000000e+30 : f32
    %33 = vector.broadcast %cst_23 : f32 to vector<4x8x1xf32>
    %cst_24 = arith.constant 0.000000e+00 : f32
    %34 = vector.broadcast %cst_24 : f32 to vector<4x8x1xf32>
    %cst_25 = arith.constant 0.000000e+00 : f32
    %35 = vector.broadcast %cst_25 : f32 to vector<4x8x8xf32>
    %c0_i32 = arith.constant 0 : i32
    %36 = arith.subi %arg1, %c0_i32 : i32
    %37 = arith.addi %c0_i32, %36 : i32
    %c1_i32 = arith.constant 1 : i32
    %38:3 = scf.for %arg22 = %c0_i32 to %37 step %c1_i32 iter_args(%arg23 = %33, %arg24 = %34, %arg25 = %35) -> (vector<4x8x1xf32>, vector<4x8x1xf32>, vector<4x8x8xf32>)  : i32 {
      %151 = arith.index_cast %arg22 : i32 to index
      %c0_76 = arith.constant 0 : index
      %c0_77 = arith.constant 0 : index
      %c0_78 = arith.constant 0 : index
      %152 = vector.load %arg20[%151, %c0_76, %c0_77, %c0_78] : memref<2x4x8x8xf32, #tpu.memory_space<vmem>>, vector<1x4x8x8xf32>
      %153 = vector.shape_cast %152 : vector<1x4x8x8xf32> to vector<4x8x8xf32>
      %154 = arith.index_cast %arg22 : i32 to index
      %c0_79 = arith.constant 0 : index
      %c0_80 = arith.constant 0 : index
      %c0_81 = arith.constant 0 : index
      %155 = vector.load %arg21[%154, %c0_79, %c0_80, %c0_81] : memref<2x4x8x8xf32, #tpu.memory_space<vmem>>, vector<1x4x8x8xf32>
      %156 = vector.shape_cast %155 : vector<1x4x8x8xf32> to vector<4x8x8xf32>
      "tpu.trace_start"() <{level = 10 : i32, message = "hqd,hdk->hqk"}> : () -> ()
      %cst_82 = arith.constant dense<0.000000e+00> : vector<4x8x8xf32>
      %157 = tpu.matmul %20, %153, %cst_82 {dimension_numbers = #tpu.dot_dimension_numbers<[2], [1], [1], [2], [0, 0, 0, 1, 1, 2], [0], [0]>} : vector<4x8x8xf32>, vector<4x8x8xf32>, vector<4x8x8xf32> -> vector<4x8x8xf32>
      "tpu.trace_stop"() : () -> ()
      %cst_83 = arith.constant dense<0xFF800000> : vector<4x8xf32>
      %158 = vector.multi_reduction <maximumf>, %157, %cst_83 [2] : vector<4x8x8xf32> to vector<4x8xf32>
      %159 = vector.shape_cast %158 : vector<4x8xf32> to vector<4x8x1xf32>
      %160 = arith.maximumf %arg23, %159 : vector<4x8x1xf32>
      %161 = arith.subf %arg23, %160 : vector<4x8x1xf32>
      %162 = math.exp %161 : vector<4x8x1xf32>
      %163 = vector.broadcast %160 : vector<4x8x1xf32> to vector<4x8x8xf32>
      %164 = arith.subf %157, %163 : vector<4x8x8xf32>
      %165 = math.exp %164 : vector<4x8x8xf32>
      %166 = arith.mulf %162, %arg24 : vector<4x8x1xf32>
      %cst_84 = arith.constant dense<0.000000e+00> : vector<4x8xf32>
      %167 = vector.multi_reduction <add>, %165, %cst_84 [2] : vector<4x8x8xf32> to vector<4x8xf32>
      %168 = vector.shape_cast %167 : vector<4x8xf32> to vector<4x8x1xf32>
      %169 = arith.addf %166, %168 : vector<4x8x1xf32>
      %170 = vector.broadcast %162 : vector<4x8x1xf32> to vector<4x8x8xf32>
      %171 = arith.mulf %170, %arg25 : vector<4x8x8xf32>
      "tpu.trace_start"() <{level = 10 : i32, message = "hqk,hkd->hqd"}> : () -> ()
      %cst_85 = arith.constant dense<0.000000e+00> : vector<4x8x8xf32>
      %172 = tpu.matmul %165, %156, %cst_85 {dimension_numbers = #tpu.dot_dimension_numbers<[2], [1], [1], [2], [0, 0, 0, 1, 1, 2], [0], [0]>} : vector<4x8x8xf32>, vector<4x8x8xf32>, vector<4x8x8xf32> -> vector<4x8x8xf32>
      "tpu.trace_stop"() : () -> ()
      %173 = arith.addf %171, %172 : vector<4x8x8xf32>
      scf.yield %160, %169, %173 : vector<4x8x1xf32>, vector<4x8x1xf32>, vector<4x8x8xf32>
    }
    %39 = tpu.iota {dimensions = array<i32: 0>} : vector<8x8xi32>
    %40 = tpu.iota {dimensions = array<i32: 1>} : vector<8x8xi32>
    %41 = arith.cmpi sle, %40, %39 : vector<8x8xi32>
    %42 = arith.index_cast %arg1 : i32 to index
    %c0_26 = arith.constant 0 : index
    %c0_27 = arith.constant 0 : index
    %c0_28 = arith.constant 0 : index
    %43 = vector.load %arg20[%42, %c0_26, %c0_27, %c0_28] : memref<2x4x8x8xf32, #tpu.memory_space<vmem>>, vector<1x4x8x8xf32>
    %44 = vector.shape_cast %43 : vector<1x4x8x8xf32> to vector<4x8x8xf32>
    %45 = arith.index_cast %arg1 : i32 to index
    %c0_29 = arith.constant 0 : index
    %c0_30 = arith.constant 0 : index
    %c0_31 = arith.constant 0 : index
    %46 = vector.load %arg21[%45, %c0_29, %c0_30, %c0_31] : memref<2x4x8x8xf32, #tpu.memory_space<vmem>>, vector<1x4x8x8xf32>
    %47 = vector.shape_cast %46 : vector<1x4x8x8xf32> to vector<4x8x8xf32>
    "tpu.trace_start"() <{level = 10 : i32, message = "hqd,hdk->hqk"}> : () -> ()
    %cst_32 = arith.constant dense<0.000000e+00> : vector<4x8x8xf32>
    %48 = tpu.matmul %20, %44, %cst_32 {dimension_numbers = #tpu.dot_dimension_numbers<[2], [1], [1], [2], [0, 0, 0, 1, 1, 2], [0], [0]>} : vector<4x8x8xf32>, vector<4x8x8xf32>, vector<4x8x8xf32> -> vector<4x8x8xf32>
    "tpu.trace_stop"() : () -> ()
    %49 = vector.shape_cast %41 : vector<8x8xi1> to vector<1x8x8xi1>
    %cst_33 = arith.constant -1.000000e+30 : f32
    %50 = vector.shape_cast %49 : vector<1x8x8xi1> to vector<1x8x8xi1>
    %51 = vector.broadcast %50 : vector<1x8x8xi1> to vector<4x8x8xi1>
    %52 = vector.broadcast %cst_33 : f32 to vector<4x8x8xf32>
    %53 = arith.select %51, %48, %52 : vector<4x8x8xi1>, vector<4x8x8xf32>
    %cst_34 = arith.constant dense<0xFF800000> : vector<4x8xf32>
    %54 = vector.multi_reduction <maximumf>, %53, %cst_34 [2] : vector<4x8x8xf32> to vector<4x8xf32>
    %55 = vector.shape_cast %54 : vector<4x8xf32> to vector<4x8x1xf32>
    %56 = arith.maximumf %38#0, %55 : vector<4x8x1xf32>
    %57 = arith.subf %38#0, %56 : vector<4x8x1xf32>
    %58 = math.exp %57 : vector<4x8x1xf32>
    %59 = vector.broadcast %56 : vector<4x8x1xf32> to vector<4x8x8xf32>
    %60 = arith.subf %53, %59 : vector<4x8x8xf32>
    %61 = math.exp %60 : vector<4x8x8xf32>
    %62 = arith.mulf %58, %38#1 : vector<4x8x1xf32>
    %cst_35 = arith.constant dense<0.000000e+00> : vector<4x8xf32>
    %63 = vector.multi_reduction <add>, %61, %cst_35 [2] : vector<4x8x8xf32> to vector<4x8xf32>
    %64 = vector.shape_cast %63 : vector<4x8xf32> to vector<4x8x1xf32>
    %65 = arith.addf %62, %64 : vector<4x8x1xf32>
    %66 = vector.broadcast %58 : vector<4x8x1xf32> to vector<4x8x8xf32>
    %67 = arith.mulf %66, %38#2 : vector<4x8x8xf32>
    "tpu.trace_start"() <{level = 10 : i32, message = "hqk,hkd->hqd"}> : () -> ()
    %cst_36 = arith.constant dense<0.000000e+00> : vector<4x8x8xf32>
    %68 = tpu.matmul %61, %47, %cst_36 {dimension_numbers = #tpu.dot_dimension_numbers<[2], [1], [1], [2], [0, 0, 0, 1, 1, 2], [0], [0]>} : vector<4x8x8xf32>, vector<4x8x8xf32>, vector<4x8x8xf32> -> vector<4x8x8xf32>
    "tpu.trace_stop"() : () -> ()
    %69 = arith.addf %67, %68 : vector<4x8x8xf32>
    %70 = tpu.reciprocal %65 : vector<4x8x1xf32> -> vector<4x8x1xf32>
    %71 = vector.broadcast %70 : vector<4x8x1xf32> to vector<4x8x8xf32>
    %72 = arith.mulf %69, %71 : vector<4x8x8xf32>
    %73 = tpu.transpose %72, [1, 0, 2] : vector<4x8x8xf32> -> vector<8x4x8xf32>
    %74 = vector.shape_cast %73 : vector<8x4x8xf32> to vector<8x32xf32>
    %c0_37 = arith.constant 0 : index
    %c0_38 = arith.constant 0 : index
    %75 = vector.load %arg9[%c0_37, %c0_38] : memref<32x32xf32, #tpu.memory_space<vmem>>, vector<32x32xf32>
    %cst_39 = arith.constant dense<0.000000e+00> : vector<8x32xf32>
    %76 = tpu.matmul %74, %75, %cst_39 {dimension_numbers = #tpu.dot_dimension_numbers<[1], [0], [0], [1], [0, 0, 1, 1], [], []>} : vector<8x32xf32>, vector<32x32xf32>, vector<8x32xf32> -> vector<8x32xf32>
    %c0_40 = arith.constant 0 : index
    %c0_41 = arith.constant 0 : index
    %77 = vector.load %arg10[%c0_40, %c0_41] : memref<1x32xf32, #tpu.memory_space<vmem>>, vector<1x32xf32>
    %78 = vector.broadcast %77 : vector<1x32xf32> to vector<8x32xf32>
    %79 = arith.addf %76, %78 : vector<8x32xf32>
    %80 = arith.addf %79, %1 : vector<8x32xf32>
    %cst_42 = arith.constant dense<0.000000e+00> : vector<8xf32>
    %81 = vector.multi_reduction <add>, %80, %cst_42 [1] : vector<8x32xf32> to vector<8xf32>
    %82 = vector.shape_cast %81 : vector<8xf32> to vector<8x1xf32>
    %cst_43 = arith.constant 3.200000e+01 : f32
    %83 = vector.broadcast %cst_43 : f32 to vector<8x1xf32>
    %84 = arith.divf %82, %83 : vector<8x1xf32>
    %85 = vector.broadcast %84 : vector<8x1xf32> to vector<8x32xf32>
    %86 = arith.subf %80, %85 : vector<8x32xf32>
    %87 = arith.mulf %86, %86 : vector<8x32xf32>
    %cst_44 = arith.constant dense<0.000000e+00> : vector<8xf32>
    %88 = vector.multi_reduction <add>, %87, %cst_44 [1] : vector<8x32xf32> to vector<8xf32>
    %89 = vector.shape_cast %88 : vector<8xf32> to vector<8x1xf32>
    %cst_45 = arith.constant 3.200000e+01 : f32
    %90 = vector.broadcast %cst_45 : f32 to vector<8x1xf32>
    %91 = arith.divf %89, %90 : vector<8x1xf32>
    %92 = vector.broadcast %84 : vector<8x1xf32> to vector<8x32xf32>
    %93 = arith.subf %80, %92 : vector<8x32xf32>
    %cst_46 = arith.constant 9.99999974E-6 : f32
    %94 = vector.broadcast %cst_46 : f32 to vector<8x1xf32>
    %95 = arith.addf %91, %94 : vector<8x1xf32>
    %96 = math.rsqrt %95 : vector<8x1xf32>
    %97 = vector.broadcast %96 : vector<8x1xf32> to vector<8x32xf32>
    %98 = arith.mulf %93, %97 : vector<8x32xf32>
    %c0_47 = arith.constant 0 : index
    %c0_48 = arith.constant 0 : index
    %99 = vector.load %arg11[%c0_47, %c0_48] : memref<1x32xf32, #tpu.memory_space<vmem>>, vector<1x32xf32>
    %100 = vector.broadcast %99 : vector<1x32xf32> to vector<8x32xf32>
    %101 = arith.mulf %98, %100 : vector<8x32xf32>
    %c0_49 = arith.constant 0 : index
    %c0_50 = arith.constant 0 : index
    %102 = vector.load %arg12[%c0_49, %c0_50] : memref<1x32xf32, #tpu.memory_space<vmem>>, vector<1x32xf32>
    %103 = vector.broadcast %102 : vector<1x32xf32> to vector<8x32xf32>
    %104 = arith.addf %101, %103 : vector<8x32xf32>
    %c0_51 = arith.constant 0 : index
    %c0_52 = arith.constant 0 : index
    %105 = vector.load %arg13[%c0_51, %c0_52] : memref<32x128xf32, #tpu.memory_space<vmem>>, vector<32x128xf32>
    %cst_53 = arith.constant dense<0.000000e+00> : vector<8x128xf32>
    %106 = tpu.matmul %104, %105, %cst_53 {dimension_numbers = #tpu.dot_dimension_numbers<[1], [0], [0], [1], [0, 0, 1, 1], [], []>} : vector<8x32xf32>, vector<32x128xf32>, vector<8x128xf32> -> vector<8x128xf32>
    %c0_54 = arith.constant 0 : index
    %c0_55 = arith.constant 0 : index
    %107 = vector.load %arg14[%c0_54, %c0_55] : memref<1x128xf32, #tpu.memory_space<vmem>>, vector<1x128xf32>
    %108 = vector.broadcast %107 : vector<1x128xf32> to vector<8x128xf32>
    %109 = arith.addf %106, %108 : vector<8x128xf32>
    %cst_56 = arith.constant 5.000000e-01 : f32
    %110 = vector.broadcast %cst_56 : f32 to vector<8x128xf32>
    %111 = arith.mulf %110, %109 : vector<8x128xf32>
    %cst_57 = arith.constant 0.707106769 : f32
    %112 = vector.broadcast %cst_57 : f32 to vector<8x128xf32>
    %113 = arith.mulf %109, %112 : vector<8x128xf32>
    %114 = math.erf %113 : vector<8x128xf32>
    %cst_58 = arith.constant 1.000000e+00 : f32
    %115 = vector.broadcast %cst_58 : f32 to vector<8x128xf32>
    %116 = arith.addf %115, %114 : vector<8x128xf32>
    %117 = arith.mulf %111, %116 : vector<8x128xf32>
    %c0_59 = arith.constant 0 : index
    %c0_60 = arith.constant 0 : index
    %118 = vector.load %arg15[%c0_59, %c0_60] : memref<128x32xf32, #tpu.memory_space<vmem>>, vector<128x32xf32>
    %cst_61 = arith.constant dense<0.000000e+00> : vector<8x32xf32>
    %119 = tpu.matmul %117, %118, %cst_61 {dimension_numbers = #tpu.dot_dimension_numbers<[1], [0], [0], [1], [0, 0, 1, 1], [], []>} : vector<8x128xf32>, vector<128x32xf32>, vector<8x32xf32> -> vector<8x32xf32>
    %c0_62 = arith.constant 0 : index
    %c0_63 = arith.constant 0 : index
    %120 = vector.load %arg16[%c0_62, %c0_63] : memref<1x32xf32, #tpu.memory_space<vmem>>, vector<1x32xf32>
    %121 = vector.broadcast %120 : vector<1x32xf32> to vector<8x32xf32>
    %122 = arith.addf %119, %121 : vector<8x32xf32>
    %123 = arith.addf %122, %104 : vector<8x32xf32>
    %cst_64 = arith.constant dense<0.000000e+00> : vector<8xf32>
    %124 = vector.multi_reduction <add>, %123, %cst_64 [1] : vector<8x32xf32> to vector<8xf32>
    %125 = vector.shape_cast %124 : vector<8xf32> to vector<8x1xf32>
    %cst_65 = arith.constant 3.200000e+01 : f32
    %126 = vector.broadcast %cst_65 : f32 to vector<8x1xf32>
    %127 = arith.divf %125, %126 : vector<8x1xf32>
    %128 = vector.broadcast %127 : vector<8x1xf32> to vector<8x32xf32>
    %129 = arith.subf %123, %128 : vector<8x32xf32>
    %130 = arith.mulf %129, %129 : vector<8x32xf32>
    %cst_66 = arith.constant dense<0.000000e+00> : vector<8xf32>
    %131 = vector.multi_reduction <add>, %130, %cst_66 [1] : vector<8x32xf32> to vector<8xf32>
    %132 = vector.shape_cast %131 : vector<8xf32> to vector<8x1xf32>
    %cst_67 = arith.constant 3.200000e+01 : f32
    %133 = vector.broadcast %cst_67 : f32 to vector<8x1xf32>
    %134 = arith.divf %132, %133 : vector<8x1xf32>
    %135 = vector.broadcast %127 : vector<8x1xf32> to vector<8x32xf32>
    %136 = arith.subf %123, %135 : vector<8x32xf32>
    %cst_68 = arith.constant 9.99999974E-6 : f32
    %137 = vector.broadcast %cst_68 : f32 to vector<8x1xf32>
    %138 = arith.addf %134, %137 : vector<8x1xf32>
    %139 = math.rsqrt %138 : vector<8x1xf32>
    %140 = vector.broadcast %139 : vector<8x1xf32> to vector<8x32xf32>
    %141 = arith.mulf %136, %140 : vector<8x32xf32>
    %c0_69 = arith.constant 0 : index
    %c0_70 = arith.constant 0 : index
    %142 = vector.load %arg17[%c0_69, %c0_70] : memref<1x32xf32, #tpu.memory_space<vmem>>, vector<1x32xf32>
    %143 = vector.broadcast %142 : vector<1x32xf32> to vector<8x32xf32>
    %144 = arith.mulf %141, %143 : vector<8x32xf32>
    %c0_71 = arith.constant 0 : index
    %c0_72 = arith.constant 0 : index
    %145 = vector.load %arg18[%c0_71, %c0_72] : memref<1x32xf32, #tpu.memory_space<vmem>>, vector<1x32xf32>
    %146 = vector.broadcast %145 : vector<1x32xf32> to vector<8x32xf32>
    %147 = arith.addf %144, %146 : vector<8x32xf32>
    %c0_73 = arith.constant 0 : index
    %c0_74 = arith.constant 0 : index
    %c0_75 = arith.constant 0 : index
    %148 = vector.load %arg19[%c0_73, %c0_74, %c0_75] : memref<1x8x32xf32, #tpu.memory_space<vmem>>, vector<1x8x32xf32>
    %149 = vector.shape_cast %148 : vector<1x8x32xf32> to vector<8x32xf32>
    %150 = vector.shape_cast %147 : vector<8x32xf32> to vector<1x8x32xf32>
    tpu.vector_store %arg19[%c0_73, %c0_74, %c0_75], %150 {strides = array<i32>} : memref<1x8x32xf32, #tpu.memory_space<vmem>>, vector<1x8x32xf32>,
    return
  }
  func.func @transform_0(%arg0: i32, %arg1: i32) -> (i32, i32, i32) {
    %c0_i32 = arith.constant 0 : i32
    %c0_i32_0 = arith.constant 0 : i32
    return %arg0, %arg1, %c0_i32 : i32, i32, i32
  }
  func.func @transform_1(%arg0: i32, %arg1: i32) -> (i32, i32) {
    %c0_i32 = arith.constant 0 : i32
    %c0_i32_0 = arith.constant 0 : i32
    %c0_i32_1 = arith.constant 0 : i32
    return %c0_i32, %c0_i32_0 : i32, i32
  }
  func.func @transform_2(%arg0: i32, %arg1: i32) -> (i32, i32) {
    %c0_i32 = arith.constant 0 : i32
    %c0_i32_0 = arith.constant 0 : i32
    %c0_i32_1 = arith.constant 0 : i32
    return %c0_i32, %c0_i32_0 : i32, i32
  }
  func.func @transform_3(%arg0: i32, %arg1: i32) -> (i32, i32) {
    %c0_i32 = arith.constant 0 : i32
    %c0_i32_0 = arith.constant 0 : i32
    %c0_i32_1 = arith.constant 0 : i32
    return %c0_i32, %c0_i32_0 : i32, i32
  }
  func.func @transform_4(%arg0: i32, %arg1: i32) -> (i32, i32) {
    %c0_i32 = arith.constant 0 : i32
    %c0_i32_0 = arith.constant 0 : i32
    %c0_i32_1 = arith.constant 0 : i32
    return %c0_i32, %c0_i32_0 : i32, i32
  }
  func.func @transform_5(%arg0: i32, %arg1: i32) -> (i32, i32) {
    %c0_i32 = arith.constant 0 : i32
    %c0_i32_0 = arith.constant 0 : i32
    %c0_i32_1 = arith.constant 0 : i32
    return %c0_i32, %c0_i32_0 : i32, i32
  }
  func.func @transform_6(%arg0: i32, %arg1: i32) -> (i32, i32) {
    %c0_i32 = arith.constant 0 : i32
    %c0_i32_0 = arith.constant 0 : i32
    %c0_i32_1 = arith.constant 0 : i32
    return %c0_i32, %c0_i32_0 : i32, i32
  }
  func.func @transform_7(%arg0: i32, %arg1: i32) -> (i32, i32) {
    %c0_i32 = arith.constant 0 : i32
    %c0_i32_0 = arith.constant 0 : i32
    %c0_i32_1 = arith.constant 0 : i32
    return %c0_i32, %c0_i32_0 : i32, i32
  }
  func.func @transform_8(%arg0: i32, %arg1: i32) -> (i32, i32) {
    %c0_i32 = arith.constant 0 : i32
    %c0_i32_0 = arith.constant 0 : i32
    %c0_i32_1 = arith.constant 0 : i32
    return %c0_i32, %c0_i32_0 : i32, i32
  }
  func.func @transform_9(%arg0: i32, %arg1: i32) -> (i32, i32) {
    %c0_i32 = arith.constant 0 : i32
    %c0_i32_0 = arith.constant 0 : i32
    %c0_i32_1 = arith.constant 0 : i32
    return %c0_i32, %c0_i32_0 : i32, i32
  }
  func.func @transform_10(%arg0: i32, %arg1: i32) -> (i32, i32) {
    %c0_i32 = arith.constant 0 : i32
    %c0_i32_0 = arith.constant 0 : i32
    %c0_i32_1 = arith.constant 0 : i32
    return %c0_i32, %c0_i32_0 : i32, i32
  }
  func.func @transform_11(%arg0: i32, %arg1: i32) -> (i32, i32) {
    %c0_i32 = arith.constant 0 : i32
    %c0_i32_0 = arith.constant 0 : i32
    %c0_i32_1 = arith.constant 0 : i32
    return %c0_i32, %c0_i32_0 : i32, i32
  }
  func.func @transform_12(%arg0: i32, %arg1: i32) -> (i32, i32) {
    %c0_i32 = arith.constant 0 : i32
    %c0_i32_0 = arith.constant 0 : i32
    %c0_i32_1 = arith.constant 0 : i32
    return %c0_i32, %c0_i32_0 : i32, i32
  }
  func.func @transform_13(%arg0: i32, %arg1: i32) -> (i32, i32) {
    %c0_i32 = arith.constant 0 : i32
    %c0_i32_0 = arith.constant 0 : i32
    %c0_i32_1 = arith.constant 0 : i32
    return %c0_i32, %c0_i32_0 : i32, i32
  }
  func.func @transform_14(%arg0: i32, %arg1: i32) -> (i32, i32) {
    %c0_i32 = arith.constant 0 : i32
    %c0_i32_0 = arith.constant 0 : i32
    %c0_i32_1 = arith.constant 0 : i32
    return %c0_i32, %c0_i32_0 : i32, i32
  }
  func.func @transform_15(%arg0: i32, %arg1: i32) -> (i32, i32) {
    %c0_i32 = arith.constant 0 : i32
    %c0_i32_0 = arith.constant 0 : i32
    %c0_i32_1 = arith.constant 0 : i32
    return %c0_i32, %c0_i32_0 : i32, i32
  }
  func.func @transform_16(%arg0: i32, %arg1: i32) -> (i32, i32) {
    %c0_i32 = arith.constant 0 : i32
    %c0_i32_0 = arith.constant 0 : i32
    %c0_i32_1 = arith.constant 0 : i32
    return %c0_i32, %c0_i32_0 : i32, i32
  }
  func.func @transform_17(%arg0: i32, %arg1: i32) -> (i32, i32, i32) {
    %c0_i32 = arith.constant 0 : i32
    %c0_i32_0 = arith.constant 0 : i32
    return %arg0, %arg1, %c0_i32 : i32, i32, i32
  }
}

</mosaic_0001>

<bundles_post_ra>
// kernel: tpu_custom_call.1
= control target key start
LH: loop header
LB: loop body
LE: loop exit
PB: predicated region body
PF: predicated region fallthrough
CT: control target
= control target key end

     0   :  { %s5041_s0 = inlined_call_operand.vmem [shape: f32[2,16,32], index: 0, kind: input, shape index: {}]   ;;  %s5042_s1 = inlined_call_operand.vmem [shape: f32[32,32], index: 1, kind: input, shape index: {}]   ;;  %s5043_s2 = inlined_call_operand.vmem [shape: f32[32,32], index: 2, kind: input, shape index: {}]   ;;  %s5044_s3 = inlined_call_operand.vmem [shape: f32[32,32], index: 3, kind: input, shape index: {}]   ;;  %s5045_s4 = inlined_call_operand.vmem [shape: f32[1,32], index: 4, kind: input, shape index: {}]   ;;  %s5046_s5 = inlined_call_operand.vmem [shape: f32[1,32], index: 5, kind: input, shape index: {}]   ;;  %s5047_s6 = inlined_call_operand.vmem [shape: f32[1,32], index: 6, kind: input, shape index: {}]   ;;  %s5048_s7 = inlined_call_operand.vmem [shape: f32[32,32], index: 7, kind: input, shape index: {}]   ;;  %s5049_s8 = inlined_call_operand.vmem [shape: f32[1,32], index: 8, kind: input, shape index: {}]   ;;  %s5050_s9 = inlined_call_operand.vmem [shape: f32[1,32], index: 9, kind: input, shape index: {}]   ;;  %s5051_s10 = inlined_call_operand.vmem [shape: f32[1,32], index: 10, kind: input, shape index: {}]   ;;  %s5052_s11 = inlined_call_operand.hbm [shape: f32[32,128], index: 11, kind: input, shape index: {}]   ;;  %s5053_s12 = inlined_call_operand.vmem [shape: f32[1,128], index: 12, kind: input, shape index: {}]   ;;  %s5054_s13 = inlined_call_operand.vmem [shape: f32[128,32], index: 13, kind: input, shape index: {}]   ;;  %s5055_s14 = inlined_call_operand.vmem [shape: f32[1,32], index: 14, kind: input, shape index: {}]   ;;  %s5056_s15 = inlined_call_operand.vmem [shape: f32[1,32], index: 15, kind: input, shape index: {}]   ;;  %s5057_s16 = inlined_call_operand.vmem [shape: f32[1,32], index: 16, kind: input, shape index: {}]   ;;  %s5058_s17 = inlined_call_operand.hbm [shape: f32[2,16,32], index: 17, kind: output, shape index: {}]  }
   0x1   :  { %5071 = sst [smem:[#allocation19_spill]] %s5041_s0 }
   0x2   :  { %5072 = sst [smem:[#allocation20_spill]] %s5042_s1 }
   0x3   :  { %5073 = sst [smem:[#allocation21_spill]] %s5043_s2 }
   0x4   :  { %5074 = sst [smem:[#allocation22_spill]] %s5044_s3 }
   0x5   :  { %5075 = sst [smem:[#allocation23_spill]] %s5052_s11 }
   0x6   :  { %5076 = sst [smem:[#allocation24_spill]] %s5056_s15 }
   0x7   :  { %5077 = sst [smem:[#allocation25_spill]] %s5057_s16 }
   0x8   :  { %5078 = sst [smem:[#allocation26_spill]] %s5058_s17 }
   0x9   :  { %22 = vsyncpa [#allocation5], 0 }
   0xa   :  { %23 = vsyncpa [#allocation6], 0 }
   0xb   :  { %25 = vsyncpa [#allocation6 + $0x1], 0  ;;  %s4239_s24 = smov 0   ;;  %s4241_s25 = smov 0  }
   0xc   :  { %s4243_s26 = smov 0   ;;  %s4245_s27 = smov 0  }
   0xd   :  { %s4247_s28 = smov 0   ;;  %s4249_s29 = smov 0  }
   0xe   :  { %s4251_s0 = smov 0   ;;  %s4253_s30 = smov 0  }
   0xf LB: > { %5079 = sst [smem:[#allocation10_spill]] %s4003_s24  ;;  %s3168_s18 = sadd.s32 4294967295, %s4031_s30   ;;  %s4031_s30 = sphi %s4253_s30, %s31_s30   ;;  %s4027_s0 = sphi %s4251_s0, %s5135_s0   ;;  %s4023_s29 = sphi %s4249_s29, %s5134_s29   ;;  %s4019_s28 = sphi %s4247_s28, %s5133_s28   ;;  %s4015_s27 = sphi %s4245_s27, %s5132_s27   ;;  %s4011_s26 = sphi %s4243_s26, %s5131_s26   ;;  %s4007_s25 = sphi %s4241_s25, %s5137_s25   ;;  %s4003_s24 = sphi %s4239_s24, %s5136_s24  }
  0x10   : > { %5080 = sst [smem:[#allocation11_spill]] %s4011_s26  ;;  %s3169_s19 = sadd.s32 4294967294, %s4031_s30  }
  0x11   : > { %5081 = sst [smem:[#allocation12_spill]] %s4023_s29  ;;  %s40_s1 = sadd.s32 1, %s4023_s29 }
  0x12   : > { %5082 = sst [smem:[#allocation13_spill]] %s4027_s0  ;;  %s43_s20 = sadd.s32 1, %s4027_s0 }
  0x13   : > { %5083 = sst [smem:[#allocation14_spill]] %s4031_s30  ;;  %p41_p0 = scmp.ge.s32.totalorder %s40_s1, 2 }
  0x14   : > { %s416_s21 = sadd.s32 1, %s4011_s26  ;;  %p426_p1 = scmp.ne.s32.totalorder %s4011_s26, %s4007_s25 }
  0x15   : > { %p427_p2 = scmp.eq.s32.totalorder %s3168_s18, 3  ;;  %s5139_s1 = smov (%p41_p0, %s40_s1), 0 }
  0x16   : > { %5084 = sst [smem:[#allocation15_spill]] %s5139_s1  ;;  %s5141_s20 = smov (!%p41_p0, %s43_s20), %s4027_s0 }
  0x17   : > { %s412_s22 = ssub.s32 %s4023_s29, %s5139_s1  ;;  %p4291_p3 = por %p427_p2, %p426_p1 }
  0x18   : > { %p45_p4 = scmp.ge.s32.totalorder %s5141_s20, 2  ;;  %p432_p5 = scmp.ne.s32.totalorder %s4007_s25, %s4003_s24 }
  0x19   : > { %p433_p6 = scmp.eq.s32.totalorder %s3169_s19, 3  ;;  %p3170_p7 = scmp.ge.s32.totalorder %s4031_s30, 1 }
  0x1a   : > { %s5143_s20 = smov (%p45_p4, %s5141_s20), 0  ;;  %p440_p9 = scmp.lt.s32.totalorder %s4031_s30, 5 }
  0x1b   : > { %5086 = sst [smem:[#allocation16_spill]] %s5143_s20  ;;  %p4300_p8 = por %p433_p6, %p432_p5 }
  0x1c   : > { %s411_s16 = ssub.s32 %s4027_s0, %s5143_s20  ;;  %p4307_p10 = pnand %p3170_p7, %p440_p9 }
  0x1d   : > { %s5087_s17 = scalar_select %p4300_p8, 1, 0 }
  0x1e   : > { %s413_s15 = sor.u32 %s412_s22, %s411_s16  ;;  %p4311_p12 = scmp.eq.s32.totalorder %s3168_s18, 0 }
  0x1f   : > { %5088 = sst [smem:[#allocation17_spill]] %s5087_s17  ;;  %p414_p11 = scmp.eq.s32.totalorder %s413_s15, 0 }
  0x20   : > { %p3473_p13 = pneg %p4307_p10  ;;  %s4133_s24 = smov [#allocation4]  }
  0x21   : > { %s4318_s19 = scalar_select %p414_p11, %s4011_s26, %s416_s21  }
  0x22   : > { %s482_s17 = sshll.u32 %s4133_s24, 4  ;;  %p4322_p0 = pnand %p4311_p12, %p3473_p13  ;;  %s483_s17 = int_to_ptr.vmem [resolvable:$true] %s482_s17 }
  0x23   : > { %5091 = sst [smem:[#allocation18_spill]] %s4318_s19  ;;  %s3820_s15 = scalar_lea.vmem %s483_s17, 512 }
  0x24   : > { %p3811_p1 = pneg %p4322_p0  ;;  %p3821_p2 = scmp.ne.s32.totalorder %s483_s17, %s3820_s15 }
  0x25   : > { %p3828_p6 = scmp.lt.s32.totalorder %s483_s17, %s483_s17  ;;  %p3829_p7 = scmp.lt.s32.totalorder %s3820_s15, %s3820_s15 }
  0x26   : > { %p3823_p4 = pnand %p3821_p2, %p3811_p1 }
  0x27   : > { %p3830_p9 = por %p3829_p7, %p3828_p6 }
  0x28   : > { %p3824_p5 = pneg %p3823_p4 }
  0x2a   : > { %p3831_p11 = pnand %p3830_p9, %p3824_p5 }
  0x2c   : > { %3834 = shalt.err (!%p3831_p11)
}
  0x2d   : > { %s4134_s18 = smov 128   ;;  %s4135_s24 = smov 8  }
  0x2e   : > { %s5093_s11 = sld [smem:[#allocation23_spill]] }
  0x30   : > { %524 = sbr.rel (%p4307_p10) target bundleno = 2956 (0xb8c), region = 88 }
  0x34   : > { %3476 = dma.hbm_to_vmem [thread:$0]  (!%p4322_p0), %s5093_s11, 512, %s483_s17, [#allocation5], %s4134_s18, %s4134_s18, %s4135_s24  }
  0x35   : > { %3994 = dma.done.wait (%p4311_p12), [#allocation5], 512  }
  0x36   : > { %3996 = vsyncadd (%p4311_p12), [#allocation5], 4294966784  ;;  %s5065_s16 = sand.u32 1, %s4007_s25   ;;  %p579_p13 = scmp.lt.s32.totalorder %s4019_s28, 1  ;;  %v4136_v0 = vmov 0.0   ;;  %vm4137_vm0 = vmmov 0   ;;  %v851_v30 = vlaneseq }
  0x37   : > { %s4343_s15 = sshll.u32 %s5065_s16, 3  ;;  %3297 = vmatprep.subr.mxu0 %v4136_v0  ;;  %3305 = vmatprep.mubr.msk.f32.mxu0 %vm4137_vm0, %v4136_v0  ;;  %p581_p10 = scmp.lt.s32.totalorder %s4015_s27, 1  ;;  %vm599_vm1 = vcmask 261120   ;;  %v3178_v14 = vld [vmem:[%s5045_s4] ss:$0 sm:$0xff]  ;;  %vm1162_vm2 = vcmask 64512  }
  0x38   : > { %3308 = vmatprep.subr.mxu1 %v4136_v0  ;;  %3316 = vmatprep.mubr.msk.f32.mxu1 %vm4137_vm0, %v4136_v0  ;;  %s580_s17 = scalar_select %p579_p13, %s4019_s28, 1  ;;  %v3182_v20 = vld [vmem:[%s5047_s6] ss:$0 sm:$0xff]  ;;  %v4141_v28 = vmov 1983009808   ;;  %v4423_v34 = vshrl.u32 %v851_v30, 7 }
  0x39   : > { %s582_s29 = scalar_select %p581_p10, %s4015_s27, 1  ;;  %v3180_v25 = vld [vmem:[%s5046_s5] ss:$0 sm:$0xff]  ;;  %v849_v29 = vunpack.c.l.s4 %v4141_v28  ;;  %v4142_v31 = vmov 1934713408  }
  0x3a   : > { %s3176_s1 = sshll.u32 %s580_s17, 1  ;;  %s5094_s22 = sld [smem:[#allocation20_spill]]  ;;  %v881_v32 = vunpack.c.l.s4 %v4142_v31 }
  0x3b   : > { %s584_s18 = sadd.s32 %s3176_s1, %s582_s29  ;;  %s5095_s17 = sld [smem:[#allocation19_spill]]  ;;  %v850_v33 = vunpack.c.0.s8 %v849_v29 }
  0x3c   : > { %s3177_s20 = sshll.u32 %s584_s18, 3  ;;  %s5096_s2 = sld [smem:[#allocation21_spill]]  ;;  %v882_v37 = vunpack.c.0.s8 %v881_v32 }
  0x3d   : > { %s5097_s3 = sld [smem:[#allocation22_spill]]  ;;  %s4138_s0 = smov 120   ;;  %v4426_v38 = vsub.s32 %v850_v33, %v4423_v34 }
  0x3e   : > { %s4139_s19 = smov 104   ;;  %v4429_v45 = vsub.s32 %v882_v37, %v4423_v34  ;;  %s3188_s24 = sshll.u32 %s4015_s27, 5 }
  0x3f   : > { %s4462_s21 = scalar_lea.vmem [#allocation3], %s3188_s24  ;;  %s4486_s11 = scalar_lea.vmem [#allocation2], %s3188_s24 }
  0x40   : > { %v591_v1 = vld [vmem:[%s5094_s22 + $0x18] sm:$0xff]  ;;  %v590_v2 = vld [vmem:[%s5094_s22 + $0x10] sm:$0xff]  ;;  %v589_v3 = vld [vmem:[%s5094_s22 + $0x8] sm:$0xff]  ;;  %s578_s16 = scalar_lea.vmem [#allocation7], %s4343_s15  ;;  %p3189_p12 = scmp.le.s32.totalorder %s4015_s27, 0 }
  0x41   : > { %3298 = vmatpush3.msra.mxu0 %v591_v1  ;;  %s586_s29 = scalar_lea.vmem %s5095_s17, %s3177_s20  ;;  %v588_v6 = vld [vmem:[%s5094_s22] sm:$0xff]  ;;  %s4140_s17 = smov 112  }
  0x42   : > { %3299 = vmatprep.subr.mxu0 %v4136_v0  ;;  %v676_v4 = vld [vmem:[%s5096_s2 + $0x18] sm:$0xff]  ;;  %v675_v5 = vld [vmem:[%s5096_s2 + $0x10] sm:$0xff]  ;;  %v4377_v7 = vld [vmem:[%s586_s29] sm:$0xff]  ;;  %s4546_s18 = smov (!%p3189_p12), 0  }
  0x43   : > { %3300 = vmatpush3.msra.mxu0 %v590_v2  ;;  %3309 = vmatpush3.msra.mxu1 %v676_v4  ;;  %v757_v8 = vld [vmem:[%s5097_s3 + $0x18] sm:$0xff]  ;;  %v674_v9 = vld [vmem:[%s5096_s2 + $0x8] sm:$0xff]  ;;  %v756_v10 = vld [vmem:[%s5097_s3 + $0x10] sm:$0xff] }
  0x44   : > { %3301 = vmatprep.subr.mxu0 %v4136_v0  ;;  %3310 = vmatprep.subr.mxu1 %v4136_v0  ;;  %v673_v11 = vld [vmem:[%s5096_s2] sm:$0xff]  ;;  %v755_v12 = vld [vmem:[%s5097_s3 + $0x8] sm:$0xff] }
  0x45   : > { %3302 = vmatpush3.msra.mxu0 %v589_v3  ;;  %3311 = vmatpush3.msra.mxu1 %v675_v5  ;;  %v754_v13 = vld [vmem:[%s5097_s3] sm:$0xff] }
  0x46   : > { %3303 = vmatprep.subr.mxu0 %v4136_v0  ;;  %3312 = vmatprep.subr.mxu1 %v4136_v0 }
  0x47   : > { %3304 = vmatpush3.msra.mxu0 %v588_v6  ;;  %3313 = vmatpush3.msra.mxu1 %v674_v9 }
  0x48   : > { %3306 = vmatmul.mubr.msk.f32.vlgmr.msra.gmra.mxu0 %vm599_vm1, %v4377_v7  ;;  %3319 = vmatprep.subr.mxu0 %v4136_v0 }
  0x49   : > { %3320 = vmatpush3.msra.mxu0 %v757_v8  ;;  %3327 = vmatprep.mubr.msk.f32.mxu0 %vm4137_vm0, %v4136_v0 }
  0x4a   : > { %3321 = vmatprep.subr.mxu0 %v4136_v0  ;;  %3314 = vmatprep.subr.mxu1 %v4136_v0 }
  0x4b   : > { %3322 = vmatpush3.msra.mxu0 %v756_v10  ;;  %3315 = vmatpush3.msra.mxu1 %v673_v11 }
  0x4c   : > { %3323 = vmatprep.subr.mxu0 %v4136_v0  ;;  %3317 = vmatmul.mubr.msk.f32.vlgmr.msra.gmra.mxu1 %vm599_vm1, %v4377_v7 }
  0x4d   : > { %3324 = vmatpush3.msra.mxu0 %v755_v12 }
  0x4e   : > { %3325 = vmatprep.subr.mxu0 %v4136_v0 }
  0x4f   : > { %3326 = vmatpush3.msra.mxu0 %v754_v13 }
  0x50   : > { %3328 = vmatmul.mubr.msk.f32.vlgmr.msra.gmra.mxu0 %vm599_vm1, %v4377_v7 }
 0x108   : > { %v669_v15 = vpop.f32.mrf.mxu0 }
 0x109   : > { %v670_v16 = vadd.f32 %v3178_v14, %v669_v15 }
 0x10a   : > { %v3307_v17 = vpop.f32.mrf.mxu0 }
 0x10b   : > { %v835_v18 = vmul.f32 0.35355338, %v670_v16 }
 0x10c   : > { %v750_v19 = vpop.f32.mrf.mxu1 }
 0x10d   : > { %837 = vrot.lane.b32.xlu1 %v835_v18, %s4138_s0  ;;  %v751_v26 = vadd.f32 %v3180_v25, %v750_v19 }
 0x10e   : > { %v3318_v21 = vpop.f32.mrf.mxu1 }
 0x110   : > { %v831_v22 = vpop.f32.mrf.mxu0 }
 0x111   : > { %v832_v23 = vadd.f32 %v3182_v20, %v831_v22 }
 0x112   : > { %v3329_v24 = vpop.f32.mrf.mxu0 }
 0x113   : > { %1021 = vrot.lane.b32.xlu1 %v832_v23, %s4139_s19  ;;  %1015 = vrot.lane.b32.xlu0 %v832_v23, %s4138_s0 }
 0x117   : > { %843 = vrot.lane.b32.xlu1 %v835_v18, %s4139_s19  ;;  %1018 = vrot.lane.b32.xlu0 %v832_v23, %s4140_s17 }
 0x11b   : > { %840 = vrot.lane.b32.xlu0 %v835_v18, %s4140_s17 }
 0x139   : > { %982 = vxpose.xlu0.b32.start.end [1/1] (short) (narrow) %v751_v26, 32 }
 0x17f   : > { %v838_v27 = vpop.permute.xlu1 %837 }
 0x185   : > { %v1022_v35 = vpop.permute.xlu1 %1021  ;;  %v1016_v36 = vpop.permute.xlu0 %1015 }
 0x186   : > { %v1040_v39 = vcombine.low %v1016_v36, %v1022_v35  ;;  %v1041_v40 = vcombine.high %v1016_v36, %v1022_v35 }
 0x188   : > { %v1048_v46 = vrot.slane %v1040_v39, %v4426_v38  ;;  %v1055_v47 = vrot.slane %v1041_v40, %v4426_v38 }
 0x189   : > { %v1019_v41 = vpop.permute.xlu0 %1018  ;;  %v844_v42 = vpop.permute.xlu1 %843 }
 0x18a   : > { %v1024_v43 = vcombine.low %v832_v23, %v1019_v41  ;;  %v1025_v44 = vcombine.high %v832_v23, %v1019_v41  ;;  %v862_v50 = vcombine.low %v838_v27, %v844_v42  ;;  %v863_v51 = vcombine.high %v838_v27, %v844_v42 }
 0x18c   : > { %v1032_v48 = vrot.slane %v1024_v43, %v4426_v38  ;;  %v1039_v49 = vrot.slane %v1025_v44, %v4426_v38  ;;  %v870_v63 = vrot.slane %v862_v50, %v4426_v38  ;;  %v877_v1 = vrot.slane %v863_v51, %v4426_v38 }
 0x18d   : > { %v841_v52 = vpop.permute.xlu0 %840 }
 0x18e   : > { %v1056_v53 = vcombine.low %v1032_v48, %v1048_v46  ;;  %v1057_v54 = vcombine.high %v1032_v48, %v1048_v46  ;;  %v1072_v55 = vcombine.low %v1039_v49, %v1055_v47  ;;  %v1073_v56 = vcombine.high %v1039_v49, %v1055_v47 }
 0x18f   : > { %v846_v57 = vcombine.low %v835_v18, %v841_v52  ;;  %v847_v58 = vcombine.high %v835_v18, %v841_v52 }
 0x190   : > { %v1064_v59 = vrot.slane %v1056_v53, %v4429_v45  ;;  %v1071_v60 = vrot.slane %v1057_v54, %v4429_v45  ;;  %v1080_v61 = vrot.slane %v1072_v55, %v4429_v45  ;;  %v1087_v62 = vrot.slane %v1073_v56, %v4429_v45 }
 0x191   : > { %v854_v2 = vrot.slane %v846_v57, %v4426_v38  ;;  %v861_v3 = vrot.slane %v847_v58, %v4426_v38 }
 0x192   : > { %v1092_v4 = vcombine.low %v1064_v59, %v1071_v60  ;;  %v3186_v5 = vcombine.high %v1064_v59, %v1071_v60  ;;  %v1108_v6 = vcombine.low %v1080_v61, %v1087_v62  ;;  %v3187_v8 = vcombine.high %v1080_v61, %v1087_v62 }
 0x193   : > { %v878_v9 = vcombine.low %v854_v2, %v870_v63  ;;  %v879_v10 = vcombine.high %v854_v2, %v870_v63  ;;  %v894_v11 = vcombine.low %v861_v3, %v877_v1  ;;  %v895_v12 = vcombine.high %v861_v3, %v877_v1 }
 0x194   : > { %v1099_v13 = vrot.slane %v1092_v4, %v4426_v38  ;;  %v1107_v14 = vrot.slane %v3186_v5, %v4426_v38  ;;  %v1115_v15 = vrot.slane %v1108_v6, %v4426_v38  ;;  %v1123_v16 = vrot.slane %v3187_v8, %v4426_v38 }
 0x195   : > { %v886_v17 = vrot.slane %v878_v9, %v4429_v45  ;;  %v893_v18 = vrot.slane %v879_v10, %v4429_v45  ;;  %v902_v19 = vrot.slane %v894_v11, %v4429_v45  ;;  %v909_v20 = vrot.slane %v895_v12, %v4429_v45 }
 0x196   : > { %v1124_v21 = vcombine.low %v1099_v13, %v1107_v14  ;;  %v1125_v22 = vcombine.high %v1099_v13, %v1107_v14  ;;  %v1140_v23 = vcombine.low %v1115_v15, %v1123_v16  ;;  %v1141_v24 = vcombine.high %v1115_v15, %v1123_v16 }
 0x197   : > { %v914_v25 = vcombine.low %v886_v17, %v893_v18  ;;  %v3184_v26 = vcombine.high %v886_v17, %v893_v18  ;;  %v930_v27 = vcombine.low %v902_v19, %v909_v20  ;;  %v3185_v28 = vcombine.high %v902_v19, %v909_v20 }
 0x198   : > { %v1132_v29 = vrot.slane %v1124_v21, %v4429_v45  ;;  %v1139_v31 = vrot.slane %v1125_v22, %v4429_v45  ;;  %v1148_v32 = vrot.slane %v1140_v23, %v4429_v45  ;;  %v1155_v33 = vrot.slane %v1141_v24, %v4429_v45 }
 0x199   : > { %v921_v35 = vrot.slane %v914_v25, %v4426_v38  ;;  %v929_v36 = vrot.slane %v3184_v26, %v4426_v38  ;;  %v937_v37 = vrot.slane %v930_v27, %v4426_v38  ;;  %v945_v39 = vrot.slane %v3185_v28, %v4426_v38 }
 0x19a   : > { %v1156_v40 = vcombine.low %v1132_v29, %v1148_v32  ;;  %v1157_v41 = vcombine.high %v1132_v29, %v1148_v32  ;;  %v1158_v42 = vcombine.low %v1139_v31, %v1155_v33  ;;  %v1159_v43 = vcombine.high %v1139_v31, %v1155_v33 }
 0x19b   : > { %v946_v44 = vcombine.low %v921_v35, %v929_v36  ;;  %v947_v46 = vcombine.high %v921_v35, %v929_v36  ;;  %v962_v47 = vcombine.low %v937_v37, %v945_v39  ;;  %v963_v48 = vcombine.high %v937_v37, %v945_v39 }
 0x19c   : > { %1168 = vst.msk [vmem:[%s4462_s21] sm:$0xff] %vm1162_vm2, %v1156_v40  ;;  %1169 = vst.msk [vmem:[%s4462_s21 + $0x8] sm:$0xff] %vm1162_vm2, %v1157_v41  ;;  %v4498_v61 = vmov 0.0   ;;  %v4500_v62 = vmov 0.0   ;;  %v4502_v63 = vmov 0.0   ;;  %v4504_v1 = vmov 0.0  }
 0x19d   : > { %1170 = vst.msk [vmem:[%s4462_s21 + $0x10] sm:$0xff] %vm1162_vm2, %v1158_v42  ;;  %1171 = vst.msk [vmem:[%s4462_s21 + $0x18] sm:$0xff] %vm1162_vm2, %v1159_v43  ;;  %v954_v49 = vrot.slane %v946_v44, %v4429_v45  ;;  %v961_v50 = vrot.slane %v947_v46, %v4429_v45  ;;  %v970_v51 = vrot.slane %v962_v47, %v4429_v45  ;;  %v4506_v2 = vmov 0.0  }
 0x19e   : > { %v977_v52 = vrot.slane %v963_v48, %v4429_v45  ;;  %v4508_v3 = vmov 0.0   ;;  %v4510_v4 = vmov 0.0   ;;  %v4512_v5 = vmov 0.0  }
 0x19f   : > { %v4476_v53 = vcombine.low %v954_v49, %v970_v51  ;;  %v4478_v54 = vcombine.high %v954_v49, %v970_v51  ;;  %v4514_v6 = vmov -1e+30   ;;  %v4516_v8 = vmov -1e+30  }
 0x1a0   : > { %v4480_v55 = vcombine.low %v961_v50, %v977_v52  ;;  %v4482_v56 = vcombine.high %v961_v50, %v977_v52  ;;  %v4518_v9 = vmov -1e+30   ;;  %v4520_v10 = vmov -1e+30  }
 0x1b5   : > { %v998_v57 = vpop.trf.xlu0 }
 0x1b6   : > { %1163 = vst.msk [vmem:[%s4486_s11] sm:$0xff] %vm1162_vm2, %v998_v57 }
 0x1b9   : > { %v999_v58 = vpop.trf.xlu0 }
 0x1ba   : > { %1164 = vst.msk [vmem:[%s4486_s11 + $0x8] sm:$0xff] %vm1162_vm2, %v999_v58 }
 0x1bd   : > { %v1000_v59 = vpop.trf.xlu0 }
 0x1be   : > { %1165 = vst.msk [vmem:[%s4486_s11 + $0x10] sm:$0xff] %vm1162_vm2, %v1000_v59  ;;  %3100 = sbr.rel (%p3189_p12) target bundleno = 1016 (0x3f8), region = 133 }
 0x1c1   : > { %v1001_v60 = vpop.trf.xlu0 }
 0x1c2   : > { %1166 = vst.msk [vmem:[%s4486_s11 + $0x18] sm:$0xff] %vm1162_vm2, %v1001_v60 }
 0x1c3   : > { %v4522_v11 = vmov 0.0   ;;  %v4524_v12 = vmov 0.0   ;;  %v4526_v13 = vmov 0.0   ;;  %v4528_v14 = vmov 0.0  }
 0x1c4   : > { %v4530_v15 = vmov 0.0   ;;  %v4532_v16 = vmov 0.0   ;;  %v4534_v17 = vmov 0.0   ;;  %v4536_v18 = vmov 0.0  }
 0x1c5   : > { %v4538_v19 = vmov -1e+30   ;;  %v4540_v20 = vmov -1e+30   ;;  %v4542_v21 = vmov -1e+30  }
 0x1c6   : > { %v4544_v22 = vmov -1e+30  }
 0x1c7 LB: >> { %v4143_v23 = vmov 0.0   ;;  %vm4144_vm3 = vmmov 0   ;;  %s3190_s26 = sshll.u32 %s4083_s18, 5  ;;  %s1175_s18 = sadd.s32 1, %s4083_s18   ;;  %s4083_s18 = sphi %s4546_s18, %s1175_s18   ;;  %v4079_v22 = vphi %v4544_v22, %v5111_v22   ;;  %v4075_v21 = vphi %v4542_v21, %v5110_v21   ;;  %v4071_v20 = vphi %v4540_v20, %v5109_v20   ;;  %v4067_v19 = vphi %v4538_v19, %v5108_v19   ;;  %v4063_v18 = vphi %v4536_v18, %v5107_v18   ;;  %v4059_v17 = vphi %v4534_v17, %v5106_v17   ;;  %v4055_v16 = vphi %v4532_v16, %v5105_v16   ;;  %v4051_v15 = vphi %v4530_v15, %v5104_v15   ;;  %v4047_v14 = vphi %v4528_v14, %v5103_v14   ;;  %v4043_v13 = vphi %v4526_v13, %v5102_v13   ;;  %v4039_v12 = vphi %v4524_v12, %v5101_v12   ;;  %v4035_v11 = vphi %v4522_v11, %v5100_v11  }
 0x1c8   : >> { %3330 = vmatprep.subr.mxu0 %v4143_v23  ;;  %3332 = vmatprep.mubr.msk.f32.mxu0 %vm4144_vm3, %v4143_v23  ;;  %s1191_s0 = scalar_lea.vmem [#allocation2], %s3190_s26  ;;  %s4622_s30 = scalar_lea.vmem [#allocation3], %s3190_s26 }
 0x1c9   : >> { %3335 = vmatprep.subr.mxu1 %v4143_v23  ;;  %3337 = vmatprep.mubr.msk.f32.mxu1 %vm4144_vm3, %v4143_v23  ;;  %v1192_v24 = vld [vmem:[%s1191_s0] sm:$0xff]  ;;  %v1194_v25 = vld [vmem:[%s1191_s0 + $0x10] sm:$0xff]  ;;  %v1193_v26 = vld [vmem:[%s1191_s0 + $0x8] sm:$0xff]  ;;  %p4676_p0 = scmp.ge.s32.totalorder %s1175_s18, %s4015_s27 }
 0x1ca   : >> { %3331 = vmatpush3.msra.mxu0 %v1192_v24  ;;  %3336 = vmatpush3.msra.mxu1 %v1193_v26  ;;  %v1195_v27 = vld [vmem:[%s1191_s0 + $0x18] sm:$0xff]  ;;  %v1197_v43 = vld [vmem:[%s4622_s30] sm:$0xff]  ;;  %v1198_v44 = vld [vmem:[%s4622_s30 + $0x8] sm:$0xff] }
 0x1cb   : >> { %3333 = vmatmul.mubr.msk.f32.vlgmr.msra.gmra.mxu0 %vm1162_vm2, %v4476_v53  ;;  %3340 = vmatprep.subr.mxu0 %v4143_v23  ;;  %v1199_v9 = vld [vmem:[%s4622_s30 + $0x10] sm:$0xff] }
 0x1cc   : >> { %3341 = vmatpush3.msra.mxu0 %v1194_v25  ;;  %3338 = vmatmul.mubr.msk.f32.vlgmr.msra.gmra.mxu1 %vm1162_vm2, %v4478_v54 }
 0x1cd   : >> { %3342 = vmatprep.mubr.msk.f32.mxu0 %vm4144_vm3, %v4143_v23  ;;  %3345 = vmatprep.subr.mxu1 %v4143_v23 }
 0x1ce   : >> { %3346 = vmatpush3.msra.mxu1 %v1195_v27  ;;  %3347 = vmatprep.mubr.msk.f32.mxu1 %vm4144_vm3, %v4143_v23 }
 0x1cf   : >> { %3343 = vmatmul.mubr.msk.f32.vlgmr.msra.gmra.mxu0 %vm1162_vm2, %v4480_v55  ;;  %3350 = vmatprep.subr.mxu0 %v4143_v23 }
 0x1d0   : >> { %3348 = vmatmul.mubr.msk.f32.vlgmr.msra.gmra.mxu1 %vm1162_vm2, %v4482_v56  ;;  %3352 = vmatprep.mubr.msk.f32.mxu0 %vm4144_vm3, %v4143_v23 }
 0x1d1   : >> { %3355 = vmatprep.subr.mxu1 %v4143_v23  ;;  %3357 = vmatprep.mubr.msk.f32.mxu1 %vm4144_vm3, %v4143_v23 }
 0x1d2   : >> { %3351 = vmatpush3.msra.mxu0 %v1197_v43  ;;  %3356 = vmatpush3.msra.mxu1 %v1198_v44 }
 0x1d3   : >> { %3360 = vmatprep.subr.mxu0 %v4143_v23  ;;  %3365 = vmatprep.subr.mxu1 %v4143_v23 }
 0x28b   : >> { %v1270_v28 = vpop.f32.mrf.mxu0 }
 0x28c   : >> { %v1493_v29 = vsel %vm1162_vm2, %v1270_v28, -inf  ;;  %v1343_v31 = vpop.f32.mrf.mxu1 }
 0x28d   : >> { %1494 = vmax.xlane.f32.xlu0 %v1493_v29  ;;  %v3334_v32 = vpop.f32.mrf.mxu0  ;;  %v1496_v35 = vsel %vm1162_vm2, %v1343_v31, -inf }
 0x28e   : >> { %v3339_v33 = vpop.f32.mrf.mxu1 }
 0x28f   : >> { %v1416_v36 = vpop.f32.mrf.mxu0 }
 0x290   : >> { %v1499_v37 = vsel %vm1162_vm2, %v1416_v36, -inf  ;;  %v1489_v39 = vpop.f32.mrf.mxu1 }
 0x291   : >> { %1497 = vmax.xlane.f32.xlu0 %v1496_v35  ;;  %1500 = vmax.xlane.f32.xlu1 %v1499_v37  ;;  %v3344_v40 = vpop.f32.mrf.mxu0  ;;  %v1502_v42 = vsel %vm1162_vm2, %v1489_v39, -inf }
 0x292   : >> { %v3349_v41 = vpop.f32.mrf.mxu1 }
 0x295   : >> { %1503 = vmax.xlane.f32.xlu1 %v1502_v42 }
 0x316   : >> { %v1495_v46 = vpop.xlane.xlu0 %1494 }
 0x317   : >> { %v4629_v47 = vmax.f32 %v4079_v22, %v1495_v46  }
 0x319   : >> { %v1509_v48 = vsub.f32 %v4079_v22, %v4629_v47  ;;  %v1521_v49 = vsub.f32 %v1270_v28, %v4629_v47 }
 0x31a   : >> { %v1498_v50 = vpop.xlane.xlu0 %1497  ;;  %v1501_v51 = vpop.xlane.xlu1 %1500 }
 0x31b   : >> { %v1525_v52 = vmul.f32 1.442695, %v1521_v49  ;;  %v4635_v57 = vmax.f32 %v4075_v21, %v1498_v50   ;;  %v4638_v58 = vmax.f32 %v4071_v20, %v1501_v51   ;;  %v1513_v28 = vmul.f32 1.442695, %v1509_v48 }
 0x31d   : >> { %v1510_v59 = vsub.f32 %v4075_v21, %v4635_v57  ;;  %v1522_v60 = vsub.f32 %v1343_v31, %v4635_v57  ;;  %v1511_v61 = vsub.f32 %v4071_v20, %v4638_v58  ;;  %3763 = vpow2.f32 %v1525_v52  ;;  %v1200_v21 = vld [vmem:[%s4622_s30 + $0x18] sm:$0xff] }
 0x31e   : >> { %v1523_v62 = vsub.f32 %v1416_v36, %v4638_v58  ;;  %v1504_v63 = vpop.xlane.xlu1 %1503 }
 0x31f   : >> { %v1527_v1 = vmul.f32 1.442695, %v1522_v60  ;;  %v4647_v2 = vmax.f32 %v4067_v19, %v1504_v63   ;;  %v1515_v29 = vmul.f32 1.442695, %v1510_v59  ;;  %v1517_v31 = vmul.f32 1.442695, %v1511_v61 }
 0x320   : >> { %v1529_v3 = vmul.f32 1.442695, %v1523_v62 }
 0x321   : >> { %v5098_v6 = vmov %v4647_v2  ;;  %3765 = vpow2.f32 %v1527_v1 }
 0x322   : >> { %v1512_v4 = vsub.f32 %v4067_v19, %v5098_v6  ;;  %v1524_v5 = vsub.f32 %v1489_v39, %v5098_v6  ;;  %3767 = vpow2.f32 %v1529_v3 }
 0x324   : >> { %v1531_v8 = vmul.f32 1.442695, %v1524_v5  ;;  %v1519_v32 = vmul.f32 1.442695, %v1512_v4 }
 0x326   : >> { %3769 = vpow2.f32 %v1531_v8 }
 0x327   : >> { %3771 = vpow2.f32 %v1513_v28 }
 0x328   : >> { %3773 = vpow2.f32 %v1515_v29 }
 0x329   : >> { %3775 = vpow2.f32 %v1517_v31 }
 0x32a   : >> { %v3764_v10 = vpop.eup %3763  ;;  %3777 = vpow2.f32 %v1519_v32 }
 0x32b   : >> { %3353 = vmatmul.mubr.msk.f32.vlgmr.msra.gmra.mxu0 %vm1162_vm2, %v3764_v10  ;;  %v1537_v20 = vsel %vm1162_vm2, %v3764_v10, 0.0  ;;  %v5121_v10 = vmov (%p4676_p0), %v4629_v47 }
 0x32c   : >> { %1538 = vadd.xlane.f32.xlu0 %v1537_v20  ;;  %3361 = vmatpush3.msra.mxu0 %v1199_v9  ;;  %v5109_v20 = vmov %v4638_v58  ;;  %v5120_v9 = vmov (%p4676_p0), %v4635_v57 }
 0x32d   : >> { %3362 = vmatprep.mubr.msk.f32.mxu0 %vm4144_vm3, %v4143_v23 }
 0x32e   : >> { %v3766_v22 = vpop.eup %3765 }
 0x32f   : >> { %3358 = vmatmul.mubr.msk.f32.vlgmr.msra.gmra.mxu1 %vm1162_vm2, %v3766_v22  ;;  %v1540_v19 = vsel %vm1162_vm2, %v3766_v22, 0.0  ;;  %v3768_v24 = vpop.eup %3767  ;;  %v5111_v22 = vmov %v4629_v47 }
 0x330   : >> { %3366 = vmatpush3.msra.mxu1 %v1200_v21  ;;  %1541 = vadd.xlane.f32.xlu1 %v1540_v19  ;;  %v1543_v25 = vsel %vm1162_vm2, %v3768_v24, 0.0  ;;  %v5108_v19 = vmov %v5098_v6  ;;  %v5110_v21 = vmov %v4635_v57 }
 0x331   : >> { %3363 = vmatmul.mubr.msk.f32.vlgmr.msra.gmra.mxu0 %vm1162_vm2, %v3768_v24  ;;  %3367 = vmatprep.mubr.msk.f32.mxu1 %vm4144_vm3, %v4143_v23 }
 0x332   : >> { %1544 = vadd.xlane.f32.xlu0 %v1543_v25 }
 0x333   : >> { %v3770_v26 = vpop.eup %3769 }
 0x334   : >> { %3368 = vmatmul.mubr.msk.f32.vlgmr.msra.gmra.mxu1 %vm1162_vm2, %v3770_v26  ;;  %v1546_v27 = vsel %vm1162_vm2, %v3770_v26, 0.0  ;;  %v3772_v33 = vpop.eup %3771 }
 0x335   : >> { %1547 = vadd.xlane.f32.xlu1 %v1546_v27  ;;  %v1533_v35 = vmul.f32 %v4063_v18, %v3772_v33  ;;  %v3774_v36 = vpop.eup %3773  ;;  %v1553_v52 = vmul.f32 %v4047_v14, %v3772_v33 }
 0x336   : >> { %v3776_v39 = vpop.eup %3775  ;;  %v1534_v40 = vmul.f32 %v4059_v17, %v3774_v36  ;;  %v1554_v61 = vmul.f32 %v4043_v13, %v3774_v36 }
 0x337   : >> { %v3778_v41 = vpop.eup %3777  ;;  %v1535_v44 = vmul.f32 %v4055_v16, %v3776_v39  ;;  %v1555_v17 = vmul.f32 %v4039_v12, %v3776_v39 }
 0x338   : >> { %v1536_v49 = vmul.f32 %v4051_v15, %v3778_v41  ;;  %v1556_v16 = vmul.f32 %v4035_v11, %v3778_v41 }
 0x3b5   : >> { %v1539_v23 = vpop.xlane.xlu0 %1538 }
 0x3b6   : >> { %v1549_v37 = vadd.f32 %v1539_v23, %v1533_v35  }
 0x3b9   : >> { %v1542_v42 = vpop.xlane.xlu1 %1541 }
 0x3ba   : >> { %v1550_v43 = vadd.f32 %v1542_v42, %v1534_v40  }
 0x3bb   : >> { %v1545_v46 = vpop.xlane.xlu0 %1544 }
 0x3bc   : >> { %v1551_v48 = vadd.f32 %v1545_v46, %v1535_v44  }
 0x3be   : >> { %v1548_v50 = vpop.xlane.xlu1 %1547 }
 0x3bf   : >> { %v1552_v51 = vadd.f32 %v1548_v50, %v1536_v49  }
 0x3eb   : >> { %v1626_v18 = vpop.f32.mrf.mxu0 }
 0x3ec   : >> { %v1849_v59 = vadd.f32 %v1626_v18, %v1553_v52   ;;  %v5107_v18 = vmov %v1549_v37 }
 0x3ed   : >> { %v3354_v60 = vpop.f32.mrf.mxu0 }
 0x3ee   : >> { %v5103_v14 = vmov %v1849_v59 }
 0x3ef   : >> { %v1699_v62 = vpop.f32.mrf.mxu1 }
 0x3f0   : >> { %v1850_v63 = vadd.f32 %v1699_v62, %v1554_v61  }
 0x3f1   : >> { %v1772_v1 = vpop.f32.mrf.mxu0  ;;  %v3359_v2 = vpop.f32.mrf.mxu1 }
 0x3f2   : >> { %v1851_v3 = vadd.f32 %v1772_v1, %v1555_v17   ;;  %v5102_v13 = vmov %v1850_v63  ;;  %v5106_v17 = vmov %v1550_v43  ;;  %v5114_v1 = vmov (%p4676_p0), %v1849_v59 }
 0x3f3   : >> { %v3364_v4 = vpop.f32.mrf.mxu0  ;;  %1177 = sbr.rel (!%p4676_p0) target bundleno = 455 (0x1c7), region = 139  ;;  %v5115_v2 = vmov (%p4676_p0), %v1552_v51 }
 0x3f4   : >> { %v1845_v15 = vpop.f32.mrf.mxu1  ;;  %v5101_v12 = vmov %v1851_v3  ;;  %v5113_v62 = vmov (%p4676_p0), %v1851_v3  ;;  %v5116_v3 = vmov (%p4676_p0), %v1551_v48  ;;  %v5117_v4 = vmov (%p4676_p0), %v1550_v43 }
 0x3f5   : >> { %v1852_v5 = vadd.f32 %v1845_v15, %v1556_v16   ;;  %v5104_v15 = vmov %v1552_v51  ;;  %v5105_v16 = vmov %v1551_v48 }
 0x3f6   : >> { %v3369_v8 = vpop.f32.mrf.mxu1 }
 0x3f7   : >> { %v5100_v11 = vmov %v1852_v5  ;;  %v5112_v61 = vmov (%p4676_p0), %v1852_v5  ;;  %v5118_v5 = vmov (%p4676_p0), %v1549_v37  ;;  %v5119_v8 = vmov (%p4676_p0), %v4638_v58 }
 0x3f8 PF: > { %3370 = vmatprep.subr.mxu1 %v4136_v0  ;;  %v1858_v11 = vld [vmem:[%s4486_s11] sm:$0xff]  ;;  %3372 = vmatprep.mubr.msk.f32.mxu1 %vm4137_vm0, %v4136_v0  ;;  %v1859_v12 = vld [vmem:[%s4486_s11 + $0x8] sm:$0xff]  ;;  %v1864_v50 = vld [vmem:[%s4462_s21 + $0x10] sm:$0xff]  ;;  %s4145_s26 = smov 16   ;;  %s4146_s0 = smov 8   ;;  %vm2681_vm5 = vcmask 130048   ;;  %v4131_v10 = vphi %v4520_v10, %v5121_v10   ;;  %v4127_v9 = vphi %v4518_v9, %v5120_v9   ;;  %v4123_v8 = vphi %v4516_v8, %v5119_v8   ;;  %v4119_v6 = vphi %v4514_v6, %v5098_v6   ;;  %v4115_v5 = vphi %v4512_v5, %v5118_v5   ;;  %v4111_v4 = vphi %v4510_v4, %v5117_v4   ;;  %v4107_v3 = vphi %v4508_v3, %v5116_v3   ;;  %v4103_v2 = vphi %v4506_v2, %v5115_v2   ;;  %v4099_v1 = vphi %v4504_v1, %v5114_v1   ;;  %v4095_v63 = vphi %v4502_v63, %v1850_v63   ;;  %v4091_v62 = vphi %v4500_v62, %v5113_v62   ;;  %v4087_v61 = vphi %v4498_v61, %v5112_v61  }
 0x3f9   : > { %3371 = vmatpush3.msra.mxu1 %v1858_v11  ;;  %3390 = vmatprep.subr.mxu0 %v4136_v0  ;;  %v1862_v29 = vld [vmem:[%s4462_s21] sm:$0xff]  ;;  %v1863_v31 = vld [vmem:[%s4462_s21 + $0x8] sm:$0xff]  ;;  %v1865_v18 = vld [vmem:[%s4462_s21 + $0x18] sm:$0xff]  ;;  %s4147_s30 = smov 24   ;;  %vm2683_vm6 = vcmask 195584   ;;  %s3219_s21 = sshll.u32 %s4019_s28, 1 }
 0x3fa   : > { %3373 = vmatmul.mubr.msk.f32.vlgmr.msra.gmra.mxu1 %vm1162_vm2, %v4476_v53  ;;  %3375 = vmatprep.subr.mxu1 %v4136_v0  ;;  %v1860_v13 = vld [vmem:[%s4486_s11 + $0x10] sm:$0xff]  ;;  %s5123_s19 = sld [smem:[#allocation25_spill]]  ;;  %s3029_s29 = sshll.u32 %s578_s16, 4  ;;  %s3030_s29 = int_to_ptr.vmem [resolvable:$true] %s3029_s29 }
 0x3fb   : > { %3376 = vmatpush3.msra.mxu1 %v1859_v12  ;;  %3377 = vmatprep.mubr.msk.f32.mxu1 %vm4137_vm0, %v4136_v0  ;;  %v2688_v12 = vld [vmem:[%s5048_s7 + $0x18] sm:$0xff]  ;;  %s5124_s28 = sld [smem:[#allocation26_spill]]  ;;  %s3835_s18 = scalar_lea.vmem %s3030_s29, 128 }
 0x3fc   : > { %3380 = vmatprep.subr.mxu1 %v4136_v0  ;;  %3392 = vmatprep.mubr.msk.f32.mxu0 %vm4137_vm0, %v4136_v0  ;;  %p3836_p1 = scmp.ne.s32.totalorder %s3030_s29, %s3835_s18 }
 0x3fd   : > { %3391 = vmatpush3.msra.mxu0 %v1862_v29 }
 0x3fe   : > { %3378 = vmatmul.mubr.msk.f32.vlgmr.msra.gmra.mxu1 %vm1162_vm2, %v4478_v54  ;;  %v1861_v53 = vld [vmem:[%s4486_s11 + $0x18] sm:$0xff]  ;;  %v1856_v54 = vand.u32 127, %v851_v30  ;;  %3400 = vmatprep.subr.mxu0 %v4136_v0  ;;  %s3025_s11 = sadd.s32 %s4015_s27, %s3219_s21  ;;  %s5126_s27 = sand.u32 1, %s4007_s25  }
 0x3ff   : > { %3381 = vmatpush3.msra.mxu1 %v1860_v13  ;;  %3382 = vmatprep.mubr.msk.f32.mxu1 %vm4137_vm0, %v4136_v0  ;;  %s3220_s17 = sshll.u32 %s3025_s11, 7  ;;  %s3014_s21 = scalar_lea.sflag [#allocation6], %s5126_s27 }
 0x400   : > { %3385 = vmatprep.subr.mxu1 %v4136_v0  ;;  %vm1857_vm4 = vcmp.le.s32.totalorder %v1856_v54, %v4423_v34  ;;  %p3837_p2 = pnand %p3836_p1, %p4291_p3  ;;  %s4148_s11 = smov [#allocation7]  }
 0x401   : > { %s5125_s2 = smov %s5124_s28  ;;  %s3027_s3 = scalar_lea.hbm %s5124_s28, %s3220_s17 }
 0x402   : > { %3383 = vmatmul.mubr.msk.f32.vlgmr.msra.gmra.mxu1 %vm1162_vm2, %v4480_v55  ;;  %p3838_p4 = pneg %p3837_p2 }
 0x403   : > { %3386 = vmatpush3.msra.mxu1 %v1861_v53  ;;  %3387 = vmatprep.mubr.msk.f32.mxu1 %vm4137_vm0, %v4136_v0 }
 0x404   : > { %3395 = vmatprep.subr.mxu1 %v4136_v0 }
 0x406   : > { %3388 = vmatmul.mubr.msk.f32.vlgmr.msra.gmra.mxu1 %vm1162_vm2, %v4482_v56 }
 0x407   : > { %3397 = vmatprep.mubr.msk.f32.mxu1 %vm4137_vm0, %v4136_v0  ;;  %3396 = vmatpush3.msra.mxu1 %v1863_v31 }
 0x408   : > { %3405 = vmatprep.subr.mxu1 %v4136_v0 }
 0x4ba   : > { %v1935_v14 = vpop.f32.mrf.mxu1 }
 0x4bb   : > { %v2160_v55 = vsel %vm1857_vm4, %v1935_v14, -1e+30 }
 0x4bc   : > { %v3374_v47 = vpop.f32.mrf.mxu1  ;;  %v2164_v57 = vsel %vm1162_vm2, %v2160_v55, -inf }
 0x4bd   : > { %2165 = vmax.xlane.f32.xlu0 %v2164_v57 }
 0x4be   : > { %v2008_v58 = vpop.f32.mrf.mxu1 }
 0x4bf   : > { %v2161_v56 = vsel %vm1857_vm4, %v2008_v58, -1e+30 }
 0x4c0   : > { %v3379_v20 = vpop.f32.mrf.mxu1  ;;  %v2167_v21 = vsel %vm1162_vm2, %v2161_v56, -inf }
 0x4c1   : > { %2168 = vmax.xlane.f32.xlu0 %v2167_v21 }
 0x4c2   : > { %v2081_v30 = vpop.f32.mrf.mxu1 }
 0x4c3   : > { %v2162_v22 = vsel %vm1857_vm4, %v2081_v30, -1e+30 }
 0x4c4   : > { %v3384_v19 = vpop.f32.mrf.mxu1  ;;  %v2170_v24 = vsel %vm1162_vm2, %v2162_v22, -inf }
 0x4c5   : > { %2171 = vmax.xlane.f32.xlu1 %v2170_v24 }
 0x4c6   : > { %v2154_v25 = vpop.f32.mrf.mxu1 }
 0x4c7   : > { %v2163_v26 = vsel %vm1857_vm4, %v2154_v25, -1e+30 }
 0x4c8   : > { %v3389_v27 = vpop.f32.mrf.mxu1  ;;  %v2173_v28 = vsel %vm1162_vm2, %v2163_v26, -inf }
 0x4c9   : > { %2174 = vmax.xlane.f32.xlu1 %v2173_v28 }
 0x546   : > { %v2166_v32 = vpop.xlane.xlu0 %2165 }
 0x547   : > { %v2176_v33 = vmax.f32 %v4131_v10, %v2166_v32 }
 0x549   : > { %v2192_v35 = vsub.f32 %v2160_v55, %v2176_v33  ;;  %v2180_v13 = vsub.f32 %v4131_v10, %v2176_v33 }
 0x54a   : > { %v2169_v36 = vpop.xlane.xlu0 %2168 }
 0x54b   : > { %v2196_v23 = vmul.f32 1.442695, %v2192_v35  ;;  %v2177_v34 = vmax.f32 %v4127_v9, %v2169_v36  ;;  %v2184_v54 = vmul.f32 1.442695, %v2180_v13  ;;  %v2687_v13 = vld [vmem:[%s5048_s7 + $0x10] sm:$0xff] }
 0x54d   : > { %v2193_v37 = vsub.f32 %v2161_v56, %v2177_v34  ;;  %3779 = vpow2.f32 %v2196_v23  ;;  %v2181_v14 = vsub.f32 %v4127_v9, %v2177_v34 }
 0x54e   : > { %v2172_v39 = vpop.xlane.xlu1 %2171 }
 0x54f   : > { %v2198_v40 = vmul.f32 1.442695, %v2193_v37  ;;  %v2178_v41 = vmax.f32 %v4123_v8, %v2172_v39  ;;  %v2186_v57 = vmul.f32 1.442695, %v2181_v14 }
 0x551   : > { %v2194_v42 = vsub.f32 %v2162_v22, %v2178_v41  ;;  %3781 = vpow2.f32 %v2198_v40  ;;  %v2182_v53 = vsub.f32 %v4123_v8, %v2178_v41 }
 0x552   : > { %v2175_v43 = vpop.xlane.xlu1 %2174 }
 0x553   : > { %v2200_v44 = vmul.f32 1.442695, %v2194_v42  ;;  %v2179_v46 = vmax.f32 %v4119_v6, %v2175_v43  ;;  %v2188_v55 = vmul.f32 1.442695, %v2182_v53 }
 0x555   : > { %v2195_v48 = vsub.f32 %v2163_v26, %v2179_v46  ;;  %3783 = vpow2.f32 %v2200_v44  ;;  %v2183_v47 = vsub.f32 %v4119_v6, %v2179_v46 }
 0x557   : > { %v2202_v49 = vmul.f32 1.442695, %v2195_v48  ;;  %v2190_v58 = vmul.f32 1.442695, %v2183_v47  ;;  %v2686_v47 = vld [vmem:[%s5048_s7 + $0x8] sm:$0xff] }
 0x559   : > { %3785 = vpow2.f32 %v2202_v49 }
 0x55a   : > { %v3780_v51 = vpop.eup %3779  ;;  %3787 = vpow2.f32 %v2184_v54 }
 0x55b   : > { %3393 = vmatmul.mubr.msk.f32.vlgmr.msra.gmra.mxu0 %vm1162_vm2, %v3780_v51  ;;  %v2208_v52 = vsel %vm1162_vm2, %v3780_v51, 0.0  ;;  %3789 = vpow2.f32 %v2188_v55 }
 0x55c   : > { %2209 = vadd.xlane.f32.xlu0 %v2208_v52  ;;  %3401 = vmatpush3.msra.mxu0 %v1864_v50  ;;  %3791 = vpow2.f32 %v2186_v57 }
 0x55d   : > { %3402 = vmatprep.mubr.msk.f32.mxu0 %vm4137_vm0, %v4136_v0  ;;  %3432 = vmatprep.subr.mxu0 %v4136_v0  ;;  %3793 = vpow2.f32 %v2190_v58 }
 0x55e   : > { %v3782_v59 = vpop.eup %3781 }
 0x55f   : > { %3398 = vmatmul.mubr.msk.f32.vlgmr.msra.gmra.mxu1 %vm1162_vm2, %v3782_v59  ;;  %v2211_v60 = vsel %vm1162_vm2, %v3782_v59, 0.0 }
 0x560   : > { %2212 = vadd.xlane.f32.xlu1 %v2211_v60  ;;  %3406 = vmatpush3.msra.mxu1 %v1865_v18 }
 0x561   : > { %3407 = vmatprep.mubr.msk.f32.mxu1 %vm4137_vm0, %v4136_v0  ;;  %3410 = vmatprep.subr.mxu1 %v4136_v0 }
 0x562   : > { %v3784_v17 = vpop.eup %3783 }
 0x563   : > { %3403 = vmatmul.mubr.msk.f32.vlgmr.msra.gmra.mxu0 %vm1162_vm2, %v3784_v17  ;;  %v2214_v16 = vsel %vm1162_vm2, %v3784_v17, 0.0 }
 0x564   : > { %2215 = vadd.xlane.f32.xlu0 %v2214_v16  ;;  %3464 = vmatprep.mubr.msk.f32.mxu0 %vm4137_vm0, %v4136_v0 }
 0x566   : > { %v3786_v15 = vpop.eup %3785 }
 0x567   : > { %3408 = vmatmul.mubr.msk.f32.vlgmr.msra.gmra.mxu1 %vm1162_vm2, %v3786_v15  ;;  %v2217_v11 = vsel %vm1162_vm2, %v3786_v15, 0.0  ;;  %v3788_v20 = vpop.eup %3787 }
 0x568   : > { %2218 = vadd.xlane.f32.xlu1 %v2217_v11  ;;  %3418 = vmatprep.mubr.msk.f32.mxu1 %vm4137_vm0, %v4136_v0  ;;  %v3790_v21 = vpop.eup %3789  ;;  %v2204_v30 = vmul.f32 %v4115_v5, %v3788_v20  ;;  %v2224_v33 = vmul.f32 %v4099_v1, %v3788_v20 }
 0x569   : > { %3411 = vmatpush3.msra.mxu1 %v2688_v12  ;;  %v3792_v8 = vpop.eup %3791  ;;  %v2206_v19 = vmul.f32 %v4107_v3, %v3790_v21  ;;  %v2226_v36 = vmul.f32 %v4091_v62, %v3790_v21  ;;  %v2685_v21 = vld [vmem:[%s5048_s7] sm:$0xff] }
 0x56a   : > { %3412 = vmatprep.subr.mxu1 %v4136_v0  ;;  %v3794_v9 = vpop.eup %3793  ;;  %v2205_v6 = vmul.f32 %v4111_v4, %v3792_v8  ;;  %v2225_v34 = vmul.f32 %v4095_v63, %v3792_v8 }
 0x56b   : > { %v2207_v27 = vmul.f32 %v4103_v2, %v3794_v9  ;;  %v2227_v43 = vmul.f32 %v4087_v61, %v3794_v9  ;;  %3413 = vmatpush3.msra.mxu1 %v2687_v13  ;;  %v2898_v13 = vld [vmem:[%s5054_s13 + $0x48] sm:$0xff] }
 0x56c   : > { %3414 = vmatprep.subr.mxu1 %v4136_v0 }
 0x56d   : > { %3415 = vmatpush3.msra.mxu1 %v2686_v47  ;;  %v2893_v47 = vld [vmem:[%s5054_s13 + $0x20] sm:$0xff] }
 0x56e   : > { %3416 = vmatprep.subr.mxu1 %v4136_v0 }
 0x56f   : > { %3417 = vmatpush3.msra.mxu1 %v2685_v21  ;;  %v3213_v21 = vld [vmem:[%s5053_s12] ss:$0 sm:$0xff] }
 0x570   : > { %3421 = vmatprep.subr.mxu1 %v4136_v0 }
 0x5e5   : > { %v2210_v56 = vpop.xlane.xlu0 %2209 }
 0x5e6   : > { %v2220_v24 = vadd.f32 %v2210_v56, %v2204_v30 }
 0x5e8   : > { %3795 = vrcp.f32 %v2220_v24 }
 0x5e9   : > { %v2213_v10 = vpop.xlane.xlu1 %2212 }
 0x5ea   : > { %v2221_v28 = vadd.f32 %v2213_v10, %v2205_v6 }
 0x5ed   : > { %v2216_v22 = vpop.xlane.xlu0 %2215 }
 0x5ee   : > { %v2222_v25 = vadd.f32 %v2216_v22, %v2206_v19 }
 0x5f0   : > { %3797 = vrcp.f32 %v2222_v25 }
 0x5f1   : > { %v2219_v26 = vpop.xlane.xlu1 %2218  ;;  %3799 = vrcp.f32 %v2221_v28 }
 0x5f2   : > { %v2223_v29 = vadd.f32 %v2219_v26, %v2207_v27 }
 0x5f4   : > { %3801 = vrcp.f32 %v2223_v29 }
 0x5f5   : > { %v3796_v4 = vpop.eup %3795 }
 0x5fd   : > { %v3798_v37 = vpop.eup %3797 }
 0x5fe   : > { %v3800_v46 = vpop.eup %3799 }
 0x601   : > { %v3802_v50 = vpop.eup %3801 }
 0x61b   : > { %v2297_v31 = vpop.f32.mrf.mxu0 }
 0x61c   : > { %v2520_v35 = vadd.f32 %v2297_v31, %v2224_v33 }
 0x61d   : > { %v3394_v5 = vpop.f32.mrf.mxu0 }
 0x61e   : > { %v2528_v40 = vmul.f32 %v3796_v4, %v2520_v35 }
 0x61f   : > { %v2370_v32 = vpop.f32.mrf.mxu1 }
 0x620   : > { %v2521_v41 = vadd.f32 %v2370_v32, %v2225_v34 }
 0x621   : > { %v3399_v3 = vpop.f32.mrf.mxu1 }
 0x622   : > { %v2529_v62 = vmul.f32 %v3800_v46, %v2521_v41  ;;  %v2803_v46 = vld [vmem:[#allocation4 + $0x18] sm:$0xff] }
 0x623   : > { %v2443_v23 = vpop.f32.mrf.mxu0 }
 0x624   : > { %v2522_v2 = vadd.f32 %v2443_v23, %v2226_v36 }
 0x625   : > { %v3404_v39 = vpop.f32.mrf.mxu0 }
 0x626   : > { %v2530_v42 = vmul.f32 %v3798_v37, %v2522_v2 }
 0x627   : > { %v2516_v44 = vpop.f32.mrf.mxu1 }
 0x628   : > { %v2532_v48 = vcombine.low %v2528_v40, %v2530_v42  ;;  %v2533_v1 = vcombine.high %v2528_v40, %v2530_v42  ;;  %v2523_v49 = vadd.f32 %v2516_v44, %v2227_v43 }
 0x629   : > { %v3409_v51 = vpop.f32.mrf.mxu1 }
 0x62a   : > { %v2531_v52 = vmul.f32 %v3802_v50, %v2523_v49  ;;  %v2540_v63 = vrot.slane %v2532_v48, %v4426_v38  ;;  %v2547_v60 = vrot.slane %v2533_v1, %v4426_v38  ;;  %v2802_v48 = vld [vmem:[#allocation4 + $0x10] sm:$0xff]  ;;  %v2801_v1 = vld [vmem:[#allocation4 + $0x8] sm:$0xff]  ;;  %v2904_v49 = vld [vmem:[%s5054_s13 + $0x78] sm:$0xff] }
 0x62b   : > { %v2903_v50 = vld [vmem:[%s5054_s13 + $0x70] sm:$0xff]  ;;  %3433 = vmatpush3.msra.mxu0 %v2904_v49  ;;  %v2902_v51 = vld [vmem:[%s5054_s13 + $0x68] sm:$0xff] }
 0x62c   : > { %v2548_v18 = vcombine.low %v2529_v62, %v2531_v52  ;;  %v2549_v59 = vcombine.high %v2529_v62, %v2531_v52  ;;  %3434 = vmatprep.subr.mxu0 %v4136_v0  ;;  %v2901_v62 = vld [vmem:[%s5054_s13 + $0x60] sm:$0xff] }
 0x62d   : > { %3435 = vmatpush3.msra.mxu0 %v2903_v50 }
 0x62e   : > { %v2556_v17 = vrot.slane %v2548_v18, %v4426_v38  ;;  %v2563_v16 = vrot.slane %v2549_v59, %v4426_v38  ;;  %3436 = vmatprep.subr.mxu0 %v4136_v0 }
 0x62f   : > { %3437 = vmatpush3.msra.mxu0 %v2902_v51 }
 0x630   : > { %v2564_v61 = vcombine.low %v2540_v63, %v2556_v17  ;;  %v2565_v15 = vcombine.high %v2540_v63, %v2556_v17  ;;  %v2580_v11 = vcombine.low %v2547_v60, %v2563_v16  ;;  %v2581_v12 = vcombine.high %v2547_v60, %v2563_v16  ;;  %3438 = vmatprep.subr.mxu0 %v4136_v0  ;;  %v3211_v60 = vld [vmem:[%s5050_s9] ss:$0 sm:$0xff] }
 0x631   : > { %3439 = vmatpush3.msra.mxu0 %v2901_v62  ;;  %v3212_v16 = vld [vmem:[%s5051_s10] ss:$0 sm:$0xff] }
 0x632   : > { %v2572_v53 = vrot.slane %v2564_v61, %v4429_v45  ;;  %v2579_v54 = vrot.slane %v2565_v15, %v4429_v45  ;;  %v2588_v14 = vrot.slane %v2580_v11, %v4429_v45  ;;  %v2595_v55 = vrot.slane %v2581_v12, %v4429_v45  ;;  %3440 = vmatprep.subr.mxu0 %v4136_v0  ;;  %v2900_v11 = vld [vmem:[%s5054_s13 + $0x58] sm:$0xff]  ;;  %v2899_v12 = vld [vmem:[%s5054_s13 + $0x50] sm:$0xff] }
 0x633   : > { %3441 = vmatpush3.msra.mxu0 %v2900_v11 }
 0x634   : > { %v2600_v57 = vcombine.low %v2572_v53, %v2579_v54  ;;  %v3207_v58 = vcombine.high %v2572_v53, %v2579_v54  ;;  %v2616_v56 = vcombine.low %v2588_v14, %v2595_v55  ;;  %v3208_v20 = vcombine.high %v2588_v14, %v2595_v55  ;;  %3442 = vmatprep.subr.mxu0 %v4136_v0  ;;  %v2897_v53 = vld [vmem:[%s5054_s13 + $0x40] sm:$0xff]  ;;  %v2896_v54 = vld [vmem:[%s5054_s13 + $0x38] sm:$0xff]  ;;  %v2895_v14 = vld [vmem:[%s5054_s13 + $0x30] sm:$0xff] }
 0x635   : > { %3443 = vmatpush3.msra.mxu0 %v2899_v12  ;;  %v2894_v55 = vld [vmem:[%s5054_s13 + $0x28] sm:$0xff] }
 0x636   : > { %v2607_v30 = vrot.slane %v2600_v57, %v4426_v38  ;;  %v2615_v10 = vrot.slane %v3207_v58, %v4426_v38  ;;  %v2623_v22 = vrot.slane %v2616_v56, %v4426_v38  ;;  %v2631_v8 = vrot.slane %v3208_v20, %v4426_v38  ;;  %3444 = vmatprep.subr.mxu0 %v4136_v0  ;;  %v2892_v57 = vld [vmem:[%s5054_s13 + $0x18] sm:$0xff]  ;;  %v2891_v58 = vld [vmem:[%s5054_s13 + $0x10] sm:$0xff]  ;;  %v2890_v56 = vld [vmem:[%s5054_s13 + $0x8] sm:$0xff] }
 0x637   : > { %3445 = vmatpush3.msra.mxu0 %v2898_v13  ;;  %v2889_v20 = vld [vmem:[%s5054_s13] sm:$0xff] }
 0x638   : > { %v2633_v19 = vcombine.high %v2607_v30, %v2615_v10  ;;  %v2649_v9 = vcombine.high %v2623_v22, %v2631_v8  ;;  %v2632_v24 = vcombine.low %v2607_v30, %v2615_v10  ;;  %v2648_v25 = vcombine.low %v2623_v22, %v2631_v8  ;;  %3446 = vmatprep.subr.mxu0 %v4136_v0 }
 0x639   : > { %3447 = vmatpush3.msra.mxu0 %v2897_v53 }
 0x63a   : > { %v2647_v6 = vrot.slane %v2633_v19, %v4429_v45  ;;  %v2663_v26 = vrot.slane %v2649_v9, %v4429_v45  ;;  %v2640_v27 = vrot.slane %v2632_v24, %v4429_v45  ;;  %v2656_v28 = vrot.slane %v2648_v25, %v4429_v45  ;;  %v3209_v45 = vld [vmem:[%s5049_s8] ss:$0 sm:$0xff]  ;;  %3448 = vmatprep.subr.mxu0 %v4136_v0 }
 0x63b   : > { %3449 = vmatpush3.msra.mxu0 %v2896_v54 }
 0x63c   : > { %v2666_v29 = vcombine.low %v2647_v6, %v2663_v26  ;;  %v2665_v31 = vcombine.high %v2640_v27, %v2656_v28  ;;  %v2667_v5 = vcombine.high %v2647_v6, %v2663_v26  ;;  %v2664_v32 = vcombine.low %v2640_v27, %v2656_v28  ;;  %3450 = vmatprep.subr.mxu0 %v4136_v0 }
 0x63d   : > { %3451 = vmatpush3.msra.mxu0 %v2895_v14 }
 0x63e   : > { %2673 = vrot.lane.b32.xlu1 %v2666_v29, %s4145_s26  ;;  %2669 = vrot.lane.b32.xlu0 %v2665_v31, %s4146_s0  ;;  %s5122_s0 = sld [smem:[#allocation24_spill]]  ;;  %s3839_s26 = sshll.u32 %s4148_s11, 4  ;;  %s3840_s26 = int_to_ptr.vmem [resolvable:$false] %s3839_s26 }
 0x63f   : > { %3452 = vmatprep.subr.mxu0 %v4136_v0  ;;  %p3842_p5 = scmp.lt.s32.totalorder %s3030_s29, %s3840_s26 }
 0x640   : > { %3453 = vmatpush3.msra.mxu0 %v2894_v55 }
 0x641   : > { %3454 = vmatprep.subr.mxu0 %v4136_v0 }
 0x642   : > { %2677 = vrot.lane.b32.xlu1 %v2667_v5, %s4147_s30  ;;  %3455 = vmatpush3.msra.mxu0 %v2893_v47 }
 0x643   : > { %3456 = vmatprep.subr.mxu0 %v4136_v0 }
 0x644   : > { %3457 = vmatpush3.msra.mxu0 %v2892_v57 }
 0x645   : > { %3458 = vmatprep.subr.mxu0 %v4136_v0 }
 0x646   : > { %3459 = vmatpush3.msra.mxu0 %v2891_v58 }
 0x647   : > { %3460 = vmatprep.subr.mxu0 %v4136_v0 }
 0x648   : > { %3461 = vmatpush3.msra.mxu0 %v2890_v56 }
 0x649   : > { %3462 = vmatprep.subr.mxu0 %v4136_v0 }
 0x64a   : > { %3463 = vmatpush3.msra.mxu0 %v2889_v20 }
 0x6b0   : > { %v2674_v38 = vpop.permute.xlu1 %2673  ;;  %v2670_v33 = vpop.permute.xlu0 %2669 }
 0x6b1   : > { %v2680_v3 = vsel %vm1162_vm2, %v2664_v32, %v2670_v33 }
 0x6b2   : > { %v2682_v35 = vsel %vm2681_vm5, %v2680_v3, %v2674_v38 }
 0x6b4   : > { %v2678_v36 = vpop.permute.xlu1 %2677 }
 0x6b5   : > { %v2684_v23 = vsel %vm2683_vm6, %v2682_v35, %v2678_v36 }
 0x6b6   : > { %3419 = vmatmul.mubr.msk.f32.vlgmr.msra.gmra.mxu1 %vm599_vm1, %v2684_v23 }
 0x6b7   : > { %3429 = vmatprep.mubr.msk.f32.mxu1 %vm4137_vm0, %v4136_v0  ;;  %3422 = vmatpush3.msra.mxu1 %v2803_v46 }
 0x6b8   : > { %3423 = vmatprep.subr.mxu1 %v4136_v0 }
 0x6b9   : > { %3424 = vmatpush3.msra.mxu1 %v2802_v48 }
 0x6ba   : > { %3425 = vmatprep.subr.mxu1 %v4136_v0 }
 0x6bb   : > { %3426 = vmatpush3.msra.mxu1 %v2801_v1 }
 0x6bc   : > { %3427 = vmatprep.subr.mxu1 %v4136_v0  ;;  %v3215_v0 = vld [vmem:[%s5055_s14] ss:$0 sm:$0xff] }
 0x776   : > { %v2765_v4 = vpop.f32.mrf.mxu1 }
 0x777   : > { %v2766_v34 = vadd.f32 %v3209_v45, %v2765_v4  ;;  %v3216_v45 = vld [vmem:[%s5122_s0] ss:$0 sm:$0xff]  ;;  %s3841_s0 = scalar_lea.vmem %s3840_s26, 256 }
 0x778   : > { %v3420_v2 = vpop.f32.mrf.mxu1  ;;  %p3843_p6 = scmp.lt.s32.totalorder %s3841_s0, %s3835_s18 }
 0x779   : > { %v2769_v37 = vadd.f32 %v2766_v34, %v4377_v7  ;;  %v2800_v7 = vld [vmem:[#allocation4] sm:$0xff] }
 0x77a   : > { %3428 = vmatpush3.msra.mxu1 %v2800_v7  ;;  %v3217_v34 = vld [vmem:[%s5123_s19] ss:$0 sm:$0xff]  ;;  %p3844_p7 = por %p3843_p6, %p3842_p5 }
 0x77b   : > { %v2770_v39 = vsel %vm599_vm1, %v2769_v37, 0.0 }
 0x77c   : > { %2771 = vadd.xlane.f32.xlu1 %v2770_v39  ;;  %p3845_p9 = pnand %p3844_p7, %p3838_p4 }
 0x805   : > { %v2772_v40 = vpop.xlane.xlu1 %2771 }
 0x806   : > { %v2774_v41 = vmul.f32 0.03125, %v2772_v40 }
 0x808   : > { %v2775_v42 = vsub.f32 %v2769_v37, %v2774_v41 }
 0x80a   : > { %v2776_v43 = vmul.f32 %v2775_v42, %v2775_v42 }
 0x80c   : > { %v2777_v44 = vsel %vm599_vm1, %v2776_v43, 0.0 }
 0x80d   : > { %2778 = vadd.xlane.f32.xlu0 %v2777_v44 }
 0x896   : > { %v2779_v52 = vpop.xlane.xlu0 %2778 }
 0x897   : > { %v2780_v18 = vmul.f32 0.03125, %v2779_v52 }
 0x899   : > { %v2781_v59 = vadd.f32 1e-05, %v2780_v18 }
 0x89b   : > { %3803 = vrsqrt.f32 %v2781_v59 }
 0x8a8   : > { %v3804_v63 = vpop.eup %3803 }
 0x8a9   : > { %v2783_v17 = vmul.f32 %v3804_v63, %v2775_v42 }
 0x8ab   : > { %v2791_v61 = vmul.f32 %v3211_v60, %v2783_v17 }
 0x8ad   : > { %v2799_v15 = vadd.f32 %v3212_v16, %v2791_v61 }
 0x8af   : > { %3430 = vmatmul.mubr.msk.f32.vlgmr.msra.gmra.mxu1 %vm599_vm1, %v2799_v15 }
 0x96f   : > { %v2880_v30 = vpop.f32.mrf.mxu1 }
 0x970   : > { %v2881_v10 = vadd.f32 %v3213_v21, %v2880_v30 }
 0x971   : > { %v3431_v22 = vpop.f32.mrf.mxu1 }
 0x972   : > { %v2885_v8 = vmul.f32 0.70710677, %v2881_v10  ;;  %v2884_v9 = vmul.f32 0.5, %v2881_v10 }
 0x974   : > { %3805 = verf.f32 %v2885_v8 }
 0x981   : > { %v3806_v19 = vpop.eup %3805 }
 0x982   : > { %v2887_v24 = vadd.f32 1.0, %v3806_v19 }
 0x984   : > { %v2888_v25 = vmul.f32 %v2887_v24, %v2884_v9 }
 0x986   : > { %3465 = vmatmul.mubr.f32.vlgmr.msra.gmra.mxu0 %v2888_v25 }
 0xa46   : > { %v2978_v6 = vpop.f32.mrf.mxu0 }
 0xa47   : > { %v2979_v26 = vadd.f32 %v3215_v0, %v2978_v6 }
 0xa48   : > { %v3466_v27 = vpop.f32.mrf.mxu0 }
 0xa49   : > { %v2982_v28 = vadd.f32 %v2979_v26, %v2799_v15 }
 0xa4b   : > { %v2983_v29 = vsel %vm599_vm1, %v2982_v28, 0.0 }
 0xa4c   : > { %2984 = vadd.xlane.f32.xlu0 %v2983_v29 }
 0xad5   : > { %v2985_v31 = vpop.xlane.xlu0 %2984 }
 0xad6   : > { %v2986_v5 = vmul.f32 0.03125, %v2985_v31 }
 0xad8   : > { %v2987_v32 = vsub.f32 %v2982_v28, %v2986_v5 }
 0xada   : > { %v2988_v38 = vmul.f32 %v2987_v32, %v2987_v32 }
 0xadc   : > { %v2989_v33 = vsel %vm599_vm1, %v2988_v38, 0.0 }
 0xadd   : > { %2990 = vadd.xlane.f32.xlu0 %v2989_v33 }
 0xb66   : > { %v2991_v3 = vpop.xlane.xlu0 %2990 }
 0xb67   : > { %v2992_v35 = vmul.f32 0.03125, %v2991_v3 }
 0xb69   : > { %v2993_v36 = vadd.f32 1e-05, %v2992_v35 }
 0xb6b   : > { %3807 = vrsqrt.f32 %v2993_v36 }
 0xb78   : > { %v3808_v23 = vpop.eup %3807 }
 0xb79   : > { %v2995_v4 = vmul.f32 %v3808_v23, %v2987_v32 }
 0xb7b   : > { %v3003_v2 = vmul.f32 %v3216_v45, %v2995_v4 }
 0xb7d   : > { %v3011_v37 = vadd.f32 %v3217_v34, %v3003_v2 }
 0xb7f   : > { %3012 = vst.msk [vmem:[%s578_s16] sm:$0xff] %vm599_vm1, %v3011_v37 }
 0xb80   : > { %3848 = shalt.err (!%p3845_p9)
}
 0xb81   : > { %s3849_s30 = scalar_lea.hbm %s3027_s3, 128  ;;  %s3853_s20 = scalar_lea.hbm %s5125_s2, 512 }
 0xb82   : > { %p3850_p11 = scmp.ne.s32.totalorder %s3027_s3, %s3849_s30  ;;  %p3854_p12 = scmp.lt.s32.totalorder %s3027_s3, %s5125_s2 }
 0xb83   : > { %p3855_p0 = scmp.lt.s32.totalorder %s3853_s20, %s3849_s30 }
 0xb84   : > { %p3851_p13 = pnand %p3850_p11, %p4291_p3 }
 0xb85   : > { %p3856_p1 = por %p3855_p0, %p3854_p12 }
 0xb86   : > { %p3852_p10 = pneg %p3851_p13 }
 0xb88   : > { %p3857_p2 = pnand %p3856_p1, %p3852_p10 }
 0xb8a   : > { %3860 = shalt.err (!%p3857_p2)
}
 0xb8b   : > { %3471 = dma.vmem_to_hbm [thread:$0]  (%p4291_p3), %s3030_s29, 128, %s3027_s3, %s3014_s21  }
 0xb8c PF: > { %s5127_s1 = sld [smem:[#allocation14_spill]] }
 0xb8d   : > { %s5128_s24 = sld [smem:[#allocation10_spill]] }
 0xb92   : > { %p3483_p4 = scmp.ge.s32.totalorder %s5127_s1, 2 }
 0xb93   : > { %s3041_s27 = sand.u32 1, %s5128_s24  }
 0xb94   : > { %p3478_p5 = pnand %p3483_p4, %p4300_p8  ;;  %s3042_s18 = scalar_lea.sflag [#allocation6], %s3041_s27 }
 0xb96   : > { %p3479_p6 = pneg %p3478_p5 }
 0xb98   : > { %3998 = dma.done.wait (%p3479_p6), %s3042_s18, 128  }
 0xb99   : > { %4000 = vsyncadd (%p3479_p6), %s3042_s18, 4294967168  ;;  %s31_s30 = sadd.s32 1, %s5127_s1   ;;  %s5130_s11 = sld [smem:[#allocation11_spill]] }
 0xb9a   : > { %p28_p7 = scmp.ge.s32.totalorder %s31_s30, 6   ;;  %s5131_s26 = sld [smem:[#allocation18_spill]] }
 0xb9b   : > { %s5132_s27 = sld [smem:[#allocation12_spill]]  ;;  %s5136_s24 = smov %s4007_s25 }
 0xb9c   : > { %s5133_s28 = sld [smem:[#allocation13_spill]]  ;;  %30 = sbr.rel (!%p28_p7) target bundleno = 15 (0xf), region = 150 }
 0xb9d   : > { %s5134_s29 = sld [smem:[#allocation15_spill]] }
 0xb9e   : > { %s5135_s0 = sld [smem:[#allocation16_spill]] }
 0xb9f   : > { %s5137_s25 = smov %s5130_s11 }
 0xba1   :  { %3047 = vsyncpa [#allocation5], 1 }
 0xba2   :  { %3049 = vsyncpa [#allocation5 + $0x1], 1 }
 0xba3   :  { %3050 = vsyncpa [#allocation6], 1 }
 0xba4   :  { %3052 = vsyncpa [#allocation6 + $0x1], 1 }

// kernel: tpu_custom_call.1
= control target key start
LH: loop header
LB: loop body
LE: loop exit
PB: predicated region body
PF: predicated region fallthrough
CT: control target
= control target key end

     0   :  { %s5041_s0 = inlined_call_operand.vmem [shape: f32[2,16,32], index: 0, kind: input, shape index: {}]   ;;  %s5042_s1 = inlined_call_operand.vmem [shape: f32[32,32], index: 1, kind: input, shape index: {}]   ;;  %s5043_s2 = inlined_call_operand.vmem [shape: f32[32,32], index: 2, kind: input, shape index: {}]   ;;  %s5044_s3 = inlined_call_operand.vmem [shape: f32[32,32], index: 3, kind: input, shape index: {}]   ;;  %s5045_s4 = inlined_call_operand.vmem [shape: f32[1,32], index: 4, kind: input, shape index: {}]   ;;  %s5046_s5 = inlined_call_operand.vmem [shape: f32[1,32], index: 5, kind: input, shape index: {}]   ;;  %s5047_s6 = inlined_call_operand.vmem [shape: f32[1,32], index: 6, kind: input, shape index: {}]   ;;  %s5048_s7 = inlined_call_operand.vmem [shape: f32[32,32], index: 7, kind: input, shape index: {}]   ;;  %s5049_s8 = inlined_call_operand.vmem [shape: f32[1,32], index: 8, kind: input, shape index: {}]   ;;  %s5050_s9 = inlined_call_operand.vmem [shape: f32[1,32], index: 9, kind: input, shape index: {}]   ;;  %s5051_s10 = inlined_call_operand.vmem [shape: f32[1,32], index: 10, kind: input, shape index: {}]   ;;  %s5052_s11 = inlined_call_operand.hbm [shape: f32[32,128], index: 11, kind: input, shape index: {}]   ;;  %s5053_s12 = inlined_call_operand.vmem [shape: f32[1,128], index: 12, kind: input, shape index: {}]   ;;  %s5054_s13 = inlined_call_operand.vmem [shape: f32[128,32], index: 13, kind: input, shape index: {}]   ;;  %s5055_s14 = inlined_call_operand.vmem [shape: f32[1,32], index: 14, kind: input, shape index: {}]   ;;  %s5056_s15 = inlined_call_operand.vmem [shape: f32[1,32], index: 15, kind: input, shape index: {}]   ;;  %s5057_s16 = inlined_call_operand.vmem [shape: f32[1,32], index: 16, kind: input, shape index: {}]   ;;  %s5058_s17 = inlined_call_operand.hbm [shape: f32[2,16,32], index: 17, kind: output, shape index: {}]  }
   0x1   :  { %5071 = sst [smem:[#allocation19_spill]] %s5041_s0 }
   0x2   :  { %5072 = sst [smem:[#allocation20_spill]] %s5042_s1 }
   0x3   :  { %5073 = sst [smem:[#allocation21_spill]] %s5043_s2 }
   0x4   :  { %5074 = sst [smem:[#allocation22_spill]] %s5044_s3 }
   0x5   :  { %5075 = sst [smem:[#allocation23_spill]] %s5052_s11 }
   0x6   :  { %5076 = sst [smem:[#allocation24_spill]] %s5056_s15 }
   0x7   :  { %5077 = sst [smem:[#allocation25_spill]] %s5057_s16 }
   0x8   :  { %5078 = sst [smem:[#allocation26_spill]] %s5058_s17 }
   0x9   :  { %22 = vsyncpa [#allocation5], 0 }
   0xa   :  { %23 = vsyncpa [#allocation6], 0 }
   0xb   :  { %25 = vsyncpa [#allocation6 + $0x1], 0  ;;  %s4239_s24 = smov 0   ;;  %s4241_s25 = smov 0  }
   0xc   :  { %s4243_s26 = smov 0   ;;  %s4245_s27 = smov 0  }
   0xd   :  { %s4247_s28 = smov 0   ;;  %s4249_s29 = smov 0  }
   0xe   :  { %s4251_s0 = smov 0   ;;  %s4253_s30 = smov 0  }
   0xf LB: > { %5079 = sst [smem:[#allocation10_spill]] %s4003_s24  ;;  %s3168_s18 = sadd.s32 4294967295, %s4031_s30   ;;  %s4031_s30 = sphi %s4253_s30, %s31_s30   ;;  %s4027_s0 = sphi %s4251_s0, %s5135_s0   ;;  %s4023_s29 = sphi %s4249_s29, %s5134_s29   ;;  %s4019_s28 = sphi %s4247_s28, %s5133_s28   ;;  %s4015_s27 = sphi %s4245_s27, %s5132_s27   ;;  %s4011_s26 = sphi %s4243_s26, %s5131_s26   ;;  %s4007_s25 = sphi %s4241_s25, %s5137_s25   ;;  %s4003_s24 = sphi %s4239_s24, %s5136_s24  }
  0x10   : > { %5080 = sst [smem:[#allocation11_spill]] %s4011_s26  ;;  %s3169_s19 = sadd.s32 4294967294, %s4031_s30  }
  0x11   : > { %5081 = sst [smem:[#allocation12_spill]] %s4023_s29  ;;  %s40_s1 = sadd.s32 1, %s4023_s29 }
  0x12   : > { %5082 = sst [smem:[#allocation13_spill]] %s4027_s0  ;;  %s43_s20 = sadd.s32 1, %s4027_s0 }
  0x13   : > { %5083 = sst [smem:[#allocation14_spill]] %s4031_s30  ;;  %p41_p0 = scmp.ge.s32.totalorder %s40_s1, 2 }
  0x14   : > { %s416_s21 = sadd.s32 1, %s4011_s26  ;;  %p426_p1 = scmp.ne.s32.totalorder %s4011_s26, %s4007_s25 }
  0x15   : > { %p427_p2 = scmp.eq.s32.totalorder %s3168_s18, 3  ;;  %s5139_s1 = smov (%p41_p0, %s40_s1), 0 }
  0x16   : > { %5084 = sst [smem:[#allocation15_spill]] %s5139_s1  ;;  %s5141_s20 = smov (!%p41_p0, %s43_s20), %s4027_s0 }
  0x17   : > { %s412_s22 = ssub.s32 %s4023_s29, %s5139_s1  ;;  %p4291_p3 = por %p427_p2, %p426_p1 }
  0x18   : > { %p45_p4 = scmp.ge.s32.totalorder %s5141_s20, 2  ;;  %p432_p5 = scmp.ne.s32.totalorder %s4007_s25, %s4003_s24 }
  0x19   : > { %p433_p6 = scmp.eq.s32.totalorder %s3169_s19, 3  ;;  %p3170_p7 = scmp.ge.s32.totalorder %s4031_s30, 1 }
  0x1a   : > { %s5143_s20 = smov (%p45_p4, %s5141_s20), 0  ;;  %p440_p9 = scmp.lt.s32.totalorder %s4031_s30, 5 }
  0x1b   : > { %5086 = sst [smem:[#allocation16_spill]] %s5143_s20  ;;  %p4300_p8 = por %p433_p6, %p432_p5 }
  0x1c   : > { %s411_s16 = ssub.s32 %s4027_s0, %s5143_s20  ;;  %p4307_p10 = pnand %p3170_p7, %p440_p9 }
  0x1d   : > { %s5087_s17 = scalar_select %p4300_p8, 1, 0 }
  0x1e   : > { %s413_s15 = sor.u32 %s412_s22, %s411_s16  ;;  %p4311_p12 = scmp.eq.s32.totalorder %s3168_s18, 0 }
  0x1f   : > { %5088 = sst [smem:[#allocation17_spill]] %s5087_s17  ;;  %p414_p11 = scmp.eq.s32.totalorder %s413_s15, 0 }
  0x20   : > { %p3473_p13 = pneg %p4307_p10  ;;  %s4133_s24 = smov [#allocation4]  }
  0x21   : > { %s4318_s19 = scalar_select %p414_p11, %s4011_s26, %s416_s21  }
  0x22   : > { %s482_s17 = sshll.u32 %s4133_s24, 4  ;;  %p4322_p0 = pnand %p4311_p12, %p3473_p13  ;;  %s483_s17 = int_to_ptr.vmem [resolvable:$true] %s482_s17 }
  0x23   : > { %5091 = sst [smem:[#allocation18_spill]] %s4318_s19  ;;  %s3820_s15 = scalar_lea.vmem %s483_s17, 512 }
  0x24   : > { %p3811_p1 = pneg %p4322_p0  ;;  %p3821_p2 = scmp.ne.s32.totalorder %s483_s17, %s3820_s15 }
  0x25   : > { %p3828_p6 = scmp.lt.s32.totalorder %s483_s17, %s483_s17  ;;  %p3829_p7 = scmp.lt.s32.totalorder %s3820_s15, %s3820_s15 }
  0x26   : > { %p3823_p4 = pnand %p3821_p2, %p3811_p1 }
  0x27   : > { %p3830_p9 = por %p3829_p7, %p3828_p6 }
  0x28   : > { %p3824_p5 = pneg %p3823_p4 }
  0x2a   : > { %p3831_p11 = pnand %p3830_p9, %p3824_p5 }
  0x2c   : > { %3834 = shalt.err (!%p3831_p11)
}
  0x2d   : > { %s4134_s18 = smov 128   ;;  %s4135_s24 = smov 8  }
  0x2e   : > { %s5093_s11 = sld [smem:[#allocation23_spill]] }
  0x30   : > { %524 = sbr.rel (%p4307_p10) target bundleno = 2956 (0xb8c), region = 88 }
  0x34   : > { %3476 = dma.hbm_to_vmem [thread:$0]  (!%p4322_p0), %s5093_s11, 512, %s483_s17, [#allocation5], %s4134_s18, %s4134_s18, %s4135_s24  }
  0x35   : > { %3994 = dma.done.wait (%p4311_p12), [#allocation5], 512  }
  0x36   : > { %3996 = vsyncadd (%p4311_p12), [#allocation5], 4294966784  ;;  %s5065_s16 = sand.u32 1, %s4007_s25   ;;  %p579_p13 = scmp.lt.s32.totalorder %s4019_s28, 1  ;;  %v4136_v0 = vmov 0.0   ;;  %vm4137_vm0 = vmmov 0   ;;  %v851_v30 = vlaneseq }
  0x37   : > { %s4343_s15 = sshll.u32 %s5065_s16, 3  ;;  %3297 = vmatprep.subr.mxu0 %v4136_v0  ;;  %3305 = vmatprep.mubr.msk.f32.mxu0 %vm4137_vm0, %v4136_v0  ;;  %p581_p10 = scmp.lt.s32.totalorder %s4015_s27, 1  ;;  %vm599_vm1 = vcmask 261120   ;;  %v3178_v14 = vld [vmem:[%s5045_s4] ss:$0 sm:$0xff]  ;;  %vm1162_vm2 = vcmask 64512  }
  0x38   : > { %3308 = vmatprep.subr.mxu1 %v4136_v0  ;;  %3316 = vmatprep.mubr.msk.f32.mxu1 %vm4137_vm0, %v4136_v0  ;;  %s580_s17 = scalar_select %p579_p13, %s4019_s28, 1  ;;  %v3182_v20 = vld [vmem:[%s5047_s6] ss:$0 sm:$0xff]  ;;  %v4141_v28 = vmov 1983009808   ;;  %v4423_v34 = vshrl.u32 %v851_v30, 7 }
  0x39   : > { %s582_s29 = scalar_select %p581_p10, %s4015_s27, 1  ;;  %v3180_v25 = vld [vmem:[%s5046_s5] ss:$0 sm:$0xff]  ;;  %v849_v29 = vunpack.c.l.s4 %v4141_v28  ;;  %v4142_v31 = vmov 1934713408  }
  0x3a   : > { %s3176_s1 = sshll.u32 %s580_s17, 1  ;;  %s5094_s22 = sld [smem:[#allocation20_spill]]  ;;  %v881_v32 = vunpack.c.l.s4 %v4142_v31 }
  0x3b   : > { %s584_s18 = sadd.s32 %s3176_s1, %s582_s29  ;;  %s5095_s17 = sld [smem:[#allocation19_spill]]  ;;  %v850_v33 = vunpack.c.0.s8 %v849_v29 }
  0x3c   : > { %s3177_s20 = sshll.u32 %s584_s18, 3  ;;  %s5096_s2 = sld [smem:[#allocation21_spill]]  ;;  %v882_v37 = vunpack.c.0.s8 %v881_v32 }
  0x3d   : > { %s5097_s3 = sld [smem:[#allocation22_spill]]  ;;  %s4138_s0 = smov 120   ;;  %v4426_v38 = vsub.s32 %v850_v33, %v4423_v34 }
  0x3e   : > { %s4139_s19 = smov 104   ;;  %v4429_v45 = vsub.s32 %v882_v37, %v4423_v34  ;;  %s3188_s24 = sshll.u32 %s4015_s27, 5 }
  0x3f   : > { %s4462_s21 = scalar_lea.vmem [#allocation3], %s3188_s24  ;;  %s4486_s11 = scalar_lea.vmem [#allocation2], %s3188_s24 }
  0x40   : > { %v591_v1 = vld [vmem:[%s5094_s22 + $0x18] sm:$0xff]  ;;  %v590_v2 = vld [vmem:[%s5094_s22 + $0x10] sm:$0xff]  ;;  %v589_v3 = vld [vmem:[%s5094_s22 + $0x8] sm:$0xff]  ;;  %s578_s16 = scalar_lea.vmem [#allocation7], %s4343_s15  ;;  %p3189_p12 = scmp.le.s32.totalorder %s4015_s27, 0 }
  0x41   : > { %3298 = vmatpush3.msra.mxu0 %v591_v1  ;;  %s586_s29 = scalar_lea.vmem %s5095_s17, %s3177_s20  ;;  %v588_v6 = vld [vmem:[%s5094_s22] sm:$0xff]  ;;  %s4140_s17 = smov 112  }
  0x42   : > { %3299 = vmatprep.subr.mxu0 %v4136_v0  ;;  %v676_v4 = vld [vmem:[%s5096_s2 + $0x18] sm:$0xff]  ;;  %v675_v5 = vld [vmem:[%s5096_s2 + $0x10] sm:$0xff]  ;;  %v4377_v7 = vld [vmem:[%s586_s29] sm:$0xff]  ;;  %s4546_s18 = smov (!%p3189_p12), 0  }
  0x43   : > { %3300 = vmatpush3.msra.mxu0 %v590_v2  ;;  %3309 = vmatpush3.msra.mxu1 %v676_v4  ;;  %v757_v8 = vld [vmem:[%s5097_s3 + $0x18] sm:$0xff]  ;;  %v674_v9 = vld [vmem:[%s5096_s2 + $0x8] sm:$0xff]  ;;  %v756_v10 = vld [vmem:[%s5097_s3 + $0x10] sm:$0xff] }
  0x44   : > { %3301 = vmatprep.subr.mxu0 %v4136_v0  ;;  %3310 = vmatprep.subr.mxu1 %v4136_v0  ;;  %v673_v11 = vld [vmem:[%s5096_s2] sm:$0xff]  ;;  %v755_v12 = vld [vmem:[%s5097_s3 + $0x8] sm:$0xff] }
  0x45   : > { %3302 = vmatpush3.msra.mxu0 %v589_v3  ;;  %3311 = vmatpush3.msra.mxu1 %v675_v5  ;;  %v754_v13 = vld [vmem:[%s5097_s3] sm:$0xff] }
  0x46   : > { %3303 = vmatprep.subr.mxu0 %v4136_v0  ;;  %3312 = vmatprep.subr.mxu1 %v4136_v0 }
  0x47   : > { %3304 = vmatpush3.msra.mxu0 %v588_v6  ;;  %3313 = vmatpush3.msra.mxu1 %v674_v9 }
  0x48   : > { %3306 = vmatmul.mubr.msk.f32.vlgmr.msra.gmra.mxu0 %vm599_vm1, %v4377_v7  ;;  %3319 = vmatprep.subr.mxu0 %v4136_v0 }
  0x49   : > { %3320 = vmatpush3.msra.mxu0 %v757_v8  ;;  %3327 = vmatprep.mubr.msk.f32.mxu0 %vm4137_vm0, %v4136_v0 }
  0x4a   : > { %3321 = vmatprep.subr.mxu0 %v4136_v0  ;;  %3314 = vmatprep.subr.mxu1 %v4136_v0 }
  0x4b   : > { %3322 = vmatpush3.msra.mxu0 %v756_v10  ;;  %3315 = vmatpush3.msra.mxu1 %v673_v11 }
  0x4c   : > { %3323 = vmatprep.subr.mxu0 %v4136_v0  ;;  %3317 = vmatmul.mubr.msk.f32.vlgmr.msra.gmra.mxu1 %vm599_vm1, %v4377_v7 }
  0x4d   : > { %3324 = vmatpush3.msra.mxu0 %v755_v12 }
  0x4e   : > { %3325 = vmatprep.subr.mxu0 %v4136_v0 }
  0x4f   : > { %3326 = vmatpush3.msra.mxu0 %v754_v13 }
  0x50   : > { %3328 = vmatmul.mubr.msk.f32.vlgmr.msra.gmra.mxu0 %vm599_vm1, %v4377_v7 }
 0x108   : > { %v669_v15 = vpop.f32.mrf.mxu0 }
 0x109   : > { %v670_v16 = vadd.f32 %v3178_v14, %v669_v15 }
 0x10a   : > { %v3307_v17 = vpop.f32.mrf.mxu0 }
 0x10b   : > { %v835_v18 = vmul.f32 0.35355338, %v670_v16 }
 0x10c   : > { %v750_v19 = vpop.f32.mrf.mxu1 }
 0x10d   : > { %837 = vrot.lane.b32.xlu1 %v835_v18, %s4138_s0  ;;  %v751_v26 = vadd.f32 %v3180_v25, %v750_v19 }
 0x10e   : > { %v3318_v21 = vpop.f32.mrf.mxu1 }
 0x110   : > { %v831_v22 = vpop.f32.mrf.mxu0 }
 0x111   : > { %v832_v23 = vadd.f32 %v3182_v20, %v831_v22 }
 0x112   : > { %v3329_v24 = vpop.f32.mrf.mxu0 }
 0x113   : > { %1021 = vrot.lane.b32.xlu1 %v832_v23, %s4139_s19  ;;  %1015 = vrot.lane.b32.xlu0 %v832_v23, %s4138_s0 }
 0x117   : > { %843 = vrot.lane.b32.xlu1 %v835_v18, %s4139_s19  ;;  %1018 = vrot.lane.b32.xlu0 %v832_v23, %s4140_s17 }
 0x11b   : > { %840 = vrot.lane.b32.xlu0 %v835_v18, %s4140_s17 }
 0x139   : > { %982 = vxpose.xlu0.b32.start.end [1/1] (short) (narrow) %v751_v26, 32 }
 0x17f   : > { %v838_v27 = vpop.permute.xlu1 %837 }
 0x185   : > { %v1022_v35 = vpop.permute.xlu1 %1021  ;;  %v1016_v36 = vpop.permute.xlu0 %1015 }
 0x186   : > { %v1040_v39 = vcombine.low %v1016_v36, %v1022_v35  ;;  %v1041_v40 = vcombine.high %v1016_v36, %v1022_v35 }
 0x188   : > { %v1048_v46 = vrot.slane %v1040_v39, %v4426_v38  ;;  %v1055_v47 = vrot.slane %v1041_v40, %v4426_v38 }
 0x189   : > { %v1019_v41 = vpop.permute.xlu0 %1018  ;;  %v844_v42 = vpop.permute.xlu1 %843 }
 0x18a   : > { %v1024_v43 = vcombine.low %v832_v23, %v1019_v41  ;;  %v1025_v44 = vcombine.high %v832_v23, %v1019_v41  ;;  %v862_v50 = vcombine.low %v838_v27, %v844_v42  ;;  %v863_v51 = vcombine.high %v838_v27, %v844_v42 }
 0x18c   : > { %v1032_v48 = vrot.slane %v1024_v43, %v4426_v38  ;;  %v1039_v49 = vrot.slane %v1025_v44, %v4426_v38  ;;  %v870_v63 = vrot.slane %v862_v50, %v4426_v38  ;;  %v877_v1 = vrot.slane %v863_v51, %v4426_v38 }
 0x18d   : > { %v841_v52 = vpop.permute.xlu0 %840 }
 0x18e   : > { %v1056_v53 = vcombine.low %v1032_v48, %v1048_v46  ;;  %v1057_v54 = vcombine.high %v1032_v48, %v1048_v46  ;;  %v1072_v55 = vcombine.low %v1039_v49, %v1055_v47  ;;  %v1073_v56 = vcombine.high %v1039_v49, %v1055_v47 }
 0x18f   : > { %v846_v57 = vcombine.low %v835_v18, %v841_v52  ;;  %v847_v58 = vcombine.high %v835_v18, %v841_v52 }
 0x190   : > { %v1064_v59 = vrot.slane %v1056_v53, %v4429_v45  ;;  %v1071_v60 = vrot.slane %v1057_v54, %v4429_v45  ;;  %v1080_v61 = vrot.slane %v1072_v55, %v4429_v45  ;;  %v1087_v62 = vrot.slane %v1073_v56, %v4429_v45 }
 0x191   : > { %v854_v2 = vrot.slane %v846_v57, %v4426_v38  ;;  %v861_v3 = vrot.slane %v847_v58, %v4426_v38 }
 0x192   : > { %v1092_v4 = vcombine.low %v1064_v59, %v1071_v60  ;;  %v3186_v5 = vcombine.high %v1064_v59, %v1071_v60  ;;  %v1108_v6 = vcombine.low %v1080_v61, %v1087_v62  ;;  %v3187_v8 = vcombine.high %v1080_v61, %v1087_v62 }
 0x193   : > { %v878_v9 = vcombine.low %v854_v2, %v870_v63  ;;  %v879_v10 = vcombine.high %v854_v2, %v870_v63  ;;  %v894_v11 = vcombine.low %v861_v3, %v877_v1  ;;  %v895_v12 = vcombine.high %v861_v3, %v877_v1 }
 0x194   : > { %v1099_v13 = vrot.slane %v1092_v4, %v4426_v38  ;;  %v1107_v14 = vrot.slane %v3186_v5, %v4426_v38  ;;  %v1115_v15 = vrot.slane %v1108_v6, %v4426_v38  ;;  %v1123_v16 = vrot.slane %v3187_v8, %v4426_v38 }
 0x195   : > { %v886_v17 = vrot.slane %v878_v9, %v4429_v45  ;;  %v893_v18 = vrot.slane %v879_v10, %v4429_v45  ;;  %v902_v19 = vrot.slane %v894_v11, %v4429_v45  ;;  %v909_v20 = vrot.slane %v895_v12, %v4429_v45 }
 0x196   : > { %v1124_v21 = vcombine.low %v1099_v13, %v1107_v14  ;;  %v1125_v22 = vcombine.high %v1099_v13, %v1107_v14  ;;  %v1140_v23 = vcombine.low %v1115_v15, %v1123_v16  ;;  %v1141_v24 = vcombine.high %v1115_v15, %v1123_v16 }
 0x197   : > { %v914_v25 = vcombine.low %v886_v17, %v893_v18  ;;  %v3184_v26 = vcombine.high %v886_v17, %v893_v18  ;;  %v930_v27 = vcombine.low %v902_v19, %v909_v20  ;;  %v3185_v28 = vcombine.high %v902_v19, %v909_v20 }
 0x198   : > { %v1132_v29 = vrot.slane %v1124_v21, %v4429_v45  ;;  %v1139_v31 = vrot.slane %v1125_v22, %v4429_v45  ;;  %v1148_v32 = vrot.slane %v1140_v23, %v4429_v45  ;;  %v1155_v33 = vrot.slane %v1141_v24, %v4429_v45 }
 0x199   : > { %v921_v35 = vrot.slane %v914_v25, %v4426_v38  ;;  %v929_v36 = vrot.slane %v3184_v26, %v4426_v38  ;;  %v937_v37 = vrot.slane %v930_v27, %v4426_v38  ;;  %v945_v39 = vrot.slane %v3185_v28, %v4426_v38 }
 0x19a   : > { %v1156_v40 = vcombine.low %v1132_v29, %v1148_v32  ;;  %v1157_v41 = vcombine.high %v1132_v29, %v1148_v32  ;;  %v1158_v42 = vcombine.low %v1139_v31, %v1155_v33  ;;  %v1159_v43 = vcombine.high %v1139_v31, %v1155_v33 }
 0x19b   : > { %v946_v44 = vcombine.low %v921_v35, %v929_v36  ;;  %v947_v46 = vcombine.high %v921_v35, %v929_v36  ;;  %v962_v47 = vcombine.low %v937_v37, %v945_v39  ;;  %v963_v48 = vcombine.high %v937_v37, %v945_v39 }
 0x19c   : > { %1168 = vst.msk [vmem:[%s4462_s21] sm:$0xff] %vm1162_vm2, %v1156_v40  ;;  %1169 = vst.msk [vmem:[%s4462_s21 + $0x8] sm:$0xff] %vm1162_vm2, %v1157_v41  ;;  %v4498_v61 = vmov 0.0   ;;  %v4500_v62 = vmov 0.0   ;;  %v4502_v63 = vmov 0.0   ;;  %v4504_v1 = vmov 0.0  }
 0x19d   : > { %1170 = vst.msk [vmem:[%s4462_s21 + $0x10] sm:$0xff] %vm1162_vm2, %v1158_v42  ;;  %1171 = vst.msk [vmem:[%s4462_s21 + $0x18] sm:$0xff] %vm1162_vm2, %v1159_v43  ;;  %v954_v49 = vrot.slane %v946_v44, %v4429_v45  ;;  %v961_v50 = vrot.slane %v947_v46, %v4429_v45  ;;  %v970_v51 = vrot.slane %v962_v47, %v4429_v45  ;;  %v4506_v2 = vmov 0.0  }
 0x19e   : > { %v977_v52 = vrot.slane %v963_v48, %v4429_v45  ;;  %v4508_v3 = vmov 0.0   ;;  %v4510_v4 = vmov 0.0   ;;  %v4512_v5 = vmov 0.0  }
 0x19f   : > { %v4476_v53 = vcombine.low %v954_v49, %v970_v51  ;;  %v4478_v54 = vcombine.high %v954_v49, %v970_v51  ;;  %v4514_v6 = vmov -1e+30   ;;  %v4516_v8 = vmov -1e+30  }
 0x1a0   : > { %v4480_v55 = vcombine.low %v961_v50, %v977_v52  ;;  %v4482_v56 = vcombine.high %v961_v50, %v977_v52  ;;  %v4518_v9 = vmov -1e+30   ;;  %v4520_v10 = vmov -1e+30  }
 0x1b5   : > { %v998_v57 = vpop.trf.xlu0 }
 0x1b6   : > { %1163 = vst.msk [vmem:[%s4486_s11] sm:$0xff] %vm1162_vm2, %v998_v57 }
 0x1b9   : > { %v999_v58 = vpop.trf.xlu0 }
 0x1ba   : > { %1164 = vst.msk [vmem:[%s4486_s11 + $0x8] sm:$0xff] %vm1162_vm2, %v999_v58 }
 0x1bd   : > { %v1000_v59 = vpop.trf.xlu0 }
 0x1be   : > { %1165 = vst.msk [vmem:[%s4486_s11 + $0x10] sm:$0xff] %vm1162_vm2, %v1000_v59  ;;  %3100 = sbr.rel (%p3189_p12) target bundleno = 1016 (0x3f8), region = 133 }
 0x1c1   : > { %v1001_v60 = vpop.trf.xlu0 }
 0x1c2   : > { %1166 = vst.msk [vmem:[%s4486_s11 + $0x18] sm:$0xff] %vm1162_vm2, %v1001_v60 }
 0x1c3   : > { %v4522_v11 = vmov 0.0   ;;  %v4524_v12 = vmov 0.0   ;;  %v4526_v13 = vmov 0.0   ;;  %v4528_v14 = vmov 0.0  }
 0x1c4   : > { %v4530_v15 = vmov 0.0   ;;  %v4532_v16 = vmov 0.0   ;;  %v4534_v17 = vmov 0.0   ;;  %v4536_v18 = vmov 0.0  }
 0x1c5   : > { %v4538_v19 = vmov -1e+30   ;;  %v4540_v20 = vmov -1e+30   ;;  %v4542_v21 = vmov -1e+30  }
 0x1c6   : > { %v4544_v22 = vmov -1e+30  }
 0x1c7 LB: >> { %v4143_v23 = vmov 0.0   ;;  %vm4144_vm3 = vmmov 0   ;;  %s3190_s26 = sshll.u32 %s4083_s18, 5  ;;  %s1175_s18 = sadd.s32 1, %s4083_s18   ;;  %s4083_s18 = sphi %s4546_s18, %s1175_s18   ;;  %v4079_v22 = vphi %v4544_v22, %v5111_v22   ;;  %v4075_v21 = vphi %v4542_v21, %v5110_v21   ;;  %v4071_v20 = vphi %v4540_v20, %v5109_v20   ;;  %v4067_v19 = vphi %v4538_v19, %v5108_v19   ;;  %v4063_v18 = vphi %v4536_v18, %v5107_v18   ;;  %v4059_v17 = vphi %v4534_v17, %v5106_v17   ;;  %v4055_v16 = vphi %v4532_v16, %v5105_v16   ;;  %v4051_v15 = vphi %v4530_v15, %v5104_v15   ;;  %v4047_v14 = vphi %v4528_v14, %v5103_v14   ;;  %v4043_v13 = vphi %v4526_v13, %v5102_v13   ;;  %v4039_v12 = vphi %v4524_v12, %v5101_v12   ;;  %v4035_v11 = vphi %v4522_v11, %v5100_v11  }
 0x1c8   : >> { %3330 = vmatprep.subr.mxu0 %v4143_v23  ;;  %3332 = vmatprep.mubr.msk.f32.mxu0 %vm4144_vm3, %v4143_v23  ;;  %s1191_s0 = scalar_lea.vmem [#allocation2], %s3190_s26  ;;  %s4622_s30 = scalar_lea.vmem [#allocation3], %s3190_s26 }
 0x1c9   : >> { %3335 = vmatprep.subr.mxu1 %v4143_v23  ;;  %3337 = vmatprep.mubr.msk.f32.mxu1 %vm4144_vm3, %v4143_v23  ;;  %v1192_v24 = vld [vmem:[%s1191_s0] sm:$0xff]  ;;  %v1194_v25 = vld [vmem:[%s1191_s0 + $0x10] sm:$0xff]  ;;  %v1193_v26 = vld [vmem:[%s1191_s0 + $0x8] sm:$0xff]  ;;  %p4676_p0 = scmp.ge.s32.totalorder %s1175_s18, %s4015_s27 }
 0x1ca   : >> { %3331 = vmatpush3.msra.mxu0 %v1192_v24  ;;  %3336 = vmatpush3.msra.mxu1 %v1193_v26  ;;  %v1195_v27 = vld [vmem:[%s1191_s0 + $0x18] sm:$0xff]  ;;  %v1197_v43 = vld [vmem:[%s4622_s30] sm:$0xff]  ;;  %v1198_v44 = vld [vmem:[%s4622_s30 + $0x8] sm:$0xff] }
 0x1cb   : >> { %3333 = vmatmul.mubr.msk.f32.vlgmr.msra.gmra.mxu0 %vm1162_vm2, %v4476_v53  ;;  %3340 = vmatprep.subr.mxu0 %v4143_v23  ;;  %v1199_v9 = vld [vmem:[%s4622_s30 + $0x10] sm:$0xff] }
 0x1cc   : >> { %3341 = vmatpush3.msra.mxu0 %v1194_v25  ;;  %3338 = vmatmul.mubr.msk.f32.vlgmr.msra.gmra.mxu1 %vm1162_vm2, %v4478_v54 }
 0x1cd   : >> { %3342 = vmatprep.mubr.msk.f32.mxu0 %vm4144_vm3, %v4143_v23  ;;  %3345 = vmatprep.subr.mxu1 %v4143_v23 }
 0x1ce   : >> { %3346 = vmatpush3.msra.mxu1 %v1195_v27  ;;  %3347 = vmatprep.mubr.msk.f32.mxu1 %vm4144_vm3, %v4143_v23 }
 0x1cf   : >> { %3343 = vmatmul.mubr.msk.f32.vlgmr.msra.gmra.mxu0 %vm1162_vm2, %v4480_v55  ;;  %3350 = vmatprep.subr.mxu0 %v4143_v23 }
 0x1d0   : >> { %3348 = vmatmul.mubr.msk.f32.vlgmr.msra.gmra.mxu1 %vm1162_vm2, %v4482_v56  ;;  %3352 = vmatprep.mubr.msk.f32.mxu0 %vm4144_vm3, %v4143_v23 }
 0x1d1   : >> { %3355 = vmatprep.subr.mxu1 %v4143_v23  ;;  %3357 = vmatprep.mubr.msk.f32.mxu1 %vm4144_vm3, %v4143_v23 }
 0x1d2   : >> { %3351 = vmatpush3.msra.mxu0 %v1197_v43  ;;  %3356 = vmatpush3.msra.mxu1 %v1198_v44 }
 0x1d3   : >> { %3360 = vmatprep.subr.mxu0 %v4143_v23  ;;  %3365 = vmatprep.subr.mxu1 %v4143_v23 }
 0x28b   : >> { %v1270_v28 = vpop.f32.mrf.mxu0 }
 0x28c   : >> { %v1493_v29 = vsel %vm1162_vm2, %v1270_v28, -inf  ;;  %v1343_v31 = vpop.f32.mrf.mxu1 }
 0x28d   : >> { %1494 = vmax.xlane.f32.xlu0 %v1493_v29  ;;  %v3334_v32 = vpop.f32.mrf.mxu0  ;;  %v1496_v35 = vsel %vm1162_vm2, %v1343_v31, -inf }
 0x28e   : >> { %v3339_v33 = vpop.f32.mrf.mxu1 }
 0x28f   : >> { %v1416_v36 = vpop.f32.mrf.mxu0 }
 0x290   : >> { %v1499_v37 = vsel %vm1162_vm2, %v1416_v36, -inf  ;;  %v1489_v39 = vpop.f32.mrf.mxu1 }
 0x291   : >> { %1497 = vmax.xlane.f32.xlu0 %v1496_v35  ;;  %1500 = vmax.xlane.f32.xlu1 %v1499_v37  ;;  %v3344_v40 = vpop.f32.mrf.mxu0  ;;  %v1502_v42 = vsel %vm1162_vm2, %v1489_v39, -inf }
 0x292   : >> { %v3349_v41 = vpop.f32.mrf.mxu1 }
 0x295   : >> { %1503 = vmax.xlane.f32.xlu1 %v1502_v42 }
 0x316   : >> { %v1495_v46 = vpop.xlane.xlu0 %1494 }
 0x317   : >> { %v4629_v47 = vmax.f32 %v4079_v22, %v1495_v46  }
 0x319   : >> { %v1509_v48 = vsub.f32 %v4079_v22, %v4629_v47  ;;  %v1521_v49 = vsub.f32 %v1270_v28, %v4629_v47 }
 0x31a   : >> { %v1498_v50 = vpop.xlane.xlu0 %1497  ;;  %v1501_v51 = vpop.xlane.xlu1 %1500 }
 0x31b   : >> { %v1525_v52 = vmul.f32 1.442695, %v1521_v49  ;;  %v4635_v57 = vmax.f32 %v4075_v21, %v1498_v50   ;;  %v4638_v58 = vmax.f32 %v4071_v20, %v1501_v51   ;;  %v1513_v28 = vmul.f32 1.442695, %v1509_v48 }
 0x31d   : >> { %v1510_v59 = vsub.f32 %v4075_v21, %v4635_v57  ;;  %v1522_v60 = vsub.f32 %v1343_v31, %v4635_v57  ;;  %v1511_v61 = vsub.f32 %v4071_v20, %v4638_v58  ;;  %3763 = vpow2.f32 %v1525_v52  ;;  %v1200_v21 = vld [vmem:[%s4622_s30 + $0x18] sm:$0xff] }
 0x31e   : >> { %v1523_v62 = vsub.f32 %v1416_v36, %v4638_v58  ;;  %v1504_v63 = vpop.xlane.xlu1 %1503 }
 0x31f   : >> { %v1527_v1 = vmul.f32 1.442695, %v1522_v60  ;;  %v4647_v2 = vmax.f32 %v4067_v19, %v1504_v63   ;;  %v1515_v29 = vmul.f32 1.442695, %v1510_v59  ;;  %v1517_v31 = vmul.f32 1.442695, %v1511_v61 }
 0x320   : >> { %v1529_v3 = vmul.f32 1.442695, %v1523_v62 }
 0x321   : >> { %v5098_v6 = vmov %v4647_v2  ;;  %3765 = vpow2.f32 %v1527_v1 }
 0x322   : >> { %v1512_v4 = vsub.f32 %v4067_v19, %v5098_v6  ;;  %v1524_v5 = vsub.f32 %v1489_v39, %v5098_v6  ;;  %3767 = vpow2.f32 %v1529_v3 }
 0x324   : >> { %v1531_v8 = vmul.f32 1.442695, %v1524_v5  ;;  %v1519_v32 = vmul.f32 1.442695, %v1512_v4 }
 0x326   : >> { %3769 = vpow2.f32 %v1531_v8 }
 0x327   : >> { %3771 = vpow2.f32 %v1513_v28 }
 0x328   : >> { %3773 = vpow2.f32 %v1515_v29 }
 0x329   : >> { %3775 = vpow2.f32 %v1517_v31 }
 0x32a   : >> { %v3764_v10 = vpop.eup %3763  ;;  %3777 = vpow2.f32 %v1519_v32 }
 0x32b   : >> { %3353 = vmatmul.mubr.msk.f32.vlgmr.msra.gmra.mxu0 %vm1162_vm2, %v3764_v10  ;;  %v1537_v20 = vsel %vm1162_vm2, %v3764_v10, 0.0  ;;  %v5121_v10 = vmov (%p4676_p0), %v4629_v47 }
 0x32c   : >> { %1538 = vadd.xlane.f32.xlu0 %v1537_v20  ;;  %3361 = vmatpush3.msra.mxu0 %v1199_v9  ;;  %v5109_v20 = vmov %v4638_v58  ;;  %v5120_v9 = vmov (%p4676_p0), %v4635_v57 }
 0x32d   : >> { %3362 = vmatprep.mubr.msk.f32.mxu0 %vm4144_vm3, %v4143_v23 }
 0x32e   : >> { %v3766_v22 = vpop.eup %3765 }
 0x32f   : >> { %3358 = vmatmul.mubr.msk.f32.vlgmr.msra.gmra.mxu1 %vm1162_vm2, %v3766_v22  ;;  %v1540_v19 = vsel %vm1162_vm2, %v3766_v22, 0.0  ;;  %v3768_v24 = vpop.eup %3767  ;;  %v5111_v22 = vmov %v4629_v47 }
 0x330   : >> { %3366 = vmatpush3.msra.mxu1 %v1200_v21  ;;  %1541 = vadd.xlane.f32.xlu1 %v1540_v19  ;;  %v1543_v25 = vsel %vm1162_vm2, %v3768_v24, 0.0  ;;  %v5108_v19 = vmov %v5098_v6  ;;  %v5110_v21 = vmov %v4635_v57 }
 0x331   : >> { %3363 = vmatmul.mubr.msk.f32.vlgmr.msra.gmra.mxu0 %vm1162_vm2, %v3768_v24  ;;  %3367 = vmatprep.mubr.msk.f32.mxu1 %vm4144_vm3, %v4143_v23 }
 0x332   : >> { %1544 = vadd.xlane.f32.xlu0 %v1543_v25 }
 0x333   : >> { %v3770_v26 = vpop.eup %3769 }
 0x334   : >> { %3368 = vmatmul.mubr.msk.f32.vlgmr.msra.gmra.mxu1 %vm1162_vm2, %v3770_v26  ;;  %v1546_v27 = vsel %vm1162_vm2, %v3770_v26, 0.0  ;;  %v3772_v33 = vpop.eup %3771 }
 0x335   : >> { %1547 = vadd.xlane.f32.xlu1 %v1546_v27  ;;  %v1533_v35 = vmul.f32 %v4063_v18, %v3772_v33  ;;  %v3774_v36 = vpop.eup %3773  ;;  %v1553_v52 = vmul.f32 %v4047_v14, %v3772_v33 }
 0x336   : >> { %v3776_v39 = vpop.eup %3775  ;;  %v1534_v40 = vmul.f32 %v4059_v17, %v3774_v36  ;;  %v1554_v61 = vmul.f32 %v4043_v13, %v3774_v36 }
 0x337   : >> { %v3778_v41 = vpop.eup %3777  ;;  %v1535_v44 = vmul.f32 %v4055_v16, %v3776_v39  ;;  %v1555_v17 = vmul.f32 %v4039_v12, %v3776_v39 }
 0x338   : >> { %v1536_v49 = vmul.f32 %v4051_v15, %v3778_v41  ;;  %v1556_v16 = vmul.f32 %v4035_v11, %v3778_v41 }
 0x3b5   : >> { %v1539_v23 = vpop.xlane.xlu0 %1538 }
 0x3b6   : >> { %v1549_v37 = vadd.f32 %v1539_v23, %v1533_v35  }
 0x3b9   : >> { %v1542_v42 = vpop.xlane.xlu1 %1541 }
 0x3ba   : >> { %v1550_v43 = vadd.f32 %v1542_v42, %v1534_v40  }
 0x3bb   : >> { %v1545_v46 = vpop.xlane.xlu0 %1544 }
 0x3bc   : >> { %v1551_v48 = vadd.f32 %v1545_v46, %v1535_v44  }
 0x3be   : >> { %v1548_v50 = vpop.xlane.xlu1 %1547 }
 0x3bf   : >> { %v1552_v51 = vadd.f32 %v1548_v50, %v1536_v49  }
 0x3eb   : >> { %v1626_v18 = vpop.f32.mrf.mxu0 }
 0x3ec   : >> { %v1849_v59 = vadd.f32 %v1626_v18, %v1553_v52   ;;  %v5107_v18 = vmov %v1549_v37 }
 0x3ed   : >> { %v3354_v60 = vpop.f32.mrf.mxu0 }
 0x3ee   : >> { %v5103_v14 = vmov %v1849_v59 }
 0x3ef   : >> { %v1699_v62 = vpop.f32.mrf.mxu1 }
 0x3f0   : >> { %v1850_v63 = vadd.f32 %v1699_v62, %v1554_v61  }
 0x3f1   : >> { %v1772_v1 = vpop.f32.mrf.mxu0  ;;  %v3359_v2 = vpop.f32.mrf.mxu1 }
 0x3f2   : >> { %v1851_v3 = vadd.f32 %v1772_v1, %v1555_v17   ;;  %v5102_v13 = vmov %v1850_v63  ;;  %v5106_v17 = vmov %v1550_v43  ;;  %v5114_v1 = vmov (%p4676_p0), %v1849_v59 }
 0x3f3   : >> { %v3364_v4 = vpop.f32.mrf.mxu0  ;;  %1177 = sbr.rel (!%p4676_p0) target bundleno = 455 (0x1c7), region = 139  ;;  %v5115_v2 = vmov (%p4676_p0), %v1552_v51 }
 0x3f4   : >> { %v1845_v15 = vpop.f32.mrf.mxu1  ;;  %v5101_v12 = vmov %v1851_v3  ;;  %v5113_v62 = vmov (%p4676_p0), %v1851_v3  ;;  %v5116_v3 = vmov (%p4676_p0), %v1551_v48  ;;  %v5117_v4 = vmov (%p4676_p0), %v1550_v43 }
 0x3f5   : >> { %v1852_v5 = vadd.f32 %v1845_v15, %v1556_v16   ;;  %v5104_v15 = vmov %v1552_v51  ;;  %v5105_v16 = vmov %v1551_v48 }
 0x3f6   : >> { %v3369_v8 = vpop.f32.mrf.mxu1 }
 0x3f7   : >> { %v5100_v11 = vmov %v1852_v5  ;;  %v5112_v61 = vmov (%p4676_p0), %v1852_v5  ;;  %v5118_v5 = vmov (%p4676_p0), %v1549_v37  ;;  %v5119_v8 = vmov (%p4676_p0), %v4638_v58 }
 0x3f8 PF: > { %3370 = vmatprep.subr.mxu1 %v4136_v0  ;;  %v1858_v11 = vld [vmem:[%s4486_s11] sm:$0xff]  ;;  %3372 = vmatprep.mubr.msk.f32.mxu1 %vm4137_vm0, %v4136_v0  ;;  %v1859_v12 = vld [vmem:[%s4486_s11 + $0x8] sm:$0xff]  ;;  %v1864_v50 = vld [vmem:[%s4462_s21 + $0x10] sm:$0xff]  ;;  %s4145_s26 = smov 16   ;;  %s4146_s0 = smov 8   ;;  %vm2681_vm5 = vcmask 130048   ;;  %v4131_v10 = vphi %v4520_v10, %v5121_v10   ;;  %v4127_v9 = vphi %v4518_v9, %v5120_v9   ;;  %v4123_v8 = vphi %v4516_v8, %v5119_v8   ;;  %v4119_v6 = vphi %v4514_v6, %v5098_v6   ;;  %v4115_v5 = vphi %v4512_v5, %v5118_v5   ;;  %v4111_v4 = vphi %v4510_v4, %v5117_v4   ;;  %v4107_v3 = vphi %v4508_v3, %v5116_v3   ;;  %v4103_v2 = vphi %v4506_v2, %v5115_v2   ;;  %v4099_v1 = vphi %v4504_v1, %v5114_v1   ;;  %v4095_v63 = vphi %v4502_v63, %v1850_v63   ;;  %v4091_v62 = vphi %v4500_v62, %v5113_v62   ;;  %v4087_v61 = vphi %v4498_v61, %v5112_v61  }
 0x3f9   : > { %3371 = vmatpush3.msra.mxu1 %v1858_v11  ;;  %3390 = vmatprep.subr.mxu0 %v4136_v0  ;;  %v1862_v29 = vld [vmem:[%s4462_s21] sm:$0xff]  ;;  %v1863_v31 = vld [vmem:[%s4462_s21 + $0x8] sm:$0xff]  ;;  %v1865_v18 = vld [vmem:[%s4462_s21 + $0x18] sm:$0xff]  ;;  %s4147_s30 = smov 24   ;;  %vm2683_vm6 = vcmask 195584   ;;  %s3219_s21 = sshll.u32 %s4019_s28, 1 }
 0x3fa   : > { %3373 = vmatmul.mubr.msk.f32.vlgmr.msra.gmra.mxu1 %vm1162_vm2, %v4476_v53  ;;  %3375 = vmatprep.subr.mxu1 %v4136_v0  ;;  %v1860_v13 = vld [vmem:[%s4486_s11 + $0x10] sm:$0xff]  ;;  %s5123_s19 = sld [smem:[#allocation25_spill]]  ;;  %s3029_s29 = sshll.u32 %s578_s16, 4  ;;  %s3030_s29 = int_to_ptr.vmem [resolvable:$true] %s3029_s29 }
 0x3fb   : > { %3376 = vmatpush3.msra.mxu1 %v1859_v12  ;;  %3377 = vmatprep.mubr.msk.f32.mxu1 %vm4137_vm0, %v4136_v0  ;;  %v2688_v12 = vld [vmem:[%s5048_s7 + $0x18] sm:$0xff]  ;;  %s5124_s28 = sld [smem:[#allocation26_spill]]  ;;  %s3835_s18 = scalar_lea.vmem %s3030_s29, 128 }
 0x3fc   : > { %3380 = vmatprep.subr.mxu1 %v4136_v0  ;;  %3392 = vmatprep.mubr.msk.f32.mxu0 %vm4137_vm0, %v4136_v0  ;;  %p3836_p1 = scmp.ne.s32.totalorder %s3030_s29, %s3835_s18 }
 0x3fd   : > { %3391 = vmatpush3.msra.mxu0 %v1862_v29 }
 0x3fe   : > { %3378 = vmatmul.mubr.msk.f32.vlgmr.msra.gmra.mxu1 %vm1162_vm2, %v4478_v54  ;;  %v1861_v53 = vld [vmem:[%s4486_s11 + $0x18] sm:$0xff]  ;;  %v1856_v54 = vand.u32 127, %v851_v30  ;;  %3400 = vmatprep.subr.mxu0 %v4136_v0  ;;  %s3025_s11 = sadd.s32 %s4015_s27, %s3219_s21  ;;  %s5126_s27 = sand.u32 1, %s4007_s25  }
 0x3ff   : > { %3381 = vmatpush3.msra.mxu1 %v1860_v13  ;;  %3382 = vmatprep.mubr.msk.f32.mxu1 %vm4137_vm0, %v4136_v0  ;;  %s3220_s17 = sshll.u32 %s3025_s11, 7  ;;  %s3014_s21 = scalar_lea.sflag [#allocation6], %s5126_s27 }
 0x400   : > { %3385 = vmatprep.subr.mxu1 %v4136_v0  ;;  %vm1857_vm4 = vcmp.le.s32.totalorder %v1856_v54, %v4423_v34  ;;  %p3837_p2 = pnand %p3836_p1, %p4291_p3  ;;  %s4148_s11 = smov [#allocation7]  }
 0x401   : > { %s5125_s2 = smov %s5124_s28  ;;  %s3027_s3 = scalar_lea.hbm %s5124_s28, %s3220_s17 }
 0x402   : > { %3383 = vmatmul.mubr.msk.f32.vlgmr.msra.gmra.mxu1 %vm1162_vm2, %v4480_v55  ;;  %p3838_p4 = pneg %p3837_p2 }
 0x403   : > { %3386 = vmatpush3.msra.mxu1 %v1861_v53  ;;  %3387 = vmatprep.mubr.msk.f32.mxu1 %vm4137_vm0, %v4136_v0 }
 0x404   : > { %3395 = vmatprep.subr.mxu1 %v4136_v0 }
 0x406   : > { %3388 = vmatmul.mubr.msk.f32.vlgmr.msra.gmra.mxu1 %vm1162_vm2, %v4482_v56 }
 0x407   : > { %3397 = vmatprep.mubr.msk.f32.mxu1 %vm4137_vm0, %v4136_v0  ;;  %3396 = vmatpush3.msra.mxu1 %v1863_v31 }
 0x408   : > { %3405 = vmatprep.subr.mxu1 %v4136_v0 }
 0x4ba   : > { %v1935_v14 = vpop.f32.mrf.mxu1 }
 0x4bb   : > { %v2160_v55 = vsel %vm1857_vm4, %v1935_v14, -1e+30 }
 0x4bc   : > { %v3374_v47 = vpop.f32.mrf.mxu1  ;;  %v2164_v57 = vsel %vm1162_vm2, %v2160_v55, -inf }
 0x4bd   : > { %2165 = vmax.xlane.f32.xlu0 %v2164_v57 }
 0x4be   : > { %v2008_v58 = vpop.f32.mrf.mxu1 }
 0x4bf   : > { %v2161_v56 = vsel %vm1857_vm4, %v2008_v58, -1e+30 }
 0x4c0   : > { %v3379_v20 = vpop.f32.mrf.mxu1  ;;  %v2167_v21 = vsel %vm1162_vm2, %v2161_v56, -inf }
 0x4c1   : > { %2168 = vmax.xlane.f32.xlu0 %v2167_v21 }
 0x4c2   : > { %v2081_v30 = vpop.f32.mrf.mxu1 }
 0x4c3   : > { %v2162_v22 = vsel %vm1857_vm4, %v2081_v30, -1e+30 }
 0x4c4   : > { %v3384_v19 = vpop.f32.mrf.mxu1  ;;  %v2170_v24 = vsel %vm1162_vm2, %v2162_v22, -inf }
 0x4c5   : > { %2171 = vmax.xlane.f32.xlu1 %v2170_v24 }
 0x4c6   : > { %v2154_v25 = vpop.f32.mrf.mxu1 }
 0x4c7   : > { %v2163_v26 = vsel %vm1857_vm4, %v2154_v25, -1e+30 }
 0x4c8   : > { %v3389_v27 = vpop.f32.mrf.mxu1  ;;  %v2173_v28 = vsel %vm1162_vm2, %v2163_v26, -inf }
 0x4c9   : > { %2174 = vmax.xlane.f32.xlu1 %v2173_v28 }
 0x546   : > { %v2166_v32 = vpop.xlane.xlu0 %2165 }
 0x547   : > { %v2176_v33 = vmax.f32 %v4131_v10, %v2166_v32 }
 0x549   : > { %v2192_v35 = vsub.f32 %v2160_v55, %v2176_v33  ;;  %v2180_v13 = vsub.f32 %v4131_v10, %v2176_v33 }
 0x54a   : > { %v2169_v36 = vpop.xlane.xlu0 %2168 }
 0x54b   : > { %v2196_v23 = vmul.f32 1.442695, %v2192_v35  ;;  %v2177_v34 = vmax.f32 %v4127_v9, %v2169_v36  ;;  %v2184_v54 = vmul.f32 1.442695, %v2180_v13  ;;  %v2687_v13 = vld [vmem:[%s5048_s7 + $0x10] sm:$0xff] }
 0x54d   : > { %v2193_v37 = vsub.f32 %v2161_v56, %v2177_v34  ;;  %3779 = vpow2.f32 %v2196_v23  ;;  %v2181_v14 = vsub.f32 %v4127_v9, %v2177_v34 }
 0x54e   : > { %v2172_v39 = vpop.xlane.xlu1 %2171 }
 0x54f   : > { %v2198_v40 = vmul.f32 1.442695, %v2193_v37  ;;  %v2178_v41 = vmax.f32 %v4123_v8, %v2172_v39  ;;  %v2186_v57 = vmul.f32 1.442695, %v2181_v14 }
 0x551   : > { %v2194_v42 = vsub.f32 %v2162_v22, %v2178_v41  ;;  %3781 = vpow2.f32 %v2198_v40  ;;  %v2182_v53 = vsub.f32 %v4123_v8, %v2178_v41 }
 0x552   : > { %v2175_v43 = vpop.xlane.xlu1 %2174 }
 0x553   : > { %v2200_v44 = vmul.f32 1.442695, %v2194_v42  ;;  %v2179_v46 = vmax.f32 %v4119_v6, %v2175_v43  ;;  %v2188_v55 = vmul.f32 1.442695, %v2182_v53 }
 0x555   : > { %v2195_v48 = vsub.f32 %v2163_v26, %v2179_v46  ;;  %3783 = vpow2.f32 %v2200_v44  ;;  %v2183_v47 = vsub.f32 %v4119_v6, %v2179_v46 }
 0x557   : > { %v2202_v49 = vmul.f32 1.442695, %v2195_v48  ;;  %v2190_v58 = vmul.f32 1.442695, %v2183_v47  ;;  %v2686_v47 = vld [vmem:[%s5048_s7 + $0x8] sm:$0xff] }
 0x559   : > { %3785 = vpow2.f32 %v2202_v49 }
 0x55a   : > { %v3780_v51 = vpop.eup %3779  ;;  %3787 = vpow2.f32 %v2184_v54 }
 0x55b   : > { %3393 = vmatmul.mubr.msk.f32.vlgmr.msra.gmra.mxu0 %vm1162_vm2, %v3780_v51  ;;  %v2208_v52 = vsel %vm1162_vm2, %v3780_v51, 0.0  ;;  %3789 = vpow2.f32 %v2188_v55 }
 0x55c   : > { %2209 = vadd.xlane.f32.xlu0 %v2208_v52  ;;  %3401 = vmatpush3.msra.mxu0 %v1864_v50  ;;  %3791 = vpow2.f32 %v2186_v57 }
 0x55d   : > { %3402 = vmatprep.mubr.msk.f32.mxu0 %vm4137_vm0, %v4136_v0  ;;  %3432 = vmatprep.subr.mxu0 %v4136_v0  ;;  %3793 = vpow2.f32 %v2190_v58 }
 0x55e   : > { %v3782_v59 = vpop.eup %3781 }
 0x55f   : > { %3398 = vmatmul.mubr.msk.f32.vlgmr.msra.gmra.mxu1 %vm1162_vm2, %v3782_v59  ;;  %v2211_v60 = vsel %vm1162_vm2, %v3782_v59, 0.0 }
 0x560   : > { %2212 = vadd.xlane.f32.xlu1 %v2211_v60  ;;  %3406 = vmatpush3.msra.mxu1 %v1865_v18 }
 0x561   : > { %3407 = vmatprep.mubr.msk.f32.mxu1 %vm4137_vm0, %v4136_v0  ;;  %3410 = vmatprep.subr.mxu1 %v4136_v0 }
 0x562   : > { %v3784_v17 = vpop.eup %3783 }
 0x563   : > { %3403 = vmatmul.mubr.msk.f32.vlgmr.msra.gmra.mxu0 %vm1162_vm2, %v3784_v17  ;;  %v2214_v16 = vsel %vm1162_vm2, %v3784_v17, 0.0 }
 0x564   : > { %2215 = vadd.xlane.f32.xlu0 %v2214_v16  ;;  %3464 = vmatprep.mubr.msk.f32.mxu0 %vm4137_vm0, %v4136_v0 }
 0x566   : > { %v3786_v15 = vpop.eup %3785 }
 0x567   : > { %3408 = vmatmul.mubr.msk.f32.vlgmr.msra.gmra.mxu1 %vm1162_vm2, %v3786_v15  ;;  %v2217_v11 = vsel %vm1162_vm2, %v3786_v15, 0.0  ;;  %v3788_v20 = vpop.eup %3787 }
 0x568   : > { %2218 = vadd.xlane.f32.xlu1 %v2217_v11  ;;  %3418 = vmatprep.mubr.msk.f32.mxu1 %vm4137_vm0, %v4136_v0  ;;  %v3790_v21 = vpop.eup %3789  ;;  %v2204_v30 = vmul.f32 %v4115_v5, %v3788_v20  ;;  %v2224_v33 = vmul.f32 %v4099_v1, %v3788_v20 }
 0x569   : > { %3411 = vmatpush3.msra.mxu1 %v2688_v12  ;;  %v3792_v8 = vpop.eup %3791  ;;  %v2206_v19 = vmul.f32 %v4107_v3, %v3790_v21  ;;  %v2226_v36 = vmul.f32 %v4091_v62, %v3790_v21  ;;  %v2685_v21 = vld [vmem:[%s5048_s7] sm:$0xff] }
 0x56a   : > { %3412 = vmatprep.subr.mxu1 %v4136_v0  ;;  %v3794_v9 = vpop.eup %3793  ;;  %v2205_v6 = vmul.f32 %v4111_v4, %v3792_v8  ;;  %v2225_v34 = vmul.f32 %v4095_v63, %v3792_v8 }
 0x56b   : > { %v2207_v27 = vmul.f32 %v4103_v2, %v3794_v9  ;;  %v2227_v43 = vmul.f32 %v4087_v61, %v3794_v9  ;;  %3413 = vmatpush3.msra.mxu1 %v2687_v13  ;;  %v2898_v13 = vld [vmem:[%s5054_s13 + $0x48] sm:$0xff] }
 0x56c   : > { %3414 = vmatprep.subr.mxu1 %v4136_v0 }
 0x56d   : > { %3415 = vmatpush3.msra.mxu1 %v2686_v47  ;;  %v2893_v47 = vld [vmem:[%s5054_s13 + $0x20] sm:$0xff] }
 0x56e   : > { %3416 = vmatprep.subr.mxu1 %v4136_v0 }
 0x56f   : > { %3417 = vmatpush3.msra.mxu1 %v2685_v21  ;;  %v3213_v21 = vld [vmem:[%s5053_s12] ss:$0 sm:$0xff] }
 0x570   : > { %3421 = vmatprep.subr.mxu1 %v4136_v0 }
 0x5e5   : > { %v2210_v56 = vpop.xlane.xlu0 %2209 }
 0x5e6   : > { %v2220_v24 = vadd.f32 %v2210_v56, %v2204_v30 }
 0x5e8   : > { %3795 = vrcp.f32 %v2220_v24 }
 0x5e9   : > { %v2213_v10 = vpop.xlane.xlu1 %2212 }
 0x5ea   : > { %v2221_v28 = vadd.f32 %v2213_v10, %v2205_v6 }
 0x5ed   : > { %v2216_v22 = vpop.xlane.xlu0 %2215 }
 0x5ee   : > { %v2222_v25 = vadd.f32 %v2216_v22, %v2206_v19 }
 0x5f0   : > { %3797 = vrcp.f32 %v2222_v25 }
 0x5f1   : > { %v2219_v26 = vpop.xlane.xlu1 %2218  ;;  %3799 = vrcp.f32 %v2221_v28 }
 0x5f2   : > { %v2223_v29 = vadd.f32 %v2219_v26, %v2207_v27 }
 0x5f4   : > { %3801 = vrcp.f32 %v2223_v29 }
 0x5f5   : > { %v3796_v4 = vpop.eup %3795 }
 0x5fd   : > { %v3798_v37 = vpop.eup %3797 }
 0x5fe   : > { %v3800_v46 = vpop.eup %3799 }
 0x601   : > { %v3802_v50 = vpop.eup %3801 }
 0x61b   : > { %v2297_v31 = vpop.f32.mrf.mxu0 }
 0x61c   : > { %v2520_v35 = vadd.f32 %v2297_v31, %v2224_v33 }
 0x61d   : > { %v3394_v5 = vpop.f32.mrf.mxu0 }
 0x61e   : > { %v2528_v40 = vmul.f32 %v3796_v4, %v2520_v35 }
 0x61f   : > { %v2370_v32 = vpop.f32.mrf.mxu1 }
 0x620   : > { %v2521_v41 = vadd.f32 %v2370_v32, %v2225_v34 }
 0x621   : > { %v3399_v3 = vpop.f32.mrf.mxu1 }
 0x622   : > { %v2529_v62 = vmul.f32 %v3800_v46, %v2521_v41  ;;  %v2803_v46 = vld [vmem:[#allocation4 + $0x18] sm:$0xff] }
 0x623   : > { %v2443_v23 = vpop.f32.mrf.mxu0 }
 0x624   : > { %v2522_v2 = vadd.f32 %v2443_v23, %v2226_v36 }
 0x625   : > { %v3404_v39 = vpop.f32.mrf.mxu0 }
 0x626   : > { %v2530_v42 = vmul.f32 %v3798_v37, %v2522_v2 }
 0x627   : > { %v2516_v44 = vpop.f32.mrf.mxu1 }
 0x628   : > { %v2532_v48 = vcombine.low %v2528_v40, %v2530_v42  ;;  %v2533_v1 = vcombine.high %v2528_v40, %v2530_v42  ;;  %v2523_v49 = vadd.f32 %v2516_v44, %v2227_v43 }
 0x629   : > { %v3409_v51 = vpop.f32.mrf.mxu1 }
 0x62a   : > { %v2531_v52 = vmul.f32 %v3802_v50, %v2523_v49  ;;  %v2540_v63 = vrot.slane %v2532_v48, %v4426_v38  ;;  %v2547_v60 = vrot.slane %v2533_v1, %v4426_v38  ;;  %v2802_v48 = vld [vmem:[#allocation4 + $0x10] sm:$0xff]  ;;  %v2801_v1 = vld [vmem:[#allocation4 + $0x8] sm:$0xff]  ;;  %v2904_v49 = vld [vmem:[%s5054_s13 + $0x78] sm:$0xff] }
 0x62b   : > { %v2903_v50 = vld [vmem:[%s5054_s13 + $0x70] sm:$0xff]  ;;  %3433 = vmatpush3.msra.mxu0 %v2904_v49  ;;  %v2902_v51 = vld [vmem:[%s5054_s13 + $0x68] sm:$0xff] }
 0x62c   : > { %v2548_v18 = vcombine.low %v2529_v62, %v2531_v52  ;;  %v2549_v59 = vcombine.high %v2529_v62, %v2531_v52  ;;  %3434 = vmatprep.subr.mxu0 %v4136_v0  ;;  %v2901_v62 = vld [vmem:[%s5054_s13 + $0x60] sm:$0xff] }
 0x62d   : > { %3435 = vmatpush3.msra.mxu0 %v2903_v50 }
 0x62e   : > { %v2556_v17 = vrot.slane %v2548_v18, %v4426_v38  ;;  %v2563_v16 = vrot.slane %v2549_v59, %v4426_v38  ;;  %3436 = vmatprep.subr.mxu0 %v4136_v0 }
 0x62f   : > { %3437 = vmatpush3.msra.mxu0 %v2902_v51 }
 0x630   : > { %v2564_v61 = vcombine.low %v2540_v63, %v2556_v17  ;;  %v2565_v15 = vcombine.high %v2540_v63, %v2556_v17  ;;  %v2580_v11 = vcombine.low %v2547_v60, %v2563_v16  ;;  %v2581_v12 = vcombine.high %v2547_v60, %v2563_v16  ;;  %3438 = vmatprep.subr.mxu0 %v4136_v0  ;;  %v3211_v60 = vld [vmem:[%s5050_s9] ss:$0 sm:$0xff] }
 0x631   : > { %3439 = vmatpush3.msra.mxu0 %v2901_v62  ;;  %v3212_v16 = vld [vmem:[%s5051_s10] ss:$0 sm:$0xff] }
 0x632   : > { %v2572_v53 = vrot.slane %v2564_v61, %v4429_v45  ;;  %v2579_v54 = vrot.slane %v2565_v15, %v4429_v45  ;;  %v2588_v14 = vrot.slane %v2580_v11, %v4429_v45  ;;  %v2595_v55 = vrot.slane %v2581_v12, %v4429_v45  ;;  %3440 = vmatprep.subr.mxu0 %v4136_v0  ;;  %v2900_v11 = vld [vmem:[%s5054_s13 + $0x58] sm:$0xff]  ;;  %v2899_v12 = vld [vmem:[%s5054_s13 + $0x50] sm:$0xff] }
 0x633   : > { %3441 = vmatpush3.msra.mxu0 %v2900_v11 }
 0x634   : > { %v2600_v57 = vcombine.low %v2572_v53, %v2579_v54  ;;  %v3207_v58 = vcombine.high %v2572_v53, %v2579_v54  ;;  %v2616_v56 = vcombine.low %v2588_v14, %v2595_v55  ;;  %v3208_v20 = vcombine.high %v2588_v14, %v2595_v55  ;;  %3442 = vmatprep.subr.mxu0 %v4136_v0  ;;  %v2897_v53 = vld [vmem:[%s5054_s13 + $0x40] sm:$0xff]  ;;  %v2896_v54 = vld [vmem:[%s5054_s13 + $0x38] sm:$0xff]  ;;  %v2895_v14 = vld [vmem:[%s5054_s13 + $0x30] sm:$0xff] }
 0x635   : > { %3443 = vmatpush3.msra.mxu0 %v2899_v12  ;;  %v2894_v55 = vld [vmem:[%s5054_s13 + $0x28] sm:$0xff] }
 0x636   : > { %v2607_v30 = vrot.slane %v2600_v57, %v4426_v38  ;;  %v2615_v10 = vrot.slane %v3207_v58, %v4426_v38  ;;  %v2623_v22 = vrot.slane %v2616_v56, %v4426_v38  ;;  %v2631_v8 = vrot.slane %v3208_v20, %v4426_v38  ;;  %3444 = vmatprep.subr.mxu0 %v4136_v0  ;;  %v2892_v57 = vld [vmem:[%s5054_s13 + $0x18] sm:$0xff]  ;;  %v2891_v58 = vld [vmem:[%s5054_s13 + $0x10] sm:$0xff]  ;;  %v2890_v56 = vld [vmem:[%s5054_s13 + $0x8] sm:$0xff] }
 0x637   : > { %3445 = vmatpush3.msra.mxu0 %v2898_v13  ;;  %v2889_v20 = vld [vmem:[%s5054_s13] sm:$0xff] }
 0x638   : > { %v2633_v19 = vcombine.high %v2607_v30, %v2615_v10  ;;  %v2649_v9 = vcombine.high %v2623_v22, %v2631_v8  ;;  %v2632_v24 = vcombine.low %v2607_v30, %v2615_v10  ;;  %v2648_v25 = vcombine.low %v2623_v22, %v2631_v8  ;;  %3446 = vmatprep.subr.mxu0 %v4136_v0 }
 0x639   : > { %3447 = vmatpush3.msra.mxu0 %v2897_v53 }
 0x63a   : > { %v2647_v6 = vrot.slane %v2633_v19, %v4429_v45  ;;  %v2663_v26 = vrot.slane %v2649_v9, %v4429_v45  ;;  %v2640_v27 = vrot.slane %v2632_v24, %v4429_v45  ;;  %v2656_v28 = vrot.slane %v2648_v25, %v4429_v45  ;;  %v3209_v45 = vld [vmem:[%s5049_s8] ss:$0 sm:$0xff]  ;;  %3448 = vmatprep.subr.mxu0 %v4136_v0 }
 0x63b   : > { %3449 = vmatpush3.msra.mxu0 %v2896_v54 }
 0x63c   : > { %v2666_v29 = vcombine.low %v2647_v6, %v2663_v26  ;;  %v2665_v31 = vcombine.high %v2640_v27, %v2656_v28  ;;  %v2667_v5 = vcombine.high %v2647_v6, %v2663_v26  ;;  %v2664_v32 = vcombine.low %v2640_v27, %v2656_v28  ;;  %3450 = vmatprep.subr.mxu0 %v4136_v0 }
 0x63d   : > { %3451 = vmatpush3.msra.mxu0 %v2895_v14 }
 0x63e   : > { %2673 = vrot.lane.b32.xlu1 %v2666_v29, %s4145_s26  ;;  %2669 = vrot.lane.b32.xlu0 %v2665_v31, %s4146_s0  ;;  %s5122_s0 = sld [smem:[#allocation24_spill]]  ;;  %s3839_s26 = sshll.u32 %s4148_s11, 4  ;;  %s3840_s26 = int_to_ptr.vmem [resolvable:$false] %s3839_s26 }
 0x63f   : > { %3452 = vmatprep.subr.mxu0 %v4136_v0  ;;  %p3842_p5 = scmp.lt.s32.totalorder %s3030_s29, %s3840_s26 }
 0x640   : > { %3453 = vmatpush3.msra.mxu0 %v2894_v55 }
 0x641   : > { %3454 = vmatprep.subr.mxu0 %v4136_v0 }
 0x642   : > { %2677 = vrot.lane.b32.xlu1 %v2667_v5, %s4147_s30  ;;  %3455 = vmatpush3.msra.mxu0 %v2893_v47 }
 0x643   : > { %3456 = vmatprep.subr.mxu0 %v4136_v0 }
 0x644   : > { %3457 = vmatpush3.msra.mxu0 %v2892_v57 }
 0x645   : > { %3458 = vmatprep.subr.mxu0 %v4136_v0 }
 0x646   : > { %3459 = vmatpush3.msra.mxu0 %v2891_v58 }
 0x647   : > { %3460 = vmatprep.subr.mxu0 %v4136_v0 }
 0x648   : > { %3461 = vmatpush3.msra.mxu0 %v2890_v56 }
 0x649   : > { %3462 = vmatprep.subr.mxu0 %v4136_v0 }
 0x64a   : > { %3463 = vmatpush3.msra.mxu0 %v2889_v20 }
 0x6b0   : > { %v2674_v38 = vpop.permute.xlu1 %2673  ;;  %v2670_v33 = vpop.permute.xlu0 %2669 }
 0x6b1   : > { %v2680_v3 = vsel %vm1162_vm2, %v2664_v32, %v2670_v33 }
 0x6b2   : > { %v2682_v35 = vsel %vm2681_vm5, %v2680_v3, %v2674_v38 }
 0x6b4   : > { %v2678_v36 = vpop.permute.xlu1 %2677 }
 0x6b5   : > { %v2684_v23 = vsel %vm2683_vm6, %v2682_v35, %v2678_v36 }
 0x6b6   : > { %3419 = vmatmul.mubr.msk.f32.vlgmr.msra.gmra.mxu1 %vm599_vm1, %v2684_v23 }
 0x6b7   : > { %3429 = vmatprep.mubr.msk.f32.mxu1 %vm4137_vm0, %v4136_v0  ;;  %3422 = vmatpush3.msra.mxu1 %v2803_v46 }
 0x6b8   : > { %3423 = vmatprep.subr.mxu1 %v4136_v0 }
 0x6b9   : > { %3424 = vmatpush3.msra.mxu1 %v2802_v48 }
 0x6ba   : > { %3425 = vmatprep.subr.mxu1 %v4136_v0 }
 0x6bb   : > { %3426 = vmatpush3.msra.mxu1 %v2801_v1 }
 0x6bc   : > { %3427 = vmatprep.subr.mxu1 %v4136_v0  ;;  %v3215_v0 = vld [vmem:[%s5055_s14] ss:$0 sm:$0xff] }
 0x776   : > { %v2765_v4 = vpop.f32.mrf.mxu1 }
 0x777   : > { %v2766_v34 = vadd.f32 %v3209_v45, %v2765_v4  ;;  %v3216_v45 = vld [vmem:[%s5122_s0] ss:$0 sm:$0xff]  ;;  %s3841_s0 = scalar_lea.vmem %s3840_s26, 256 }
 0x778   : > { %v3420_v2 = vpop.f32.mrf.mxu1  ;;  %p3843_p6 = scmp.lt.s32.totalorder %s3841_s0, %s3835_s18 }
 0x779   : > { %v2769_v37 = vadd.f32 %v2766_v34, %v4377_v7  ;;  %v2800_v7 = vld [vmem:[#allocation4] sm:$0xff] }
 0x77a   : > { %3428 = vmatpush3.msra.mxu1 %v2800_v7  ;;  %v3217_v34 = vld [vmem:[%s5123_s19] ss:$0 sm:$0xff]  ;;  %p3844_p7 = por %p3843_p6, %p3842_p5 }
 0x77b   : > { %v2770_v39 = vsel %vm599_vm1, %v2769_v37, 0.0 }
 0x77c   : > { %2771 = vadd.xlane.f32.xlu1 %v2770_v39  ;;  %p3845_p9 = pnand %p3844_p7, %p3838_p4 }
 0x805   : > { %v2772_v40 = vpop.xlane.xlu1 %2771 }
 0x806   : > { %v2774_v41 = vmul.f32 0.03125, %v2772_v40 }
 0x808   : > { %v2775_v42 = vsub.f32 %v2769_v37, %v2774_v41 }
 0x80a   : > { %v2776_v43 = vmul.f32 %v2775_v42, %v2775_v42 }
 0x80c   : > { %v2777_v44 = vsel %vm599_vm1, %v2776_v43, 0.0 }
 0x80d   : > { %2778 = vadd.xlane.f32.xlu0 %v2777_v44 }
 0x896   : > { %v2779_v52 = vpop.xlane.xlu0 %2778 }
 0x897   : > { %v2780_v18 = vmul.f32 0.03125, %v2779_v52 }
 0x899   : > { %v2781_v59 = vadd.f32 1e-05, %v2780_v18 }
 0x89b   : > { %3803 = vrsqrt.f32 %v2781_v59 }
 0x8a8   : > { %v3804_v63 = vpop.eup %3803 }
 0x8a9   : > { %v2783_v17 = vmul.f32 %v3804_v63, %v2775_v42 }
 0x8ab   : > { %v2791_v61 = vmul.f32 %v3211_v60, %v2783_v17 }
 0x8ad   : > { %v2799_v15 = vadd.f32 %v3212_v16, %v2791_v61 }
 0x8af   : > { %3430 = vmatmul.mubr.msk.f32.vlgmr.msra.gmra.mxu1 %vm599_vm1, %v2799_v15 }
 0x96f   : > { %v2880_v30 = vpop.f32.mrf.mxu1 }
 0x970   : > { %v2881_v10 = vadd.f32 %v3213_v21, %v2880_v30 }
 0x971   : > { %v3431_v22 = vpop.f32.mrf.mxu1 }
 0x972   : > { %v2885_v8 = vmul.f32 0.70710677, %v2881_v10  ;;  %v2884_v9 = vmul.f32 0.5, %v2881_v10 }
 0x974   : > { %3805 = verf.f32 %v2885_v8 }
 0x981   : > { %v3806_v19 = vpop.eup %3805 }
 0x982   : > { %v2887_v24 = vadd.f32 1.0, %v3806_v19 }
 0x984   : > { %v2888_v25 = vmul.f32 %v2887_v24, %v2884_v9 }
 0x986   : > { %3465 = vmatmul.mubr.f32.vlgmr.msra.gmra.mxu0 %v2888_v25 }
 0xa46   : > { %v2978_v6 = vpop.f32.mrf.mxu0 }
 0xa47   : > { %v2979_v26 = vadd.f32 %v3215_v0, %v2978_v6 }
 0xa48   : > { %v3466_v27 = vpop.f32.mrf.mxu0 }
 0xa49   : > { %v2982_v28 = vadd.f32 %v2979_v26, %v2799_v15 }
 0xa4b   : > { %v2983_v29 = vsel %vm599_vm1, %v2982_v28, 0.0 }
 0xa4c   : > { %2984 = vadd.xlane.f32.xlu0 %v2983_v29 }
 0xad5   : > { %v2985_v31 = vpop.xlane.xlu0 %2984 }
 0xad6   : > { %v2986_v5 = vmul.f32 0.03125, %v2985_v31 }
 0xad8   : > { %v2987_v32 = vsub.f32 %v2982_v28, %v2986_v5 }
 0xada   : > { %v2988_v38 = vmul.f32 %v2987_v32, %v2987_v32 }
 0xadc   : > { %v2989_v33 = vsel %vm599_vm1, %v2988_v38, 0.0 }
 0xadd   : > { %2990 = vadd.xlane.f32.xlu0 %v2989_v33 }
 0xb66   : > { %v2991_v3 = vpop.xlane.xlu0 %2990 }
 0xb67   : > { %v2992_v35 = vmul.f32 0.03125, %v2991_v3 }
 0xb69   : > { %v2993_v36 = vadd.f32 1e-05, %v2992_v35 }
 0xb6b   : > { %3807 = vrsqrt.f32 %v2993_v36 }
 0xb78   : > { %v3808_v23 = vpop.eup %3807 }
 0xb79   : > { %v2995_v4 = vmul.f32 %v3808_v23, %v2987_v32 }
 0xb7b   : > { %v3003_v2 = vmul.f32 %v3216_v45, %v2995_v4 }
 0xb7d   : > { %v3011_v37 = vadd.f32 %v3217_v34, %v3003_v2 }
 0xb7f   : > { %3012 = vst.msk [vmem:[%s578_s16] sm:$0xff] %vm599_vm1, %v3011_v37 }
 0xb80   : > { %3848 = shalt.err (!%p3845_p9)
}
 0xb81   : > { %s3849_s30 = scalar_lea.hbm %s3027_s3, 128  ;;  %s3853_s20 = scalar_lea.hbm %s5125_s2, 512 }
 0xb82   : > { %p3850_p11 = scmp.ne.s32.totalorder %s3027_s3, %s3849_s30  ;;  %p3854_p12 = scmp.lt.s32.totalorder %s3027_s3, %s5125_s2 }
 0xb83   : > { %p3855_p0 = scmp.lt.s32.totalorder %s3853_s20, %s3849_s30 }
 0xb84   : > { %p3851_p13 = pnand %p3850_p11, %p4291_p3 }
 0xb85   : > { %p3856_p1 = por %p3855_p0, %p3854_p12 }
 0xb86   : > { %p3852_p10 = pneg %p3851_p13 }
 0xb88   : > { %p3857_p2 = pnand %p3856_p1, %p3852_p10 }
 0xb8a   : > { %3860 = shalt.err (!%p3857_p2)
}
 0xb8b   : > { %3471 = dma.vmem_to_hbm [thread:$0]  (%p4291_p3), %s3030_s29, 128, %s3027_s3, %s3014_s21  }
 0xb8c PF: > { %s5127_s1 = sld [smem:[#allocation14_spill]] }
 0xb8d   : > { %s5128_s24 = sld [smem:[#allocation10_spill]] }
 0xb92   : > { %p3483_p4 = scmp.ge.s32.totalorder %s5127_s1, 2 }
 0xb93   : > { %s3041_s27 = sand.u32 1, %s5128_s24  }
 0xb94   : > { %p3478_p5 = pnand %p3483_p4, %p4300_p8  ;;  %s3042_s18 = scalar_lea.sflag [#allocation6], %s3041_s27 }
 0xb96   : > { %p3479_p6 = pneg %p3478_p5 }
 0xb98   : > { %3998 = dma.done.wait (%p3479_p6), %s3042_s18, 128  }
 0xb99   : > { %4000 = vsyncadd (%p3479_p6), %s3042_s18, 4294967168  ;;  %s31_s30 = sadd.s32 1, %s5127_s1   ;;  %s5130_s11 = sld [smem:[#allocation11_spill]] }
 0xb9a   : > { %p28_p7 = scmp.ge.s32.totalorder %s31_s30, 6   ;;  %s5131_s26 = sld [smem:[#allocation18_spill]] }
 0xb9b   : > { %s5132_s27 = sld [smem:[#allocation12_spill]]  ;;  %s5136_s24 = smov %s4007_s25 }
 0xb9c   : > { %s5133_s28 = sld [smem:[#allocation13_spill]]  ;;  %30 = sbr.rel (!%p28_p7) target bundleno = 15 (0xf), region = 150 }
 0xb9d   : > { %s5134_s29 = sld [smem:[#allocation15_spill]] }
 0xb9e   : > { %s5135_s0 = sld [smem:[#allocation16_spill]] }
 0xb9f   : > { %s5137_s25 = smov %s5130_s11 }
 0xba1   :  { %3047 = vsyncpa [#allocation5], 1 }
 0xba2   :  { %3049 = vsyncpa [#allocation5 + $0x1], 1 }
 0xba3   :  { %3050 = vsyncpa [#allocation6], 1 }
 0xba4   :  { %3052 = vsyncpa [#allocation6 + $0x1], 1 }

</bundles_post_ra>
